<compile_context>
chip_gen: v7x
topology: tpu7x:2x2x1
jax: 0.10.0
libtpu: 0.0.40
codegen_flags: <defaults>
</compile_context>

<pallas_src>
import functools

import jax
import jax.numpy as jnp
import numpy as np
from jax import lax
from jax.experimental import pallas as pl
from jax.experimental.pallas import tpu as pltpu


def _round_up(x, m):
    return ((x + m - 1) // m) * m


def _vmem_capacity_bytes():
    """Physical VMEM per TensorCore (best effort; falls back to 128 MiB)."""
    try:
        return int(pltpu.get_tpu_info().vmem_capacity_bytes)
    except Exception:
        pass
    try:
        kind = jax.devices()[0].device_kind.lower()
        if "v7" in kind:
            return 64 << 20
    except Exception:
        pass
    return 128 << 20


def _is_multi_tensorcore():
    try:
        return "v7" in jax.devices()[0].device_kind.lower()
    except Exception:
        return False


def _vmem_bytes_estimate(tb, nb, dp, hp, x_bytes, w_bytes, gx_bytes, out_bytes):
    """Resident-VMEM estimate for one grid step: 2x pipelined blocks
    (x, masks, out, final h/c), 1x invariants (weights, bias, h0/c0),
    plus scratch (gx, h, c)."""
    g = 4 * hp
    est = 2 * tb * nb * dp * x_bytes          # x blocks (double-buffered)
    est += 2 * tb * nb * 1 * 4                # mask blocks
    est += 2 * tb * nb * hp * out_bytes       # per-step output blocks
    est += (dp * g + hp * g) * w_bytes        # W_ih^T, W_hh^T (Buffered(1))
    est += g * 4                              # bias
    est += 2 * nb * hp * 4                    # h0, c0 (Buffered(1))
    est += 2 * 2 * nb * hp * 4                # final h/c output blocks
    est += tb * nb * g * gx_bytes             # gx scratch
    est += 2 * nb * hp * 4                    # h/c carry scratch
    return est


# ----------------------------------------------------------------------------
# Pallas kernel: one grid step == TB LSTM timesteps for one batch chunk.
# h/c live in VMEM scratch across the (sequential) time-block grid axis.
# ----------------------------------------------------------------------------
def _lstm_recurrent_kernel(x_ref, m_ref, h0_ref, c0_ref, wih_ref, whh_ref,
                           b_ref, out_ref, hout_ref, cout_ref,
                           gx_sc, h_sc, c_sc,
                           *, hp, tb, nb, t_valid, t_pad, bf16_gates):
    t_blk = pl.program_id(1)

    # Load the initial hidden state at the start of each batch chunk.
    @pl.when(t_blk == 0)
    def _():
        h_sc[...] = h0_ref[...]
        c_sc[...] = c0_ref[...]

    w_ih = wih_ref[...]          # (Dp, 4Hp), single-buffered resident
    w_hh = whh_ref[...]          # (Hp, 4Hp), single-buffered resident

    # Fused input projection for the whole time block: one (TB*NB, Dp) x
    # (Dp, 4Hp) MXU matmul into VMEM scratch; gx never touches HBM.
    dp = x_ref.shape[-1]
    x2d = x_ref[...].reshape(tb * nb, dp).astype(w_ih.dtype)
    gx = jnp.dot(x2d, w_ih, preferred_element_type=jnp.float32) + b_ref[...]
    gx_sc[...] = gx.reshape(tb, nb, 4 * hp).astype(gx_sc.dtype)

    def do_step(tt):
        m = m_ref[tt]                          # (NB, 1) per-env reset mask
        h = h_sc[...] * m
        c = c_sc[...] * m
        # Recurrent half only; x-projection + bias already in gx scratch.
        gates = gx_sc[tt].astype(jnp.float32) + jnp.dot(
            h.astype(w_hh.dtype), w_hh, preferred_element_type=jnp.float32)
        if bf16_gates:
            gates = gates.astype(jnp.bfloat16)   # bf16 EUP on v6e/v7x

        half = jnp.asarray(0.5, gates.dtype)
        # sigmoid(x) = 0.5*tanh(0.5*x)+0.5: one EUP op per gate instead of
        # exp + divide (three sigmoids sit on the recurrent critical path).
        # Gate slices are 128-aligned (hp is a multiple of 128) -> free views.
        i_g = half * jnp.tanh(half * gates[:, 0 * hp:1 * hp]) + half
        f_g = half * jnp.tanh(half * gates[:, 1 * hp:2 * hp]) + half
        g_g = jnp.tanh(gates[:, 2 * hp:3 * hp])
        o_g = half * jnp.tanh(half * gates[:, 3 * hp:4 * hp]) + half

        c_new = (f_g.astype(jnp.float32) * c
                 + i_g.astype(jnp.float32) * g_g.astype(jnp.float32))
        h_new = o_g.astype(jnp.float32) * jnp.tanh(c_new)
        h_sc[...] = h_new
        c_sc[...] = c_new
        out_ref[tt] = h_new.astype(out_ref.dtype)

    def pad_step(tt):
        # Padded timesteps: leave h/c untouched, write zeros (not stale VMEM)
        # into the padded output rows.
        out_ref[tt] = jnp.zeros((nb, hp), out_ref.dtype)

    needs_guard = (t_valid != t_pad)   # static: only guard if time was padded

    def body(tt, carry):
        if needs_guard:
            valid = (t_blk * tb + tt) < t_valid
            pl.when(valid)(lambda: do_step(tt))
            pl.when(jnp.logical_not(valid))(lambda: pad_step(tt))
        else:
            do_step(tt)
        return carry

    # Partial unroll: several (NB, 4Hp) tiles are live per step, full unroll
    # at large TB would spill vregs.
    lax.fori_loop(0, tb, body, 0, unroll=min(tb, 8))

    # Final-state writes only on the last time block.
    @pl.when(t_blk == pl.num_programs(1) - 1)
    def _():
        hout_ref[...] = h_sc[...].astype(hout_ref.dtype)
        cout_ref[...] = c_sc[...].astype(cout_ref.dtype)


def _lstm_recurrence(x, masks, h0, c0, w_ih_t, w_hh_t, bias,
                     *, hidden_pad, time_block, batch_block, t_valid,
                     gx_dtype, out_dtype, bf16_gates, vmem_limit_bytes,
                     single_buffer_invariants):
    """x: (T_pad, Np, Dp), masks: (T_pad, Np, 1) f32, h0/c0: (Np, Hp) f32,
       w_ih_t: (Dp, 4Hp), w_hh_t: (Hp, 4Hp), bias: (1, 4Hp) f32."""
    T_pad, Np, Dp = x.shape
    Hp = hidden_pad
    TB = time_block
    NB = batch_block
    n_b = Np // NB
    n_t = T_pad // TB

    kernel = functools.partial(
        _lstm_recurrent_kernel, hp=Hp, tb=TB, nb=NB,
        t_valid=t_valid, t_pad=T_pad, bf16_gates=bf16_gates)

    if single_buffer_invariants:
        # Time-invariant inputs: no point double-buffering them.
        def inv(shape, imap):
            return pl.BlockSpec(shape, imap, pipeline_mode=pl.Buffered(1))
    else:
        def inv(shape, imap):
            return pl.BlockSpec(shape, imap)

    grid_spec = pltpu.PrefetchScalarGridSpec(
        num_scalar_prefetch=0,
        grid=(n_b, n_t),
        in_specs=[
            pl.BlockSpec((TB, NB, Dp), lambda b, t: (t, b, 0)),   # x
            pl.BlockSpec((TB, NB, 1), lambda b, t: (t, b, 0)),    # masks
            inv((NB, Hp), lambda b, t: (b, 0)),                   # h0
            inv((NB, Hp), lambda b, t: (b, 0)),                   # c0
            inv((Dp, 4 * Hp), lambda b, t: (0, 0)),               # W_ih^T
            inv((Hp, 4 * Hp), lambda b, t: (0, 0)),               # W_hh^T
            inv((1, 4 * Hp), lambda b, t: (0, 0)),                # bias
        ],
        out_specs=[
            pl.BlockSpec((TB, NB, Hp), lambda b, t: (t, b, 0)),   # per-step h
            pl.BlockSpec((NB, Hp), lambda b, t: (b, 0)),          # final h
            pl.BlockSpec((NB, Hp), lambda b, t: (b, 0)),          # final c
        ],
        scratch_shapes=[
            pltpu.VMEM((TB, NB, 4 * Hp), gx_dtype),               # gx block
            pltpu.VMEM((NB, Hp), jnp.float32),                    # h carry
            pltpu.VMEM((NB, Hp), jnp.float32),                    # c carry
        ],
    )

    out_shapes = (
        jax.ShapeDtypeStruct((T_pad, Np, Hp), out_dtype),
        jax.ShapeDtypeStruct((Np, Hp), jnp.float32),
        jax.ShapeDtypeStruct((Np, Hp), jnp.float32),
    )

    return pl.pallas_call(
        kernel,
        out_shape=out_shapes,
        grid_spec=grid_spec,
        compiler_params=pltpu.CompilerParams(
            # batch chunks are independent (v7x two-TC sharding); the time
            # axis carries h/c state in scratch and must stay sequential.
            dimension_semantics=("parallel", "arbitrary"),
            vmem_limit_bytes=int(vmem_limit_bytes)),
    )(x, masks, h0, c0, w_ih_t, w_hh_t, bias)


# ----------------------------------------------------------------------------
# RNNStateEncoder wrapper (glue in plain JAX).
# ----------------------------------------------------------------------------
class RNNStateEncoderPallas:
    """LSTM state encoder. num_layers=1, rnn_type='LSTM' (module defaults).

    use_bf16_matmul=True: bf16 weights/x/gx/outputs/gate-math with f32
    accumulation and f32 h/c carry (recommended on v6e/v7x; keep False on
    v5e for a pure-f32 path)."""

    def __init__(self, input_size, hidden_size, num_layers=1, rnn_type="LSTM",
                 use_bf16_matmul=False, time_block=32, batch_block=None):
        assert rnn_type == "LSTM" and num_layers == 1, \
            "Synthetic kernel implements the default LSTM/num_layers=1 config."
        self.input_size = input_size
        self.hidden_size = hidden_size
        self.num_layers = num_layers
        self.use_bf16 = use_bf16_matmul
        self.time_block = max(1, time_block)
        self.batch_block = batch_block

        H, D = hidden_size, input_size
        Hp = _round_up(H, 128)          # lane-dense, 128-aligned gate blocks
        Dp = _round_up(D, 128)
        self.hidden_pad = Hp
        self.input_pad = Dp

        # Generation-aware VMEM budget / limit (review item 1).
        cap = _vmem_capacity_bytes()
        self._vmem_budget = (48 << 20) if cap <= (64 << 20) else (100 << 20)
        self._vmem_limit = int(min(cap, self._vmem_budget + (12 << 20)))
        self._multi_core = _is_multi_tensorcore()
        self._single_buffer_ok = True   # fall back if pl.Buffered(1) rejected

        # layer_init(): orthogonal weights, zero biases (deterministic).
        key = jax.random.PRNGKey(0)
        k_ih, k_hh = jax.random.split(key)
        ortho = jax.nn.initializers.orthogonal()
        w_ih = ortho(k_ih, (4 * H, D), jnp.float32)   # PyTorch layout (4H, D)
        w_hh = ortho(k_hh, (4 * H, H), jnp.float32)   # gate order i, f, g, o
        bias = jnp.zeros((4 * H,), jnp.float32)       # b_ih + b_hh = 0

        w_ih_t = jnp.transpose(w_ih)                  # (D, 4H)
        w_hh_t = jnp.transpose(w_hh)                  # (H, 4H)

        # Padded, gate-blocked layout: each gate occupies its own Hp-wide,
        # 128-aligned block of the 4Hp axis; padded rows/cols are zero.
        wih_p = jnp.zeros((Dp, 4 * Hp), jnp.float32)
        whh_p = jnp.zeros((Hp, 4 * Hp), jnp.float32)
        b_p = jnp.zeros((1, 4 * Hp), jnp.float32)
        for k in range(4):
            wih_p = wih_p.at[:D, k * Hp:k * Hp + H].set(w_ih_t[:, k * H:(k + 1) * H])
            whh_p = whh_p.at[:H, k * Hp:k * Hp + H].set(w_hh_t[:, k * H:(k + 1) * H])
            b_p = b_p.at[0, k * Hp:k * Hp + H].set(bias[k * H:(k + 1) * H])

        w_dtype = jnp.bfloat16 if use_bf16_matmul else jnp.float32
        self.w_ih_t_pad = wih_p.astype(w_dtype)
        self.w_hh_t_pad = whh_p.astype(w_dtype)
        self.bias_pad = b_p                            # bias stays f32
        self.x_dtype = jnp.bfloat16 if use_bf16_matmul else jnp.float32
        self.gx_dtype = jnp.bfloat16 if use_bf16_matmul else jnp.float32
        self.out_dtype = jnp.bfloat16 if use_bf16_matmul else jnp.float32

        # Unpadded f32 copies kept for the pure-JAX reference check.
        self.w_ih_t = w_ih_t
        self.w_hh_t = w_hh_t
        self.bias = bias.reshape(1, 4 * H)

    @property
    def num_recurrent_layers(self):
        return self.num_layers * 2  # LSTM packs (h, c)

    def _pick_batch_block(self, np_rows):
        if self.batch_block is not None:
            return max(8, _round_up(min(self.batch_block, np_rows), 8))
        # Only split on multi-TensorCore chips (v7x) and only if each chunk
        # keeps >=128 rows; single-TC chips keep one chunk (skinny matmul).
        if self._multi_core and np_rows >= 256:
            return _round_up((np_rows + 1) // 2, 8)
        return np_rows

    def __call__(self, x, hidden_states, masks):
        """x: (T*N, D) or (N, D); hidden_states: (2, N, H) packed (h; c);
        masks: (T*N, 1) or (N, 1). Returns (x_out, packed_hidden)."""
        N = hidden_states.shape[1]
        H, Hp, D, Dp = self.hidden_size, self.hidden_pad, self.input_size, self.input_pad
        T = x.shape[0] // N            # T == 1 reproduces single_forward

        # --- derive NB / TB from the VMEM budget (review item 1) ---
        n_eff = _round_up(N, 8)
        NB = self._pick_batch_block(n_eff)
        TB = max(1, min(self.time_block, T))
        xb = jnp.dtype(self.x_dtype).itemsize
        wb = jnp.dtype(self.w_ih_t_pad.dtype).itemsize
        gxb = jnp.dtype(self.gx_dtype).itemsize
        ob = jnp.dtype(self.out_dtype).itemsize
        while True:
            if _vmem_bytes_estimate(TB, NB, Dp, Hp, xb, wb, gxb, ob) <= self._vmem_budget:
                break
            if TB > 1:
                TB = max(1, TB // 2)
            elif NB > 8:
                NB = max(8, _round_up(NB // 2, 8))
            else:
                break
        Np = _round_up(n_eff, NB)
        T_pad = _round_up(T, TB)

        # --- pad the (small) inputs into the kernel layout ---
        xr = jnp.reshape(x, (T, N, D)).astype(self.x_dtype)
        xp = jnp.pad(xr, ((0, T_pad - T), (0, Np - N), (0, Dp - D)))
        mr = jnp.reshape(masks.astype(jnp.float32), (T, N, 1))
        mp = jnp.pad(mr, ((0, T_pad - T), (0, Np - N), (0, 0)))
        h0 = jnp.pad(hidden_states[0].astype(jnp.float32),
                     ((0, Np - N), (0, Hp - H)))
        c0 = jnp.pad(hidden_states[1].astype(jnp.float32),
                     ((0, Np - N), (0, Hp - H)))

        run = functools.partial(
            _lstm_recurrence, xp, mp, h0, c0,
            self.w_ih_t_pad, self.w_hh_t_pad, self.bias_pad,
            hidden_pad=Hp, time_block=TB, batch_block=NB, t_valid=T,
            gx_dtype=self.gx_dtype, out_dtype=self.out_dtype,
            bf16_gates=self.use_bf16, vmem_limit_bytes=self._vmem_limit)
        try:
            out, h_f, c_f = run(single_buffer_invariants=self._single_buffer_ok)
        except Exception:
            if not self._single_buffer_ok:
                raise
            # pl.Buffered(1) / pipeline_mode not supported -> default buffering.
            self._single_buffer_ok = False
            out, h_f, c_f = run(single_buffer_invariants=False)

        x_out = out[:T, :N, :H].reshape(T * N, H)
        hidden = jnp.stack([h_f[:N, :H], c_f[:N, :H]], axis=0)
        return x_out, hidden.astype(hidden_states.dtype)


# ----------------------------------------------------------------------------
# Pure-JAX reference (for correctness check only).
# ----------------------------------------------------------------------------
def _lstm_ref(xs, ms, h0, c0, w_ih_t, w_hh_t, bias, H):
    h, c = h0, c0
    outs = []
    for t in range(xs.shape[0]):
        m = ms[t]
        h = h * m
        c = c * m
        g = (jnp.dot(xs[t], w_ih_t, precision=lax.Precision.HIGHEST)
             + jnp.dot(h, w_hh_t, precision=lax.Precision.HIGHEST)
             + bias)
        i_g = jax.nn.sigmoid(g[:, 0 * H:1 * H])
        f_g = jax.nn.sigmoid(g[:, 1 * H:2 * H])
        g_g = jnp.tanh(g[:, 2 * H:3 * H])
        o_g = jax.nn.sigmoid(g[:, 3 * H:4 * H])
        c = f_g * c + i_g * g_g
        h = o_g * jnp.tanh(c)
        outs.append(h)
    return jnp.stack(outs), h, c


def _check(name, got, want, atol, rtol):
    got = np.asarray(jnp.asarray(got, jnp.float32))
    want = np.asarray(jnp.asarray(want, jnp.float32))
    err = float(np.max(np.abs(got - want)))
    assert np.allclose(got, want, atol=atol, rtol=rtol), \
        f"{name}: max|err|={err}"


if __name__ == "__main__":
    D, H, N = 16, 32, 2
    enc = RNNStateEncoderPallas(input_size=D, hidden_size=H)

    key = jax.random.PRNGKey(0)
    kx, kh, kc, kx2 = jax.random.split(key, 4)

    T = 8
    x_seq = jax.random.normal(kx, (T * N, D), jnp.float32)
    h0 = jax.random.normal(kh, (N, H), jnp.float32)
    c0 = jax.random.normal(kc, (N, H), jnp.float32)
    hidden = jnp.stack([h0, c0], axis=0)                        # (2, N, H)

    # Episode-reset masks: binary, zeros at a couple of timesteps.
    masks_tn = np.ones((T, N), np.float32)
    masks_tn[3, 0] = 0.0
    masks_tn[5, :] = 0.0
    masks = jnp.asarray(masks_tn.reshape(T * N, 1))

    # --- seq_forward path (T*N rows) ---
    out_seq, hid_seq = enc(x_seq, hidden, masks)
    jax.block_until_ready((out_seq, hid_seq))

    # --- single_forward path (x.size(0) == hidden.size(1)) ---
    out_1, hid_1 = enc(x_seq[:N], hidden, masks[:N])
    jax.block_until_ready((out_1, hid_1))

    # Pure-JAX reference.  Tolerance covers the MXU's bf16-pass handling of
    # f32 matmuls inside the kernel; logic errors would be O(0.1).
    xs = x_seq.reshape(T, N, D)
    ms = masks.reshape(T, N, 1)
    ref_out, ref_h, ref_c = _lstm_ref(xs, ms, h0, c0,
                                      enc.w_ih_t, enc.w_hh_t, enc.bias, H)
    _check("seq_out", out_seq, ref_out.reshape(T * N, H), 1e-2, 1e-2)
    _check("seq_h", hid_seq[0], ref_h, 1e-2, 1e-2)
    _check("seq_c", hid_seq[1], ref_c, 1e-2, 1e-2)

    ref1_out, ref1_h, ref1_c = _lstm_ref(xs[:1], ms[:1], h0, c0,
                                         enc.w_ih_t, enc.w_hh_t, enc.bias, H)
    _check("single_out", out_1, ref1_out.reshape(N, H), 1e-2, 1e-2)
    _check("single_h", hid_1[0], ref1_h, 1e-2, 1e-2)
    _check("single_c", hid_1[1], ref1_c, 1e-2, 1e-2)

    # --- multi-time-block + padded-tail path (T=24, time_block=16 -> T_pad=32)
    enc_tb = RNNStateEncoderPallas(input_size=D, hidden_size=H, time_block=16)
    T2 = 24
    x2 = jax.random.normal(kx2, (T2 * N, D), jnp.float32)
    m2_tn = np.ones((T2, N), np.float32)
    m2_tn[7, 1] = 0.0
    m2_tn[16, :] = 0.0
    m2 = jnp.asarray(m2_tn.reshape(T2 * N, 1))
    out2, hid2 = enc_tb(x2, hidden, m2)
    jax.block_until_ready((out2, hid2))
    r2_out, r2_h, r2_c = _lstm_ref(x2.reshape(T2, N, D), m2.reshape(T2, N, 1),
                                   h0, c0, enc_tb.w_ih_t, enc_tb.w_hh_t,
                                   enc_tb.bias, H)
    _check("blk_out", out2, r2_out.reshape(T2 * N, H), 1e-2, 1e-2)
    _check("blk_h", hid2[0], r2_h, 1e-2, 1e-2)
    _check("blk_c", hid2[1], r2_c, 1e-2, 1e-2)

    # --- bf16 variant (recommended on v6e/v7x): run + loose check ---
    enc_bf16 = RNNStateEncoderPallas(input_size=D, hidden_size=H,
                                     use_bf16_matmul=True)
    out_bf, hid_bf = enc_bf16(x_seq, hidden, masks)
    jax.block_until_ready((out_bf, hid_bf))
    err_bf = np.max(np.abs(np.asarray(jnp.asarray(out_bf, jnp.float32))
                           - np.asarray(ref_out.reshape(T * N, H))))
    assert err_bf < 0.15, f"bf16 path max|err|={err_bf}"

    print("KERNEL_OK")
</pallas_src>

<mosaic_0001>
module attributes {stable_mosaic.version = 11 : i64} {
  func.func @_lstm_recurrent_kernel(%arg0: i32, %arg1: i32, %arg2: memref<8x8x128xf32, #tpu.memory_space<vmem>>, %arg3: memref<8x8x1xf32, #tpu.memory_space<vmem>>, %arg4: memref<8x128xf32, #tpu.memory_space<vmem>>, %arg5: memref<8x128xf32, #tpu.memory_space<vmem>>, %arg6: memref<128x512xf32, #tpu.memory_space<vmem>>, %arg7: memref<128x512xf32, #tpu.memory_space<vmem>>, %arg8: memref<1x512xf32, #tpu.memory_space<vmem>>, %arg9: memref<8x8x128xf32, #tpu.memory_space<vmem>>, %arg10: memref<8x128xf32, #tpu.memory_space<vmem>>, %arg11: memref<8x128xf32, #tpu.memory_space<vmem>>, %arg12: memref<8x8x512xf32, #tpu.memory_space<vmem>>, %arg13: memref<8x128xf32, #tpu.memory_space<vmem>>, %arg14: memref<8x128xf32, #tpu.memory_space<vmem>>) attributes {dimension_semantics = [#tpu.dimension_semantics<parallel>, #tpu.dimension_semantics<arbitrary>], iteration_bounds = array<i64: 1, 1>, scalar_prefetch = 0 : i64, scratch_operands = 3 : i64, tpu.core_type = #tpu.core_type<tc>, window_params = [{transform_indices = @transform_0, window_bounds = array<i64: 8, 8, 128>}, {transform_indices = @transform_1, window_bounds = array<i64: 8, 8, 1>}, {pipeline_mode = #tpu.pipeline_mode<synchronous>, transform_indices = @transform_2, window_bounds = array<i64: 8, 128>}, {pipeline_mode = #tpu.pipeline_mode<synchronous>, transform_indices = @transform_3, window_bounds = array<i64: 8, 128>}, {pipeline_mode = #tpu.pipeline_mode<synchronous>, transform_indices = @transform_4, window_bounds = array<i64: 128, 512>}, {pipeline_mode = #tpu.pipeline_mode<synchronous>, transform_indices = @transform_5, window_bounds = array<i64: 128, 512>}, {pipeline_mode = #tpu.pipeline_mode<synchronous>, transform_indices = @transform_6, window_bounds = array<i64: 1, 512>}, {transform_indices = @transform_7, window_bounds = array<i64: 8, 8, 128>}, {transform_indices = @transform_8, window_bounds = array<i64: 8, 128>}, {transform_indices = @transform_9, window_bounds = array<i64: 8, 128>}]} {
    %c0_i32 = arith.constant 0 : i32
    %0 = arith.cmpi eq, %arg1, %c0_i32 : i32
    %1 = arith.extui %0 : i1 to i32
    %c0_i32_0 = arith.constant 0 : i32
    %2 = arith.cmpi ne, %1, %c0_i32_0 : i32
    scf.if %2 {
      %c0_207 = arith.constant 0 : index
      %c0_208 = arith.constant 0 : index
      %424 = vector.load %arg4[%c0_207, %c0_208] : memref<8x128xf32, #tpu.memory_space<vmem>>, vector<8x128xf32>
      %c0_209 = arith.constant 0 : index
      %c0_210 = arith.constant 0 : index
      %425 = vector.load %arg13[%c0_209, %c0_210] : memref<8x128xf32, #tpu.memory_space<vmem>>, vector<8x128xf32>
      tpu.vector_store %arg13[%c0_209, %c0_210], %424 {strides = array<i32>} : memref<8x128xf32, #tpu.memory_space<vmem>>, vector<8x128xf32>,
      %c0_211 = arith.constant 0 : index
      %c0_212 = arith.constant 0 : index
      %426 = vector.load %arg5[%c0_211, %c0_212] : memref<8x128xf32, #tpu.memory_space<vmem>>, vector<8x128xf32>
      %c0_213 = arith.constant 0 : index
      %c0_214 = arith.constant 0 : index
      %427 = vector.load %arg14[%c0_213, %c0_214] : memref<8x128xf32, #tpu.memory_space<vmem>>, vector<8x128xf32>
      tpu.vector_store %arg14[%c0_213, %c0_214], %426 {strides = array<i32>} : memref<8x128xf32, #tpu.memory_space<vmem>>, vector<8x128xf32>,
    } else {
    }
    %c0 = arith.constant 0 : index
    %c0_1 = arith.constant 0 : index
    %3 = vector.load %arg6[%c0, %c0_1] : memref<128x512xf32, #tpu.memory_space<vmem>>, vector<128x512xf32>
    %c0_2 = arith.constant 0 : index
    %c0_3 = arith.constant 0 : index
    %4 = vector.load %arg7[%c0_2, %c0_3] : memref<128x512xf32, #tpu.memory_space<vmem>>, vector<128x512xf32>
    %c0_4 = arith.constant 0 : index
    %c0_5 = arith.constant 0 : index
    %c0_6 = arith.constant 0 : index
    %5 = vector.load %arg2[%c0_4, %c0_5, %c0_6] : memref<8x8x128xf32, #tpu.memory_space<vmem>>, vector<8x8x128xf32>
    %6 = vector.shape_cast %5 : vector<8x8x128xf32> to vector<64x128xf32>
    %cst = arith.constant dense<0.000000e+00> : vector<64x512xf32>
    %7 = tpu.matmul %6, %3, %cst {dimension_numbers = #tpu.dot_dimension_numbers<[1], [0], [0], [1], [0, 0, 1, 1], [], []>} : vector<64x128xf32>, vector<128x512xf32>, vector<64x512xf32> -> vector<64x512xf32>
    %c0_7 = arith.constant 0 : index
    %c0_8 = arith.constant 0 : index
    %8 = vector.load %arg8[%c0_7, %c0_8] : memref<1x512xf32, #tpu.memory_space<vmem>>, vector<1x512xf32>
    %9 = vector.broadcast %8 : vector<1x512xf32> to vector<64x512xf32>
    %10 = arith.addf %7, %9 : vector<64x512xf32>
    %11 = vector.shape_cast %10 : vector<64x512xf32> to vector<8x8x512xf32>
    %c0_9 = arith.constant 0 : index
    %c0_10 = arith.constant 0 : index
    %c0_11 = arith.constant 0 : index
    %12 = vector.load %arg12[%c0_9, %c0_10, %c0_11] : memref<8x8x512xf32, #tpu.memory_space<vmem>>, vector<8x8x512xf32>
    tpu.vector_store %arg12[%c0_9, %c0_10, %c0_11], %11 {strides = array<i32>} : memref<8x8x512xf32, #tpu.memory_space<vmem>>, vector<8x8x512xf32>,
    %c0_i32_12 = arith.constant 0 : i32
    %13 = arith.index_cast %c0_i32_12 : i32 to index
    %c0_13 = arith.constant 0 : index
    %c0_14 = arith.constant 0 : index
    %14 = vector.load %arg3[%13, %c0_13, %c0_14] : memref<8x8x1xf32, #tpu.memory_space<vmem>>, vector<1x8x1xf32>
    %15 = vector.shape_cast %14 : vector<1x8x1xf32> to vector<8x1xf32>
    %c0_15 = arith.constant 0 : index
    %c0_16 = arith.constant 0 : index
    %16 = vector.load %arg13[%c0_15, %c0_16] : memref<8x128xf32, #tpu.memory_space<vmem>>, vector<8x128xf32>
    %17 = vector.broadcast %15 : vector<8x1xf32> to vector<8x128xf32>
    %18 = arith.mulf %16, %17 : vector<8x128xf32>
    %c0_17 = arith.constant 0 : index
    %c0_18 = arith.constant 0 : index
    %19 = vector.load %arg14[%c0_17, %c0_18] : memref<8x128xf32, #tpu.memory_space<vmem>>, vector<8x128xf32>
    %20 = vector.broadcast %15 : vector<8x1xf32> to vector<8x128xf32>
    %21 = arith.mulf %19, %20 : vector<8x128xf32>
    %22 = arith.index_cast %c0_i32_12 : i32 to index
    %c0_19 = arith.constant 0 : index
    %c0_20 = arith.constant 0 : index
    %23 = vector.load %arg12[%22, %c0_19, %c0_20] : memref<8x8x512xf32, #tpu.memory_space<vmem>>, vector<1x8x512xf32>
    %24 = vector.shape_cast %23 : vector<1x8x512xf32> to vector<8x512xf32>
    %cst_21 = arith.constant dense<0.000000e+00> : vector<8x512xf32>
    %25 = tpu.matmul %18, %4, %cst_21 {dimension_numbers = #tpu.dot_dimension_numbers<[1], [0], [0], [1], [0, 0, 1, 1], [], []>} : vector<8x128xf32>, vector<128x512xf32>, vector<8x512xf32> -> vector<8x512xf32>
    %26 = arith.addf %24, %25 : vector<8x512xf32>
    %27 = vector.extract_strided_slice %26 {offsets = [0, 0], sizes = [8, 128], strides = [1, 1]} : vector<8x512xf32> to vector<8x128xf32>
    %cst_22 = arith.constant 5.000000e-01 : f32
    %28 = vector.broadcast %cst_22 : f32 to vector<8x128xf32>
    %29 = arith.mulf %28, %27 : vector<8x128xf32>
    %30 = math.tanh %29 : vector<8x128xf32>
    %cst_23 = arith.constant 5.000000e-01 : f32
    %31 = vector.broadcast %cst_23 : f32 to vector<8x128xf32>
    %32 = arith.mulf %31, %30 : vector<8x128xf32>
    %cst_24 = arith.constant 5.000000e-01 : f32
    %33 = vector.broadcast %cst_24 : f32 to vector<8x128xf32>
    %34 = arith.addf %32, %33 : vector<8x128xf32>
    %35 = vector.extract_strided_slice %26 {offsets = [0, 128], sizes = [8, 128], strides = [1, 1]} : vector<8x512xf32> to vector<8x128xf32>
    %cst_25 = arith.constant 5.000000e-01 : f32
    %36 = vector.broadcast %cst_25 : f32 to vector<8x128xf32>
    %37 = arith.mulf %36, %35 : vector<8x128xf32>
    %38 = math.tanh %37 : vector<8x128xf32>
    %cst_26 = arith.constant 5.000000e-01 : f32
    %39 = vector.broadcast %cst_26 : f32 to vector<8x128xf32>
    %40 = arith.mulf %39, %38 : vector<8x128xf32>
    %cst_27 = arith.constant 5.000000e-01 : f32
    %41 = vector.broadcast %cst_27 : f32 to vector<8x128xf32>
    %42 = arith.addf %40, %41 : vector<8x128xf32>
    %43 = vector.extract_strided_slice %26 {offsets = [0, 256], sizes = [8, 128], strides = [1, 1]} : vector<8x512xf32> to vector<8x128xf32>
    %44 = math.tanh %43 : vector<8x128xf32>
    %45 = vector.extract_strided_slice %26 {offsets = [0, 384], sizes = [8, 128], strides = [1, 1]} : vector<8x512xf32> to vector<8x128xf32>
    %cst_28 = arith.constant 5.000000e-01 : f32
    %46 = vector.broadcast %cst_28 : f32 to vector<8x128xf32>
    %47 = arith.mulf %46, %45 : vector<8x128xf32>
    %48 = math.tanh %47 : vector<8x128xf32>
    %cst_29 = arith.constant 5.000000e-01 : f32
    %49 = vector.broadcast %cst_29 : f32 to vector<8x128xf32>
    %50 = arith.mulf %49, %48 : vector<8x128xf32>
    %cst_30 = arith.constant 5.000000e-01 : f32
    %51 = vector.broadcast %cst_30 : f32 to vector<8x128xf32>
    %52 = arith.addf %50, %51 : vector<8x128xf32>
    %53 = arith.mulf %42, %21 : vector<8x128xf32>
    %54 = arith.mulf %34, %44 : vector<8x128xf32>
    %55 = arith.addf %53, %54 : vector<8x128xf32>
    %56 = math.tanh %55 : vector<8x128xf32>
    %57 = arith.mulf %52, %56 : vector<8x128xf32>
    %c0_31 = arith.constant 0 : index
    %c0_32 = arith.constant 0 : index
    %58 = vector.load %arg13[%c0_31, %c0_32] : memref<8x128xf32, #tpu.memory_space<vmem>>, vector<8x128xf32>
    tpu.vector_store %arg13[%c0_31, %c0_32], %57 {strides = array<i32>} : memref<8x128xf32, #tpu.memory_space<vmem>>, vector<8x128xf32>,
    %c0_33 = arith.constant 0 : index
    %c0_34 = arith.constant 0 : index
    %59 = vector.load %arg14[%c0_33, %c0_34] : memref<8x128xf32, #tpu.memory_space<vmem>>, vector<8x128xf32>
    tpu.vector_store %arg14[%c0_33, %c0_34], %55 {strides = array<i32>} : memref<8x128xf32, #tpu.memory_space<vmem>>, vector<8x128xf32>,
    %60 = arith.index_cast %c0_i32_12 : i32 to index
    %c0_35 = arith.constant 0 : index
    %c0_36 = arith.constant 0 : index
    %61 = vector.load %arg9[%60, %c0_35, %c0_36] : memref<8x8x128xf32, #tpu.memory_space<vmem>>, vector<1x8x128xf32>
    %62 = vector.shape_cast %61 : vector<1x8x128xf32> to vector<8x128xf32>
    %63 = vector.shape_cast %57 : vector<8x128xf32> to vector<1x8x128xf32>
    tpu.vector_store %arg9[%60, %c0_35, %c0_36], %63 {strides = array<i32>} : memref<8x8x128xf32, #tpu.memory_space<vmem>>, vector<1x8x128xf32>,
    %c1_i32 = arith.constant 1 : i32
    %64 = arith.index_cast %c1_i32 : i32 to index
    %c0_37 = arith.constant 0 : index
    %c0_38 = arith.constant 0 : index
    %65 = vector.load %arg3[%64, %c0_37, %c0_38] : memref<8x8x1xf32, #tpu.memory_space<vmem>>, vector<1x8x1xf32>
    %66 = vector.shape_cast %65 : vector<1x8x1xf32> to vector<8x1xf32>
    %c0_39 = arith.constant 0 : index
    %c0_40 = arith.constant 0 : index
    %67 = vector.load %arg13[%c0_39, %c0_40] : memref<8x128xf32, #tpu.memory_space<vmem>>, vector<8x128xf32>
    %68 = vector.broadcast %66 : vector<8x1xf32> to vector<8x128xf32>
    %69 = arith.mulf %67, %68 : vector<8x128xf32>
    %c0_41 = arith.constant 0 : index
    %c0_42 = arith.constant 0 : index
    %70 = vector.load %arg14[%c0_41, %c0_42] : memref<8x128xf32, #tpu.memory_space<vmem>>, vector<8x128xf32>
    %71 = vector.broadcast %66 : vector<8x1xf32> to vector<8x128xf32>
    %72 = arith.mulf %70, %71 : vector<8x128xf32>
    %73 = arith.index_cast %c1_i32 : i32 to index
    %c0_43 = arith.constant 0 : index
    %c0_44 = arith.constant 0 : index
    %74 = vector.load %arg12[%73, %c0_43, %c0_44] : memref<8x8x512xf32, #tpu.memory_space<vmem>>, vector<1x8x512xf32>
    %75 = vector.shape_cast %74 : vector<1x8x512xf32> to vector<8x512xf32>
    %cst_45 = arith.constant dense<0.000000e+00> : vector<8x512xf32>
    %76 = tpu.matmul %69, %4, %cst_45 {dimension_numbers = #tpu.dot_dimension_numbers<[1], [0], [0], [1], [0, 0, 1, 1], [], []>} : vector<8x128xf32>, vector<128x512xf32>, vector<8x512xf32> -> vector<8x512xf32>
    %77 = arith.addf %75, %76 : vector<8x512xf32>
    %78 = vector.extract_strided_slice %77 {offsets = [0, 0], sizes = [8, 128], strides = [1, 1]} : vector<8x512xf32> to vector<8x128xf32>
    %cst_46 = arith.constant 5.000000e-01 : f32
    %79 = vector.broadcast %cst_46 : f32 to vector<8x128xf32>
    %80 = arith.mulf %79, %78 : vector<8x128xf32>
    %81 = math.tanh %80 : vector<8x128xf32>
    %cst_47 = arith.constant 5.000000e-01 : f32
    %82 = vector.broadcast %cst_47 : f32 to vector<8x128xf32>
    %83 = arith.mulf %82, %81 : vector<8x128xf32>
    %cst_48 = arith.constant 5.000000e-01 : f32
    %84 = vector.broadcast %cst_48 : f32 to vector<8x128xf32>
    %85 = arith.addf %83, %84 : vector<8x128xf32>
    %86 = vector.extract_strided_slice %77 {offsets = [0, 128], sizes = [8, 128], strides = [1, 1]} : vector<8x512xf32> to vector<8x128xf32>
    %cst_49 = arith.constant 5.000000e-01 : f32
    %87 = vector.broadcast %cst_49 : f32 to vector<8x128xf32>
    %88 = arith.mulf %87, %86 : vector<8x128xf32>
    %89 = math.tanh %88 : vector<8x128xf32>
    %cst_50 = arith.constant 5.000000e-01 : f32
    %90 = vector.broadcast %cst_50 : f32 to vector<8x128xf32>
    %91 = arith.mulf %90, %89 : vector<8x128xf32>
    %cst_51 = arith.constant 5.000000e-01 : f32
    %92 = vector.broadcast %cst_51 : f32 to vector<8x128xf32>
    %93 = arith.addf %91, %92 : vector<8x128xf32>
    %94 = vector.extract_strided_slice %77 {offsets = [0, 256], sizes = [8, 128], strides = [1, 1]} : vector<8x512xf32> to vector<8x128xf32>
    %95 = math.tanh %94 : vector<8x128xf32>
    %96 = vector.extract_strided_slice %77 {offsets = [0, 384], sizes = [8, 128], strides = [1, 1]} : vector<8x512xf32> to vector<8x128xf32>
    %cst_52 = arith.constant 5.000000e-01 : f32
    %97 = vector.broadcast %cst_52 : f32 to vector<8x128xf32>
    %98 = arith.mulf %97, %96 : vector<8x128xf32>
    %99 = math.tanh %98 : vector<8x128xf32>
    %cst_53 = arith.constant 5.000000e-01 : f32
    %100 = vector.broadcast %cst_53 : f32 to vector<8x128xf32>
    %101 = arith.mulf %100, %99 : vector<8x128xf32>
    %cst_54 = arith.constant 5.000000e-01 : f32
    %102 = vector.broadcast %cst_54 : f32 to vector<8x128xf32>
    %103 = arith.addf %101, %102 : vector<8x128xf32>
    %104 = arith.mulf %93, %72 : vector<8x128xf32>
    %105 = arith.mulf %85, %95 : vector<8x128xf32>
    %106 = arith.addf %104, %105 : vector<8x128xf32>
    %107 = math.tanh %106 : vector<8x128xf32>
    %108 = arith.mulf %103, %107 : vector<8x128xf32>
    %c0_55 = arith.constant 0 : index
    %c0_56 = arith.constant 0 : index
    %109 = vector.load %arg13[%c0_55, %c0_56] : memref<8x128xf32, #tpu.memory_space<vmem>>, vector<8x128xf32>
    tpu.vector_store %arg13[%c0_55, %c0_56], %108 {strides = array<i32>} : memref<8x128xf32, #tpu.memory_space<vmem>>, vector<8x128xf32>,
    %c0_57 = arith.constant 0 : index
    %c0_58 = arith.constant 0 : index
    %110 = vector.load %arg14[%c0_57, %c0_58] : memref<8x128xf32, #tpu.memory_space<vmem>>, vector<8x128xf32>
    tpu.vector_store %arg14[%c0_57, %c0_58], %106 {strides = array<i32>} : memref<8x128xf32, #tpu.memory_space<vmem>>, vector<8x128xf32>,
    %111 = arith.index_cast %c1_i32 : i32 to index
    %c0_59 = arith.constant 0 : index
    %c0_60 = arith.constant 0 : index
    %112 = vector.load %arg9[%111, %c0_59, %c0_60] : memref<8x8x128xf32, #tpu.memory_space<vmem>>, vector<1x8x128xf32>
    %113 = vector.shape_cast %112 : vector<1x8x128xf32> to vector<8x128xf32>
    %114 = vector.shape_cast %108 : vector<8x128xf32> to vector<1x8x128xf32>
    tpu.vector_store %arg9[%111, %c0_59, %c0_60], %114 {strides = array<i32>} : memref<8x8x128xf32, #tpu.memory_space<vmem>>, vector<1x8x128xf32>,
    %c2_i32 = arith.constant 2 : i32
    %115 = arith.index_cast %c2_i32 : i32 to index
    %c0_61 = arith.constant 0 : index
    %c0_62 = arith.constant 0 : index
    %116 = vector.load %arg3[%115, %c0_61, %c0_62] : memref<8x8x1xf32, #tpu.memory_space<vmem>>, vector<1x8x1xf32>
    %117 = vector.shape_cast %116 : vector<1x8x1xf32> to vector<8x1xf32>
    %c0_63 = arith.constant 0 : index
    %c0_64 = arith.constant 0 : index
    %118 = vector.load %arg13[%c0_63, %c0_64] : memref<8x128xf32, #tpu.memory_space<vmem>>, vector<8x128xf32>
    %119 = vector.broadcast %117 : vector<8x1xf32> to vector<8x128xf32>
    %120 = arith.mulf %118, %119 : vector<8x128xf32>
    %c0_65 = arith.constant 0 : index
    %c0_66 = arith.constant 0 : index
    %121 = vector.load %arg14[%c0_65, %c0_66] : memref<8x128xf32, #tpu.memory_space<vmem>>, vector<8x128xf32>
    %122 = vector.broadcast %117 : vector<8x1xf32> to vector<8x128xf32>
    %123 = arith.mulf %121, %122 : vector<8x128xf32>
    %124 = arith.index_cast %c2_i32 : i32 to index
    %c0_67 = arith.constant 0 : index
    %c0_68 = arith.constant 0 : index
    %125 = vector.load %arg12[%124, %c0_67, %c0_68] : memref<8x8x512xf32, #tpu.memory_space<vmem>>, vector<1x8x512xf32>
    %126 = vector.shape_cast %125 : vector<1x8x512xf32> to vector<8x512xf32>
    %cst_69 = arith.constant dense<0.000000e+00> : vector<8x512xf32>
    %127 = tpu.matmul %120, %4, %cst_69 {dimension_numbers = #tpu.dot_dimension_numbers<[1], [0], [0], [1], [0, 0, 1, 1], [], []>} : vector<8x128xf32>, vector<128x512xf32>, vector<8x512xf32> -> vector<8x512xf32>
    %128 = arith.addf %126, %127 : vector<8x512xf32>
    %129 = vector.extract_strided_slice %128 {offsets = [0, 0], sizes = [8, 128], strides = [1, 1]} : vector<8x512xf32> to vector<8x128xf32>
    %cst_70 = arith.constant 5.000000e-01 : f32
    %130 = vector.broadcast %cst_70 : f32 to vector<8x128xf32>
    %131 = arith.mulf %130, %129 : vector<8x128xf32>
    %132 = math.tanh %131 : vector<8x128xf32>
    %cst_71 = arith.constant 5.000000e-01 : f32
    %133 = vector.broadcast %cst_71 : f32 to vector<8x128xf32>
    %134 = arith.mulf %133, %132 : vector<8x128xf32>
    %cst_72 = arith.constant 5.000000e-01 : f32
    %135 = vector.broadcast %cst_72 : f32 to vector<8x128xf32>
    %136 = arith.addf %134, %135 : vector<8x128xf32>
    %137 = vector.extract_strided_slice %128 {offsets = [0, 128], sizes = [8, 128], strides = [1, 1]} : vector<8x512xf32> to vector<8x128xf32>
    %cst_73 = arith.constant 5.000000e-01 : f32
    %138 = vector.broadcast %cst_73 : f32 to vector<8x128xf32>
    %139 = arith.mulf %138, %137 : vector<8x128xf32>
    %140 = math.tanh %139 : vector<8x128xf32>
    %cst_74 = arith.constant 5.000000e-01 : f32
    %141 = vector.broadcast %cst_74 : f32 to vector<8x128xf32>
    %142 = arith.mulf %141, %140 : vector<8x128xf32>
    %cst_75 = arith.constant 5.000000e-01 : f32
    %143 = vector.broadcast %cst_75 : f32 to vector<8x128xf32>
    %144 = arith.addf %142, %143 : vector<8x128xf32>
    %145 = vector.extract_strided_slice %128 {offsets = [0, 256], sizes = [8, 128], strides = [1, 1]} : vector<8x512xf32> to vector<8x128xf32>
    %146 = math.tanh %145 : vector<8x128xf32>
    %147 = vector.extract_strided_slice %128 {offsets = [0, 384], sizes = [8, 128], strides = [1, 1]} : vector<8x512xf32> to vector<8x128xf32>
    %cst_76 = arith.constant 5.000000e-01 : f32
    %148 = vector.broadcast %cst_76 : f32 to vector<8x128xf32>
    %149 = arith.mulf %148, %147 : vector<8x128xf32>
    %150 = math.tanh %149 : vector<8x128xf32>
    %cst_77 = arith.constant 5.000000e-01 : f32
    %151 = vector.broadcast %cst_77 : f32 to vector<8x128xf32>
    %152 = arith.mulf %151, %150 : vector<8x128xf32>
    %cst_78 = arith.constant 5.000000e-01 : f32
    %153 = vector.broadcast %cst_78 : f32 to vector<8x128xf32>
    %154 = arith.addf %152, %153 : vector<8x128xf32>
    %155 = arith.mulf %144, %123 : vector<8x128xf32>
    %156 = arith.mulf %136, %146 : vector<8x128xf32>
    %157 = arith.addf %155, %156 : vector<8x128xf32>
    %158 = math.tanh %157 : vector<8x128xf32>
    %159 = arith.mulf %154, %158 : vector<8x128xf32>
    %c0_79 = arith.constant 0 : index
    %c0_80 = arith.constant 0 : index
    %160 = vector.load %arg13[%c0_79, %c0_80] : memref<8x128xf32, #tpu.memory_space<vmem>>, vector<8x128xf32>
    tpu.vector_store %arg13[%c0_79, %c0_80], %159 {strides = array<i32>} : memref<8x128xf32, #tpu.memory_space<vmem>>, vector<8x128xf32>,
    %c0_81 = arith.constant 0 : index
    %c0_82 = arith.constant 0 : index
    %161 = vector.load %arg14[%c0_81, %c0_82] : memref<8x128xf32, #tpu.memory_space<vmem>>, vector<8x128xf32>
    tpu.vector_store %arg14[%c0_81, %c0_82], %157 {strides = array<i32>} : memref<8x128xf32, #tpu.memory_space<vmem>>, vector<8x128xf32>,
    %162 = arith.index_cast %c2_i32 : i32 to index
    %c0_83 = arith.constant 0 : index
    %c0_84 = arith.constant 0 : index
    %163 = vector.load %arg9[%162, %c0_83, %c0_84] : memref<8x8x128xf32, #tpu.memory_space<vmem>>, vector<1x8x128xf32>
    %164 = vector.shape_cast %163 : vector<1x8x128xf32> to vector<8x128xf32>
    %165 = vector.shape_cast %159 : vector<8x128xf32> to vector<1x8x128xf32>
    tpu.vector_store %arg9[%162, %c0_83, %c0_84], %165 {strides = array<i32>} : memref<8x8x128xf32, #tpu.memory_space<vmem>>, vector<1x8x128xf32>,
    %c3_i32 = arith.constant 3 : i32
    %166 = arith.index_cast %c3_i32 : i32 to index
    %c0_85 = arith.constant 0 : index
    %c0_86 = arith.constant 0 : index
    %167 = vector.load %arg3[%166, %c0_85, %c0_86] : memref<8x8x1xf32, #tpu.memory_space<vmem>>, vector<1x8x1xf32>
    %168 = vector.shape_cast %167 : vector<1x8x1xf32> to vector<8x1xf32>
    %c0_87 = arith.constant 0 : index
    %c0_88 = arith.constant 0 : index
    %169 = vector.load %arg13[%c0_87, %c0_88] : memref<8x128xf32, #tpu.memory_space<vmem>>, vector<8x128xf32>
    %170 = vector.broadcast %168 : vector<8x1xf32> to vector<8x128xf32>
    %171 = arith.mulf %169, %170 : vector<8x128xf32>
    %c0_89 = arith.constant 0 : index
    %c0_90 = arith.constant 0 : index
    %172 = vector.load %arg14[%c0_89, %c0_90] : memref<8x128xf32, #tpu.memory_space<vmem>>, vector<8x128xf32>
    %173 = vector.broadcast %168 : vector<8x1xf32> to vector<8x128xf32>
    %174 = arith.mulf %172, %173 : vector<8x128xf32>
    %175 = arith.index_cast %c3_i32 : i32 to index
    %c0_91 = arith.constant 0 : index
    %c0_92 = arith.constant 0 : index
    %176 = vector.load %arg12[%175, %c0_91, %c0_92] : memref<8x8x512xf32, #tpu.memory_space<vmem>>, vector<1x8x512xf32>
    %177 = vector.shape_cast %176 : vector<1x8x512xf32> to vector<8x512xf32>
    %cst_93 = arith.constant dense<0.000000e+00> : vector<8x512xf32>
    %178 = tpu.matmul %171, %4, %cst_93 {dimension_numbers = #tpu.dot_dimension_numbers<[1], [0], [0], [1], [0, 0, 1, 1], [], []>} : vector<8x128xf32>, vector<128x512xf32>, vector<8x512xf32> -> vector<8x512xf32>
    %179 = arith.addf %177, %178 : vector<8x512xf32>
    %180 = vector.extract_strided_slice %179 {offsets = [0, 0], sizes = [8, 128], strides = [1, 1]} : vector<8x512xf32> to vector<8x128xf32>
    %cst_94 = arith.constant 5.000000e-01 : f32
    %181 = vector.broadcast %cst_94 : f32 to vector<8x128xf32>
    %182 = arith.mulf %181, %180 : vector<8x128xf32>
    %183 = math.tanh %182 : vector<8x128xf32>
    %cst_95 = arith.constant 5.000000e-01 : f32
    %184 = vector.broadcast %cst_95 : f32 to vector<8x128xf32>
    %185 = arith.mulf %184, %183 : vector<8x128xf32>
    %cst_96 = arith.constant 5.000000e-01 : f32
    %186 = vector.broadcast %cst_96 : f32 to vector<8x128xf32>
    %187 = arith.addf %185, %186 : vector<8x128xf32>
    %188 = vector.extract_strided_slice %179 {offsets = [0, 128], sizes = [8, 128], strides = [1, 1]} : vector<8x512xf32> to vector<8x128xf32>
    %cst_97 = arith.constant 5.000000e-01 : f32
    %189 = vector.broadcast %cst_97 : f32 to vector<8x128xf32>
    %190 = arith.mulf %189, %188 : vector<8x128xf32>
    %191 = math.tanh %190 : vector<8x128xf32>
    %cst_98 = arith.constant 5.000000e-01 : f32
    %192 = vector.broadcast %cst_98 : f32 to vector<8x128xf32>
    %193 = arith.mulf %192, %191 : vector<8x128xf32>
    %cst_99 = arith.constant 5.000000e-01 : f32
    %194 = vector.broadcast %cst_99 : f32 to vector<8x128xf32>
    %195 = arith.addf %193, %194 : vector<8x128xf32>
    %196 = vector.extract_strided_slice %179 {offsets = [0, 256], sizes = [8, 128], strides = [1, 1]} : vector<8x512xf32> to vector<8x128xf32>
    %197 = math.tanh %196 : vector<8x128xf32>
    %198 = vector.extract_strided_slice %179 {offsets = [0, 384], sizes = [8, 128], strides = [1, 1]} : vector<8x512xf32> to vector<8x128xf32>
    %cst_100 = arith.constant 5.000000e-01 : f32
    %199 = vector.broadcast %cst_100 : f32 to vector<8x128xf32>
    %200 = arith.mulf %199, %198 : vector<8x128xf32>
    %201 = math.tanh %200 : vector<8x128xf32>
    %cst_101 = arith.constant 5.000000e-01 : f32
    %202 = vector.broadcast %cst_101 : f32 to vector<8x128xf32>
    %203 = arith.mulf %202, %201 : vector<8x128xf32>
    %cst_102 = arith.constant 5.000000e-01 : f32
    %204 = vector.broadcast %cst_102 : f32 to vector<8x128xf32>
    %205 = arith.addf %203, %204 : vector<8x128xf32>
    %206 = arith.mulf %195, %174 : vector<8x128xf32>
    %207 = arith.mulf %187, %197 : vector<8x128xf32>
    %208 = arith.addf %206, %207 : vector<8x128xf32>
    %209 = math.tanh %208 : vector<8x128xf32>
    %210 = arith.mulf %205, %209 : vector<8x128xf32>
    %c0_103 = arith.constant 0 : index
    %c0_104 = arith.constant 0 : index
    %211 = vector.load %arg13[%c0_103, %c0_104] : memref<8x128xf32, #tpu.memory_space<vmem>>, vector<8x128xf32>
    tpu.vector_store %arg13[%c0_103, %c0_104], %210 {strides = array<i32>} : memref<8x128xf32, #tpu.memory_space<vmem>>, vector<8x128xf32>,
    %c0_105 = arith.constant 0 : index
    %c0_106 = arith.constant 0 : index
    %212 = vector.load %arg14[%c0_105, %c0_106] : memref<8x128xf32, #tpu.memory_space<vmem>>, vector<8x128xf32>
    tpu.vector_store %arg14[%c0_105, %c0_106], %208 {strides = array<i32>} : memref<8x128xf32, #tpu.memory_space<vmem>>, vector<8x128xf32>,
    %213 = arith.index_cast %c3_i32 : i32 to index
    %c0_107 = arith.constant 0 : index
    %c0_108 = arith.constant 0 : index
    %214 = vector.load %arg9[%213, %c0_107, %c0_108] : memref<8x8x128xf32, #tpu.memory_space<vmem>>, vector<1x8x128xf32>
    %215 = vector.shape_cast %214 : vector<1x8x128xf32> to vector<8x128xf32>
    %216 = vector.shape_cast %210 : vector<8x128xf32> to vector<1x8x128xf32>
    tpu.vector_store %arg9[%213, %c0_107, %c0_108], %216 {strides = array<i32>} : memref<8x8x128xf32, #tpu.memory_space<vmem>>, vector<1x8x128xf32>,
    %c4_i32 = arith.constant 4 : i32
    %217 = arith.index_cast %c4_i32 : i32 to index
    %c0_109 = arith.constant 0 : index
    %c0_110 = arith.constant 0 : index
    %218 = vector.load %arg3[%217, %c0_109, %c0_110] : memref<8x8x1xf32, #tpu.memory_space<vmem>>, vector<1x8x1xf32>
    %219 = vector.shape_cast %218 : vector<1x8x1xf32> to vector<8x1xf32>
    %c0_111 = arith.constant 0 : index
    %c0_112 = arith.constant 0 : index
    %220 = vector.load %arg13[%c0_111, %c0_112] : memref<8x128xf32, #tpu.memory_space<vmem>>, vector<8x128xf32>
    %221 = vector.broadcast %219 : vector<8x1xf32> to vector<8x128xf32>
    %222 = arith.mulf %220, %221 : vector<8x128xf32>
    %c0_113 = arith.constant 0 : index
    %c0_114 = arith.constant 0 : index
    %223 = vector.load %arg14[%c0_113, %c0_114] : memref<8x128xf32, #tpu.memory_space<vmem>>, vector<8x128xf32>
    %224 = vector.broadcast %219 : vector<8x1xf32> to vector<8x128xf32>
    %225 = arith.mulf %223, %224 : vector<8x128xf32>
    %226 = arith.index_cast %c4_i32 : i32 to index
    %c0_115 = arith.constant 0 : index
    %c0_116 = arith.constant 0 : index
    %227 = vector.load %arg12[%226, %c0_115, %c0_116] : memref<8x8x512xf32, #tpu.memory_space<vmem>>, vector<1x8x512xf32>
    %228 = vector.shape_cast %227 : vector<1x8x512xf32> to vector<8x512xf32>
    %cst_117 = arith.constant dense<0.000000e+00> : vector<8x512xf32>
    %229 = tpu.matmul %222, %4, %cst_117 {dimension_numbers = #tpu.dot_dimension_numbers<[1], [0], [0], [1], [0, 0, 1, 1], [], []>} : vector<8x128xf32>, vector<128x512xf32>, vector<8x512xf32> -> vector<8x512xf32>
    %230 = arith.addf %228, %229 : vector<8x512xf32>
    %231 = vector.extract_strided_slice %230 {offsets = [0, 0], sizes = [8, 128], strides = [1, 1]} : vector<8x512xf32> to vector<8x128xf32>
    %cst_118 = arith.constant 5.000000e-01 : f32
    %232 = vector.broadcast %cst_118 : f32 to vector<8x128xf32>
    %233 = arith.mulf %232, %231 : vector<8x128xf32>
    %234 = math.tanh %233 : vector<8x128xf32>
    %cst_119 = arith.constant 5.000000e-01 : f32
    %235 = vector.broadcast %cst_119 : f32 to vector<8x128xf32>
    %236 = arith.mulf %235, %234 : vector<8x128xf32>
    %cst_120 = arith.constant 5.000000e-01 : f32
    %237 = vector.broadcast %cst_120 : f32 to vector<8x128xf32>
    %238 = arith.addf %236, %237 : vector<8x128xf32>
    %239 = vector.extract_strided_slice %230 {offsets = [0, 128], sizes = [8, 128], strides = [1, 1]} : vector<8x512xf32> to vector<8x128xf32>
    %cst_121 = arith.constant 5.000000e-01 : f32
    %240 = vector.broadcast %cst_121 : f32 to vector<8x128xf32>
    %241 = arith.mulf %240, %239 : vector<8x128xf32>
    %242 = math.tanh %241 : vector<8x128xf32>
    %cst_122 = arith.constant 5.000000e-01 : f32
    %243 = vector.broadcast %cst_122 : f32 to vector<8x128xf32>
    %244 = arith.mulf %243, %242 : vector<8x128xf32>
    %cst_123 = arith.constant 5.000000e-01 : f32
    %245 = vector.broadcast %cst_123 : f32 to vector<8x128xf32>
    %246 = arith.addf %244, %245 : vector<8x128xf32>
    %247 = vector.extract_strided_slice %230 {offsets = [0, 256], sizes = [8, 128], strides = [1, 1]} : vector<8x512xf32> to vector<8x128xf32>
    %248 = math.tanh %247 : vector<8x128xf32>
    %249 = vector.extract_strided_slice %230 {offsets = [0, 384], sizes = [8, 128], strides = [1, 1]} : vector<8x512xf32> to vector<8x128xf32>
    %cst_124 = arith.constant 5.000000e-01 : f32
    %250 = vector.broadcast %cst_124 : f32 to vector<8x128xf32>
    %251 = arith.mulf %250, %249 : vector<8x128xf32>
    %252 = math.tanh %251 : vector<8x128xf32>
    %cst_125 = arith.constant 5.000000e-01 : f32
    %253 = vector.broadcast %cst_125 : f32 to vector<8x128xf32>
    %254 = arith.mulf %253, %252 : vector<8x128xf32>
    %cst_126 = arith.constant 5.000000e-01 : f32
    %255 = vector.broadcast %cst_126 : f32 to vector<8x128xf32>
    %256 = arith.addf %254, %255 : vector<8x128xf32>
    %257 = arith.mulf %246, %225 : vector<8x128xf32>
    %258 = arith.mulf %238, %248 : vector<8x128xf32>
    %259 = arith.addf %257, %258 : vector<8x128xf32>
    %260 = math.tanh %259 : vector<8x128xf32>
    %261 = arith.mulf %256, %260 : vector<8x128xf32>
    %c0_127 = arith.constant 0 : index
    %c0_128 = arith.constant 0 : index
    %262 = vector.load %arg13[%c0_127, %c0_128] : memref<8x128xf32, #tpu.memory_space<vmem>>, vector<8x128xf32>
    tpu.vector_store %arg13[%c0_127, %c0_128], %261 {strides = array<i32>} : memref<8x128xf32, #tpu.memory_space<vmem>>, vector<8x128xf32>,
    %c0_129 = arith.constant 0 : index
    %c0_130 = arith.constant 0 : index
    %263 = vector.load %arg14[%c0_129, %c0_130] : memref<8x128xf32, #tpu.memory_space<vmem>>, vector<8x128xf32>
    tpu.vector_store %arg14[%c0_129, %c0_130], %259 {strides = array<i32>} : memref<8x128xf32, #tpu.memory_space<vmem>>, vector<8x128xf32>,
    %264 = arith.index_cast %c4_i32 : i32 to index
    %c0_131 = arith.constant 0 : index
    %c0_132 = arith.constant 0 : index
    %265 = vector.load %arg9[%264, %c0_131, %c0_132] : memref<8x8x128xf32, #tpu.memory_space<vmem>>, vector<1x8x128xf32>
    %266 = vector.shape_cast %265 : vector<1x8x128xf32> to vector<8x128xf32>
    %267 = vector.shape_cast %261 : vector<8x128xf32> to vector<1x8x128xf32>
    tpu.vector_store %arg9[%264, %c0_131, %c0_132], %267 {strides = array<i32>} : memref<8x8x128xf32, #tpu.memory_space<vmem>>, vector<1x8x128xf32>,
    %c5_i32 = arith.constant 5 : i32
    %268 = arith.index_cast %c5_i32 : i32 to index
    %c0_133 = arith.constant 0 : index
    %c0_134 = arith.constant 0 : index
    %269 = vector.load %arg3[%268, %c0_133, %c0_134] : memref<8x8x1xf32, #tpu.memory_space<vmem>>, vector<1x8x1xf32>
    %270 = vector.shape_cast %269 : vector<1x8x1xf32> to vector<8x1xf32>
    %c0_135 = arith.constant 0 : index
    %c0_136 = arith.constant 0 : index
    %271 = vector.load %arg13[%c0_135, %c0_136] : memref<8x128xf32, #tpu.memory_space<vmem>>, vector<8x128xf32>
    %272 = vector.broadcast %270 : vector<8x1xf32> to vector<8x128xf32>
    %273 = arith.mulf %271, %272 : vector<8x128xf32>
    %c0_137 = arith.constant 0 : index
    %c0_138 = arith.constant 0 : index
    %274 = vector.load %arg14[%c0_137, %c0_138] : memref<8x128xf32, #tpu.memory_space<vmem>>, vector<8x128xf32>
    %275 = vector.broadcast %270 : vector<8x1xf32> to vector<8x128xf32>
    %276 = arith.mulf %274, %275 : vector<8x128xf32>
    %277 = arith.index_cast %c5_i32 : i32 to index
    %c0_139 = arith.constant 0 : index
    %c0_140 = arith.constant 0 : index
    %278 = vector.load %arg12[%277, %c0_139, %c0_140] : memref<8x8x512xf32, #tpu.memory_space<vmem>>, vector<1x8x512xf32>
    %279 = vector.shape_cast %278 : vector<1x8x512xf32> to vector<8x512xf32>
    %cst_141 = arith.constant dense<0.000000e+00> : vector<8x512xf32>
    %280 = tpu.matmul %273, %4, %cst_141 {dimension_numbers = #tpu.dot_dimension_numbers<[1], [0], [0], [1], [0, 0, 1, 1], [], []>} : vector<8x128xf32>, vector<128x512xf32>, vector<8x512xf32> -> vector<8x512xf32>
    %281 = arith.addf %279, %280 : vector<8x512xf32>
    %282 = vector.extract_strided_slice %281 {offsets = [0, 0], sizes = [8, 128], strides = [1, 1]} : vector<8x512xf32> to vector<8x128xf32>
    %cst_142 = arith.constant 5.000000e-01 : f32
    %283 = vector.broadcast %cst_142 : f32 to vector<8x128xf32>
    %284 = arith.mulf %283, %282 : vector<8x128xf32>
    %285 = math.tanh %284 : vector<8x128xf32>
    %cst_143 = arith.constant 5.000000e-01 : f32
    %286 = vector.broadcast %cst_143 : f32 to vector<8x128xf32>
    %287 = arith.mulf %286, %285 : vector<8x128xf32>
    %cst_144 = arith.constant 5.000000e-01 : f32
    %288 = vector.broadcast %cst_144 : f32 to vector<8x128xf32>
    %289 = arith.addf %287, %288 : vector<8x128xf32>
    %290 = vector.extract_strided_slice %281 {offsets = [0, 128], sizes = [8, 128], strides = [1, 1]} : vector<8x512xf32> to vector<8x128xf32>
    %cst_145 = arith.constant 5.000000e-01 : f32
    %291 = vector.broadcast %cst_145 : f32 to vector<8x128xf32>
    %292 = arith.mulf %291, %290 : vector<8x128xf32>
    %293 = math.tanh %292 : vector<8x128xf32>
    %cst_146 = arith.constant 5.000000e-01 : f32
    %294 = vector.broadcast %cst_146 : f32 to vector<8x128xf32>
    %295 = arith.mulf %294, %293 : vector<8x128xf32>
    %cst_147 = arith.constant 5.000000e-01 : f32
    %296 = vector.broadcast %cst_147 : f32 to vector<8x128xf32>
    %297 = arith.addf %295, %296 : vector<8x128xf32>
    %298 = vector.extract_strided_slice %281 {offsets = [0, 256], sizes = [8, 128], strides = [1, 1]} : vector<8x512xf32> to vector<8x128xf32>
    %299 = math.tanh %298 : vector<8x128xf32>
    %300 = vector.extract_strided_slice %281 {offsets = [0, 384], sizes = [8, 128], strides = [1, 1]} : vector<8x512xf32> to vector<8x128xf32>
    %cst_148 = arith.constant 5.000000e-01 : f32
    %301 = vector.broadcast %cst_148 : f32 to vector<8x128xf32>
    %302 = arith.mulf %301, %300 : vector<8x128xf32>
    %303 = math.tanh %302 : vector<8x128xf32>
    %cst_149 = arith.constant 5.000000e-01 : f32
    %304 = vector.broadcast %cst_149 : f32 to vector<8x128xf32>
    %305 = arith.mulf %304, %303 : vector<8x128xf32>
    %cst_150 = arith.constant 5.000000e-01 : f32
    %306 = vector.broadcast %cst_150 : f32 to vector<8x128xf32>
    %307 = arith.addf %305, %306 : vector<8x128xf32>
    %308 = arith.mulf %297, %276 : vector<8x128xf32>
    %309 = arith.mulf %289, %299 : vector<8x128xf32>
    %310 = arith.addf %308, %309 : vector<8x128xf32>
    %311 = math.tanh %310 : vector<8x128xf32>
    %312 = arith.mulf %307, %311 : vector<8x128xf32>
    %c0_151 = arith.constant 0 : index
    %c0_152 = arith.constant 0 : index
    %313 = vector.load %arg13[%c0_151, %c0_152] : memref<8x128xf32, #tpu.memory_space<vmem>>, vector<8x128xf32>
    tpu.vector_store %arg13[%c0_151, %c0_152], %312 {strides = array<i32>} : memref<8x128xf32, #tpu.memory_space<vmem>>, vector<8x128xf32>,
    %c0_153 = arith.constant 0 : index
    %c0_154 = arith.constant 0 : index
    %314 = vector.load %arg14[%c0_153, %c0_154] : memref<8x128xf32, #tpu.memory_space<vmem>>, vector<8x128xf32>
    tpu.vector_store %arg14[%c0_153, %c0_154], %310 {strides = array<i32>} : memref<8x128xf32, #tpu.memory_space<vmem>>, vector<8x128xf32>,
    %315 = arith.index_cast %c5_i32 : i32 to index
    %c0_155 = arith.constant 0 : index
    %c0_156 = arith.constant 0 : index
    %316 = vector.load %arg9[%315, %c0_155, %c0_156] : memref<8x8x128xf32, #tpu.memory_space<vmem>>, vector<1x8x128xf32>
    %317 = vector.shape_cast %316 : vector<1x8x128xf32> to vector<8x128xf32>
    %318 = vector.shape_cast %312 : vector<8x128xf32> to vector<1x8x128xf32>
    tpu.vector_store %arg9[%315, %c0_155, %c0_156], %318 {strides = array<i32>} : memref<8x8x128xf32, #tpu.memory_space<vmem>>, vector<1x8x128xf32>,
    %c6_i32 = arith.constant 6 : i32
    %319 = arith.index_cast %c6_i32 : i32 to index
    %c0_157 = arith.constant 0 : index
    %c0_158 = arith.constant 0 : index
    %320 = vector.load %arg3[%319, %c0_157, %c0_158] : memref<8x8x1xf32, #tpu.memory_space<vmem>>, vector<1x8x1xf32>
    %321 = vector.shape_cast %320 : vector<1x8x1xf32> to vector<8x1xf32>
    %c0_159 = arith.constant 0 : index
    %c0_160 = arith.constant 0 : index
    %322 = vector.load %arg13[%c0_159, %c0_160] : memref<8x128xf32, #tpu.memory_space<vmem>>, vector<8x128xf32>
    %323 = vector.broadcast %321 : vector<8x1xf32> to vector<8x128xf32>
    %324 = arith.mulf %322, %323 : vector<8x128xf32>
    %c0_161 = arith.constant 0 : index
    %c0_162 = arith.constant 0 : index
    %325 = vector.load %arg14[%c0_161, %c0_162] : memref<8x128xf32, #tpu.memory_space<vmem>>, vector<8x128xf32>
    %326 = vector.broadcast %321 : vector<8x1xf32> to vector<8x128xf32>
    %327 = arith.mulf %325, %326 : vector<8x128xf32>
    %328 = arith.index_cast %c6_i32 : i32 to index
    %c0_163 = arith.constant 0 : index
    %c0_164 = arith.constant 0 : index
    %329 = vector.load %arg12[%328, %c0_163, %c0_164] : memref<8x8x512xf32, #tpu.memory_space<vmem>>, vector<1x8x512xf32>
    %330 = vector.shape_cast %329 : vector<1x8x512xf32> to vector<8x512xf32>
    %cst_165 = arith.constant dense<0.000000e+00> : vector<8x512xf32>
    %331 = tpu.matmul %324, %4, %cst_165 {dimension_numbers = #tpu.dot_dimension_numbers<[1], [0], [0], [1], [0, 0, 1, 1], [], []>} : vector<8x128xf32>, vector<128x512xf32>, vector<8x512xf32> -> vector<8x512xf32>
    %332 = arith.addf %330, %331 : vector<8x512xf32>
    %333 = vector.extract_strided_slice %332 {offsets = [0, 0], sizes = [8, 128], strides = [1, 1]} : vector<8x512xf32> to vector<8x128xf32>
    %cst_166 = arith.constant 5.000000e-01 : f32
    %334 = vector.broadcast %cst_166 : f32 to vector<8x128xf32>
    %335 = arith.mulf %334, %333 : vector<8x128xf32>
    %336 = math.tanh %335 : vector<8x128xf32>
    %cst_167 = arith.constant 5.000000e-01 : f32
    %337 = vector.broadcast %cst_167 : f32 to vector<8x128xf32>
    %338 = arith.mulf %337, %336 : vector<8x128xf32>
    %cst_168 = arith.constant 5.000000e-01 : f32
    %339 = vector.broadcast %cst_168 : f32 to vector<8x128xf32>
    %340 = arith.addf %338, %339 : vector<8x128xf32>
    %341 = vector.extract_strided_slice %332 {offsets = [0, 128], sizes = [8, 128], strides = [1, 1]} : vector<8x512xf32> to vector<8x128xf32>
    %cst_169 = arith.constant 5.000000e-01 : f32
    %342 = vector.broadcast %cst_169 : f32 to vector<8x128xf32>
    %343 = arith.mulf %342, %341 : vector<8x128xf32>
    %344 = math.tanh %343 : vector<8x128xf32>
    %cst_170 = arith.constant 5.000000e-01 : f32
    %345 = vector.broadcast %cst_170 : f32 to vector<8x128xf32>
    %346 = arith.mulf %345, %344 : vector<8x128xf32>
    %cst_171 = arith.constant 5.000000e-01 : f32
    %347 = vector.broadcast %cst_171 : f32 to vector<8x128xf32>
    %348 = arith.addf %346, %347 : vector<8x128xf32>
    %349 = vector.extract_strided_slice %332 {offsets = [0, 256], sizes = [8, 128], strides = [1, 1]} : vector<8x512xf32> to vector<8x128xf32>
    %350 = math.tanh %349 : vector<8x128xf32>
    %351 = vector.extract_strided_slice %332 {offsets = [0, 384], sizes = [8, 128], strides = [1, 1]} : vector<8x512xf32> to vector<8x128xf32>
    %cst_172 = arith.constant 5.000000e-01 : f32
    %352 = vector.broadcast %cst_172 : f32 to vector<8x128xf32>
    %353 = arith.mulf %352, %351 : vector<8x128xf32>
    %354 = math.tanh %353 : vector<8x128xf32>
    %cst_173 = arith.constant 5.000000e-01 : f32
    %355 = vector.broadcast %cst_173 : f32 to vector<8x128xf32>
    %356 = arith.mulf %355, %354 : vector<8x128xf32>
    %cst_174 = arith.constant 5.000000e-01 : f32
    %357 = vector.broadcast %cst_174 : f32 to vector<8x128xf32>
    %358 = arith.addf %356, %357 : vector<8x128xf32>
    %359 = arith.mulf %348, %327 : vector<8x128xf32>
    %360 = arith.mulf %340, %350 : vector<8x128xf32>
    %361 = arith.addf %359, %360 : vector<8x128xf32>
    %362 = math.tanh %361 : vector<8x128xf32>
    %363 = arith.mulf %358, %362 : vector<8x128xf32>
    %c0_175 = arith.constant 0 : index
    %c0_176 = arith.constant 0 : index
    %364 = vector.load %arg13[%c0_175, %c0_176] : memref<8x128xf32, #tpu.memory_space<vmem>>, vector<8x128xf32>
    tpu.vector_store %arg13[%c0_175, %c0_176], %363 {strides = array<i32>} : memref<8x128xf32, #tpu.memory_space<vmem>>, vector<8x128xf32>,
    %c0_177 = arith.constant 0 : index
    %c0_178 = arith.constant 0 : index
    %365 = vector.load %arg14[%c0_177, %c0_178] : memref<8x128xf32, #tpu.memory_space<vmem>>, vector<8x128xf32>
    tpu.vector_store %arg14[%c0_177, %c0_178], %361 {strides = array<i32>} : memref<8x128xf32, #tpu.memory_space<vmem>>, vector<8x128xf32>,
    %366 = arith.index_cast %c6_i32 : i32 to index
    %c0_179 = arith.constant 0 : index
    %c0_180 = arith.constant 0 : index
    %367 = vector.load %arg9[%366, %c0_179, %c0_180] : memref<8x8x128xf32, #tpu.memory_space<vmem>>, vector<1x8x128xf32>
    %368 = vector.shape_cast %367 : vector<1x8x128xf32> to vector<8x128xf32>
    %369 = vector.shape_cast %363 : vector<8x128xf32> to vector<1x8x128xf32>
    tpu.vector_store %arg9[%366, %c0_179, %c0_180], %369 {strides = array<i32>} : memref<8x8x128xf32, #tpu.memory_space<vmem>>, vector<1x8x128xf32>,
    %c7_i32 = arith.constant 7 : i32
    %370 = arith.index_cast %c7_i32 : i32 to index
    %c0_181 = arith.constant 0 : index
    %c0_182 = arith.constant 0 : index
    %371 = vector.load %arg3[%370, %c0_181, %c0_182] : memref<8x8x1xf32, #tpu.memory_space<vmem>>, vector<1x8x1xf32>
    %372 = vector.shape_cast %371 : vector<1x8x1xf32> to vector<8x1xf32>
    %c0_183 = arith.constant 0 : index
    %c0_184 = arith.constant 0 : index
    %373 = vector.load %arg13[%c0_183, %c0_184] : memref<8x128xf32, #tpu.memory_space<vmem>>, vector<8x128xf32>
    %374 = vector.broadcast %372 : vector<8x1xf32> to vector<8x128xf32>
    %375 = arith.mulf %373, %374 : vector<8x128xf32>
    %c0_185 = arith.constant 0 : index
    %c0_186 = arith.constant 0 : index
    %376 = vector.load %arg14[%c0_185, %c0_186] : memref<8x128xf32, #tpu.memory_space<vmem>>, vector<8x128xf32>
    %377 = vector.broadcast %372 : vector<8x1xf32> to vector<8x128xf32>
    %378 = arith.mulf %376, %377 : vector<8x128xf32>
    %379 = arith.index_cast %c7_i32 : i32 to index
    %c0_187 = arith.constant 0 : index
    %c0_188 = arith.constant 0 : index
    %380 = vector.load %arg12[%379, %c0_187, %c0_188] : memref<8x8x512xf32, #tpu.memory_space<vmem>>, vector<1x8x512xf32>
    %381 = vector.shape_cast %380 : vector<1x8x512xf32> to vector<8x512xf32>
    %cst_189 = arith.constant dense<0.000000e+00> : vector<8x512xf32>
    %382 = tpu.matmul %375, %4, %cst_189 {dimension_numbers = #tpu.dot_dimension_numbers<[1], [0], [0], [1], [0, 0, 1, 1], [], []>} : vector<8x128xf32>, vector<128x512xf32>, vector<8x512xf32> -> vector<8x512xf32>
    %383 = arith.addf %381, %382 : vector<8x512xf32>
    %384 = vector.extract_strided_slice %383 {offsets = [0, 0], sizes = [8, 128], strides = [1, 1]} : vector<8x512xf32> to vector<8x128xf32>
    %cst_190 = arith.constant 5.000000e-01 : f32
    %385 = vector.broadcast %cst_190 : f32 to vector<8x128xf32>
    %386 = arith.mulf %385, %384 : vector<8x128xf32>
    %387 = math.tanh %386 : vector<8x128xf32>
    %cst_191 = arith.constant 5.000000e-01 : f32
    %388 = vector.broadcast %cst_191 : f32 to vector<8x128xf32>
    %389 = arith.mulf %388, %387 : vector<8x128xf32>
    %cst_192 = arith.constant 5.000000e-01 : f32
    %390 = vector.broadcast %cst_192 : f32 to vector<8x128xf32>
    %391 = arith.addf %389, %390 : vector<8x128xf32>
    %392 = vector.extract_strided_slice %383 {offsets = [0, 128], sizes = [8, 128], strides = [1, 1]} : vector<8x512xf32> to vector<8x128xf32>
    %cst_193 = arith.constant 5.000000e-01 : f32
    %393 = vector.broadcast %cst_193 : f32 to vector<8x128xf32>
    %394 = arith.mulf %393, %392 : vector<8x128xf32>
    %395 = math.tanh %394 : vector<8x128xf32>
    %cst_194 = arith.constant 5.000000e-01 : f32
    %396 = vector.broadcast %cst_194 : f32 to vector<8x128xf32>
    %397 = arith.mulf %396, %395 : vector<8x128xf32>
    %cst_195 = arith.constant 5.000000e-01 : f32
    %398 = vector.broadcast %cst_195 : f32 to vector<8x128xf32>
    %399 = arith.addf %397, %398 : vector<8x128xf32>
    %400 = vector.extract_strided_slice %383 {offsets = [0, 256], sizes = [8, 128], strides = [1, 1]} : vector<8x512xf32> to vector<8x128xf32>
    %401 = math.tanh %400 : vector<8x128xf32>
    %402 = vector.extract_strided_slice %383 {offsets = [0, 384], sizes = [8, 128], strides = [1, 1]} : vector<8x512xf32> to vector<8x128xf32>
    %cst_196 = arith.constant 5.000000e-01 : f32
    %403 = vector.broadcast %cst_196 : f32 to vector<8x128xf32>
    %404 = arith.mulf %403, %402 : vector<8x128xf32>
    %405 = math.tanh %404 : vector<8x128xf32>
    %cst_197 = arith.constant 5.000000e-01 : f32
    %406 = vector.broadcast %cst_197 : f32 to vector<8x128xf32>
    %407 = arith.mulf %406, %405 : vector<8x128xf32>
    %cst_198 = arith.constant 5.000000e-01 : f32
    %408 = vector.broadcast %cst_198 : f32 to vector<8x128xf32>
    %409 = arith.addf %407, %408 : vector<8x128xf32>
    %410 = arith.mulf %399, %378 : vector<8x128xf32>
    %411 = arith.mulf %391, %401 : vector<8x128xf32>
    %412 = arith.addf %410, %411 : vector<8x128xf32>
    %413 = math.tanh %412 : vector<8x128xf32>
    %414 = arith.mulf %409, %413 : vector<8x128xf32>
    %c0_199 = arith.constant 0 : index
    %c0_200 = arith.constant 0 : index
    %415 = vector.load %arg13[%c0_199, %c0_200] : memref<8x128xf32, #tpu.memory_space<vmem>>, vector<8x128xf32>
    tpu.vector_store %arg13[%c0_199, %c0_200], %414 {strides = array<i32>} : memref<8x128xf32, #tpu.memory_space<vmem>>, vector<8x128xf32>,
    %c0_201 = arith.constant 0 : index
    %c0_202 = arith.constant 0 : index
    %416 = vector.load %arg14[%c0_201, %c0_202] : memref<8x128xf32, #tpu.memory_space<vmem>>, vector<8x128xf32>
    tpu.vector_store %arg14[%c0_201, %c0_202], %412 {strides = array<i32>} : memref<8x128xf32, #tpu.memory_space<vmem>>, vector<8x128xf32>,
    %417 = arith.index_cast %c7_i32 : i32 to index
    %c0_203 = arith.constant 0 : index
    %c0_204 = arith.constant 0 : index
    %418 = vector.load %arg9[%417, %c0_203, %c0_204] : memref<8x8x128xf32, #tpu.memory_space<vmem>>, vector<1x8x128xf32>
    %419 = vector.shape_cast %418 : vector<1x8x128xf32> to vector<8x128xf32>
    %420 = vector.shape_cast %414 : vector<8x128xf32> to vector<1x8x128xf32>
    tpu.vector_store %arg9[%417, %c0_203, %c0_204], %420 {strides = array<i32>} : memref<8x8x128xf32, #tpu.memory_space<vmem>>, vector<1x8x128xf32>,
    %c8_i32 = arith.constant 8 : i32
    %c0_i32_205 = arith.constant 0 : i32
    %421 = arith.cmpi eq, %arg1, %c0_i32_205 : i32
    %422 = arith.extui %421 : i1 to i32
    %c0_i32_206 = arith.constant 0 : i32
    %423 = arith.cmpi ne, %422, %c0_i32_206 : i32
    scf.if %423 {
      %c0_207 = arith.constant 0 : index
      %c0_208 = arith.constant 0 : index
      %424 = vector.load %arg13[%c0_207, %c0_208] : memref<8x128xf32, #tpu.memory_space<vmem>>, vector<8x128xf32>
      %c0_209 = arith.constant 0 : index
      %c0_210 = arith.constant 0 : index
      %425 = vector.load %arg10[%c0_209, %c0_210] : memref<8x128xf32, #tpu.memory_space<vmem>>, vector<8x128xf32>
      tpu.vector_store %arg10[%c0_209, %c0_210], %424 {strides = array<i32>} : memref<8x128xf32, #tpu.memory_space<vmem>>, vector<8x128xf32>,
      %c0_211 = arith.constant 0 : index
      %c0_212 = arith.constant 0 : index
      %426 = vector.load %arg14[%c0_211, %c0_212] : memref<8x128xf32, #tpu.memory_space<vmem>>, vector<8x128xf32>
      %c0_213 = arith.constant 0 : index
      %c0_214 = arith.constant 0 : index
      %427 = vector.load %arg11[%c0_213, %c0_214] : memref<8x128xf32, #tpu.memory_space<vmem>>, vector<8x128xf32>
      tpu.vector_store %arg11[%c0_213, %c0_214], %426 {strides = array<i32>} : memref<8x128xf32, #tpu.memory_space<vmem>>, vector<8x128xf32>,
    } else {
    }
    return
  }
  func.func @transform_0(%arg0: i32, %arg1: i32) -> (i32, i32, i32) {
    %c0_i32 = arith.constant 0 : i32
    %c0_i32_0 = arith.constant 0 : i32
    return %arg1, %arg0, %c0_i32 : i32, i32, i32
  }
  func.func @transform_1(%arg0: i32, %arg1: i32) -> (i32, i32, i32) {
    %c0_i32 = arith.constant 0 : i32
    %c0_i32_0 = arith.constant 0 : i32
    return %arg1, %arg0, %c0_i32 : i32, i32, i32
  }
  func.func @transform_2(%arg0: i32, %arg1: i32) -> (i32, i32) {
    %c0_i32 = arith.constant 0 : i32
    %c0_i32_0 = arith.constant 0 : i32
    return %arg0, %c0_i32 : i32, i32
  }
  func.func @transform_3(%arg0: i32, %arg1: i32) -> (i32, i32) {
    %c0_i32 = arith.constant 0 : i32
    %c0_i32_0 = arith.constant 0 : i32
    return %arg0, %c0_i32 : i32, i32
  }
  func.func @transform_4(%arg0: i32, %arg1: i32) -> (i32, i32) {
    %c0_i32 = arith.constant 0 : i32
    %c0_i32_0 = arith.constant 0 : i32
    %c0_i32_1 = arith.constant 0 : i32
    return %c0_i32, %c0_i32_0 : i32, i32
  }
  func.func @transform_5(%arg0: i32, %arg1: i32) -> (i32, i32) {
    %c0_i32 = arith.constant 0 : i32
    %c0_i32_0 = arith.constant 0 : i32
    %c0_i32_1 = arith.constant 0 : i32
    return %c0_i32, %c0_i32_0 : i32, i32
  }
  func.func @transform_6(%arg0: i32, %arg1: i32) -> (i32, i32) {
    %c0_i32 = arith.constant 0 : i32
    %c0_i32_0 = arith.constant 0 : i32
    %c0_i32_1 = arith.constant 0 : i32
    return %c0_i32, %c0_i32_0 : i32, i32
  }
  func.func @transform_7(%arg0: i32, %arg1: i32) -> (i32, i32, i32) {
    %c0_i32 = arith.constant 0 : i32
    %c0_i32_0 = arith.constant 0 : i32
    return %arg1, %arg0, %c0_i32 : i32, i32, i32
  }
  func.func @transform_8(%arg0: i32, %arg1: i32) -> (i32, i32) {
    %c0_i32 = arith.constant 0 : i32
    %c0_i32_0 = arith.constant 0 : i32
    return %arg0, %c0_i32 : i32, i32
  }
  func.func @transform_9(%arg0: i32, %arg1: i32) -> (i32, i32) {
    %c0_i32 = arith.constant 0 : i32
    %c0_i32_0 = arith.constant 0 : i32
    return %arg0, %c0_i32 : i32, i32
  }
}

module attributes {stable_mosaic.version = 11 : i64} {
  func.func @_lstm_recurrent_kernel(%arg0: i32, %arg1: i32, %arg2: memref<8x8x128xf32, #tpu.memory_space<vmem>>, %arg3: memref<8x8x1xf32, #tpu.memory_space<vmem>>, %arg4: memref<8x128xf32, #tpu.memory_space<vmem>>, %arg5: memref<8x128xf32, #tpu.memory_space<vmem>>, %arg6: memref<128x512xf32, #tpu.memory_space<vmem>>, %arg7: memref<128x512xf32, #tpu.memory_space<vmem>>, %arg8: memref<1x512xf32, #tpu.memory_space<vmem>>, %arg9: memref<8x8x128xf32, #tpu.memory_space<vmem>>, %arg10: memref<8x128xf32, #tpu.memory_space<vmem>>, %arg11: memref<8x128xf32, #tpu.memory_space<vmem>>, %arg12: memref<8x8x512xf32, #tpu.memory_space<vmem>>, %arg13: memref<8x128xf32, #tpu.memory_space<vmem>>, %arg14: memref<8x128xf32, #tpu.memory_space<vmem>>) attributes {dimension_semantics = [#tpu.dimension_semantics<parallel>, #tpu.dimension_semantics<arbitrary>], iteration_bounds = array<i64: 1, 1>, scalar_prefetch = 0 : i64, scratch_operands = 3 : i64, tpu.core_type = #tpu.core_type<tc>, window_params = [{transform_indices = @transform_0, window_bounds = array<i64: 8, 8, 128>}, {transform_indices = @transform_1, window_bounds = array<i64: 8, 8, 1>}, {transform_indices = @transform_2, window_bounds = array<i64: 8, 128>}, {transform_indices = @transform_3, window_bounds = array<i64: 8, 128>}, {pipeline_mode = #tpu.pipeline_mode<synchronous>, transform_indices = @transform_4, window_bounds = array<i64: 128, 512>}, {pipeline_mode = #tpu.pipeline_mode<synchronous>, transform_indices = @transform_5, window_bounds = array<i64: 128, 512>}, {pipeline_mode = #tpu.pipeline_mode<synchronous>, transform_indices = @transform_6, window_bounds = array<i64: 1, 512>}, {transform_indices = @transform_7, window_bounds = array<i64: 8, 8, 128>}, {transform_indices = @transform_8, window_bounds = array<i64: 8, 128>}, {transform_indices = @transform_9, window_bounds = array<i64: 8, 128>}]} {
    %c0_i32 = arith.constant 0 : i32
    %0 = arith.cmpi eq, %arg1, %c0_i32 : i32
    %1 = arith.extui %0 : i1 to i32
    %c0_i32_0 = arith.constant 0 : i32
    %2 = arith.cmpi ne, %1, %c0_i32_0 : i32
    scf.if %2 {
      %c0_207 = arith.constant 0 : index
      %c0_208 = arith.constant 0 : index
      %424 = vector.load %arg4[%c0_207, %c0_208] : memref<8x128xf32, #tpu.memory_space<vmem>>, vector<8x128xf32>
      %c0_209 = arith.constant 0 : index
      %c0_210 = arith.constant 0 : index
      %425 = vector.load %arg13[%c0_209, %c0_210] : memref<8x128xf32, #tpu.memory_space<vmem>>, vector<8x128xf32>
      tpu.vector_store %arg13[%c0_209, %c0_210], %424 {strides = array<i32>} : memref<8x128xf32, #tpu.memory_space<vmem>>, vector<8x128xf32>,
      %c0_211 = arith.constant 0 : index
      %c0_212 = arith.constant 0 : index
      %426 = vector.load %arg5[%c0_211, %c0_212] : memref<8x128xf32, #tpu.memory_space<vmem>>, vector<8x128xf32>
      %c0_213 = arith.constant 0 : index
      %c0_214 = arith.constant 0 : index
      %427 = vector.load %arg14[%c0_213, %c0_214] : memref<8x128xf32, #tpu.memory_space<vmem>>, vector<8x128xf32>
      tpu.vector_store %arg14[%c0_213, %c0_214], %426 {strides = array<i32>} : memref<8x128xf32, #tpu.memory_space<vmem>>, vector<8x128xf32>,
    } else {
    }
    %c0 = arith.constant 0 : index
    %c0_1 = arith.constant 0 : index
    %3 = vector.load %arg6[%c0, %c0_1] : memref<128x512xf32, #tpu.memory_space<vmem>>, vector<128x512xf32>
    %c0_2 = arith.constant 0 : index
    %c0_3 = arith.constant 0 : index
    %4 = vector.load %arg7[%c0_2, %c0_3] : memref<128x512xf32, #tpu.memory_space<vmem>>, vector<128x512xf32>
    %c0_4 = arith.constant 0 : index
    %c0_5 = arith.constant 0 : index
    %c0_6 = arith.constant 0 : index
    %5 = vector.load %arg2[%c0_4, %c0_5, %c0_6] : memref<8x8x128xf32, #tpu.memory_space<vmem>>, vector<8x8x128xf32>
    %6 = vector.shape_cast %5 : vector<8x8x128xf32> to vector<64x128xf32>
    %cst = arith.constant dense<0.000000e+00> : vector<64x512xf32>
    %7 = tpu.matmul %6, %3, %cst {dimension_numbers = #tpu.dot_dimension_numbers<[1], [0], [0], [1], [0, 0, 1, 1], [], []>} : vector<64x128xf32>, vector<128x512xf32>, vector<64x512xf32> -> vector<64x512xf32>
    %c0_7 = arith.constant 0 : index
    %c0_8 = arith.constant 0 : index
    %8 = vector.load %arg8[%c0_7, %c0_8] : memref<1x512xf32, #tpu.memory_space<vmem>>, vector<1x512xf32>
    %9 = vector.broadcast %8 : vector<1x512xf32> to vector<64x512xf32>
    %10 = arith.addf %7, %9 : vector<64x512xf32>
    %11 = vector.shape_cast %10 : vector<64x512xf32> to vector<8x8x512xf32>
    %c0_9 = arith.constant 0 : index
    %c0_10 = arith.constant 0 : index
    %c0_11 = arith.constant 0 : index
    %12 = vector.load %arg12[%c0_9, %c0_10, %c0_11] : memref<8x8x512xf32, #tpu.memory_space<vmem>>, vector<8x8x512xf32>
    tpu.vector_store %arg12[%c0_9, %c0_10, %c0_11], %11 {strides = array<i32>} : memref<8x8x512xf32, #tpu.memory_space<vmem>>, vector<8x8x512xf32>,
    %c0_i32_12 = arith.constant 0 : i32
    %13 = arith.index_cast %c0_i32_12 : i32 to index
    %c0_13 = arith.constant 0 : index
    %c0_14 = arith.constant 0 : index
    %14 = vector.load %arg3[%13, %c0_13, %c0_14] : memref<8x8x1xf32, #tpu.memory_space<vmem>>, vector<1x8x1xf32>
    %15 = vector.shape_cast %14 : vector<1x8x1xf32> to vector<8x1xf32>
    %c0_15 = arith.constant 0 : index
    %c0_16 = arith.constant 0 : index
    %16 = vector.load %arg13[%c0_15, %c0_16] : memref<8x128xf32, #tpu.memory_space<vmem>>, vector<8x128xf32>
    %17 = vector.broadcast %15 : vector<8x1xf32> to vector<8x128xf32>
    %18 = arith.mulf %16, %17 : vector<8x128xf32>
    %c0_17 = arith.constant 0 : index
    %c0_18 = arith.constant 0 : index
    %19 = vector.load %arg14[%c0_17, %c0_18] : memref<8x128xf32, #tpu.memory_space<vmem>>, vector<8x128xf32>
    %20 = vector.broadcast %15 : vector<8x1xf32> to vector<8x128xf32>
    %21 = arith.mulf %19, %20 : vector<8x128xf32>
    %22 = arith.index_cast %c0_i32_12 : i32 to index
    %c0_19 = arith.constant 0 : index
    %c0_20 = arith.constant 0 : index
    %23 = vector.load %arg12[%22, %c0_19, %c0_20] : memref<8x8x512xf32, #tpu.memory_space<vmem>>, vector<1x8x512xf32>
    %24 = vector.shape_cast %23 : vector<1x8x512xf32> to vector<8x512xf32>
    %cst_21 = arith.constant dense<0.000000e+00> : vector<8x512xf32>
    %25 = tpu.matmul %18, %4, %cst_21 {dimension_numbers = #tpu.dot_dimension_numbers<[1], [0], [0], [1], [0, 0, 1, 1], [], []>} : vector<8x128xf32>, vector<128x512xf32>, vector<8x512xf32> -> vector<8x512xf32>
    %26 = arith.addf %24, %25 : vector<8x512xf32>
    %27 = vector.extract_strided_slice %26 {offsets = [0, 0], sizes = [8, 128], strides = [1, 1]} : vector<8x512xf32> to vector<8x128xf32>
    %cst_22 = arith.constant 5.000000e-01 : f32
    %28 = vector.broadcast %cst_22 : f32 to vector<8x128xf32>
    %29 = arith.mulf %28, %27 : vector<8x128xf32>
    %30 = math.tanh %29 : vector<8x128xf32>
    %cst_23 = arith.constant 5.000000e-01 : f32
    %31 = vector.broadcast %cst_23 : f32 to vector<8x128xf32>
    %32 = arith.mulf %31, %30 : vector<8x128xf32>
    %cst_24 = arith.constant 5.000000e-01 : f32
    %33 = vector.broadcast %cst_24 : f32 to vector<8x128xf32>
    %34 = arith.addf %32, %33 : vector<8x128xf32>
    %35 = vector.extract_strided_slice %26 {offsets = [0, 128], sizes = [8, 128], strides = [1, 1]} : vector<8x512xf32> to vector<8x128xf32>
    %cst_25 = arith.constant 5.000000e-01 : f32
    %36 = vector.broadcast %cst_25 : f32 to vector<8x128xf32>
    %37 = arith.mulf %36, %35 : vector<8x128xf32>
    %38 = math.tanh %37 : vector<8x128xf32>
    %cst_26 = arith.constant 5.000000e-01 : f32
    %39 = vector.broadcast %cst_26 : f32 to vector<8x128xf32>
    %40 = arith.mulf %39, %38 : vector<8x128xf32>
    %cst_27 = arith.constant 5.000000e-01 : f32
    %41 = vector.broadcast %cst_27 : f32 to vector<8x128xf32>
    %42 = arith.addf %40, %41 : vector<8x128xf32>
    %43 = vector.extract_strided_slice %26 {offsets = [0, 256], sizes = [8, 128], strides = [1, 1]} : vector<8x512xf32> to vector<8x128xf32>
    %44 = math.tanh %43 : vector<8x128xf32>
    %45 = vector.extract_strided_slice %26 {offsets = [0, 384], sizes = [8, 128], strides = [1, 1]} : vector<8x512xf32> to vector<8x128xf32>
    %cst_28 = arith.constant 5.000000e-01 : f32
    %46 = vector.broadcast %cst_28 : f32 to vector<8x128xf32>
    %47 = arith.mulf %46, %45 : vector<8x128xf32>
    %48 = math.tanh %47 : vector<8x128xf32>
    %cst_29 = arith.constant 5.000000e-01 : f32
    %49 = vector.broadcast %cst_29 : f32 to vector<8x128xf32>
    %50 = arith.mulf %49, %48 : vector<8x128xf32>
    %cst_30 = arith.constant 5.000000e-01 : f32
    %51 = vector.broadcast %cst_30 : f32 to vector<8x128xf32>
    %52 = arith.addf %50, %51 : vector<8x128xf32>
    %53 = arith.mulf %42, %21 : vector<8x128xf32>
    %54 = arith.mulf %34, %44 : vector<8x128xf32>
    %55 = arith.addf %53, %54 : vector<8x128xf32>
    %56 = math.tanh %55 : vector<8x128xf32>
    %57 = arith.mulf %52, %56 : vector<8x128xf32>
    %c0_31 = arith.constant 0 : index
    %c0_32 = arith.constant 0 : index
    %58 = vector.load %arg13[%c0_31, %c0_32] : memref<8x128xf32, #tpu.memory_space<vmem>>, vector<8x128xf32>
    tpu.vector_store %arg13[%c0_31, %c0_32], %57 {strides = array<i32>} : memref<8x128xf32, #tpu.memory_space<vmem>>, vector<8x128xf32>,
    %c0_33 = arith.constant 0 : index
    %c0_34 = arith.constant 0 : index
    %59 = vector.load %arg14[%c0_33, %c0_34] : memref<8x128xf32, #tpu.memory_space<vmem>>, vector<8x128xf32>
    tpu.vector_store %arg14[%c0_33, %c0_34], %55 {strides = array<i32>} : memref<8x128xf32, #tpu.memory_space<vmem>>, vector<8x128xf32>,
    %60 = arith.index_cast %c0_i32_12 : i32 to index
    %c0_35 = arith.constant 0 : index
    %c0_36 = arith.constant 0 : index
    %61 = vector.load %arg9[%60, %c0_35, %c0_36] : memref<8x8x128xf32, #tpu.memory_space<vmem>>, vector<1x8x128xf32>
    %62 = vector.shape_cast %61 : vector<1x8x128xf32> to vector<8x128xf32>
    %63 = vector.shape_cast %57 : vector<8x128xf32> to vector<1x8x128xf32>
    tpu.vector_store %arg9[%60, %c0_35, %c0_36], %63 {strides = array<i32>} : memref<8x8x128xf32, #tpu.memory_space<vmem>>, vector<1x8x128xf32>,
    %c1_i32 = arith.constant 1 : i32
    %64 = arith.index_cast %c1_i32 : i32 to index
    %c0_37 = arith.constant 0 : index
    %c0_38 = arith.constant 0 : index
    %65 = vector.load %arg3[%64, %c0_37, %c0_38] : memref<8x8x1xf32, #tpu.memory_space<vmem>>, vector<1x8x1xf32>
    %66 = vector.shape_cast %65 : vector<1x8x1xf32> to vector<8x1xf32>
    %c0_39 = arith.constant 0 : index
    %c0_40 = arith.constant 0 : index
    %67 = vector.load %arg13[%c0_39, %c0_40] : memref<8x128xf32, #tpu.memory_space<vmem>>, vector<8x128xf32>
    %68 = vector.broadcast %66 : vector<8x1xf32> to vector<8x128xf32>
    %69 = arith.mulf %67, %68 : vector<8x128xf32>
    %c0_41 = arith.constant 0 : index
    %c0_42 = arith.constant 0 : index
    %70 = vector.load %arg14[%c0_41, %c0_42] : memref<8x128xf32, #tpu.memory_space<vmem>>, vector<8x128xf32>
    %71 = vector.broadcast %66 : vector<8x1xf32> to vector<8x128xf32>
    %72 = arith.mulf %70, %71 : vector<8x128xf32>
    %73 = arith.index_cast %c1_i32 : i32 to index
    %c0_43 = arith.constant 0 : index
    %c0_44 = arith.constant 0 : index
    %74 = vector.load %arg12[%73, %c0_43, %c0_44] : memref<8x8x512xf32, #tpu.memory_space<vmem>>, vector<1x8x512xf32>
    %75 = vector.shape_cast %74 : vector<1x8x512xf32> to vector<8x512xf32>
    %cst_45 = arith.constant dense<0.000000e+00> : vector<8x512xf32>
    %76 = tpu.matmul %69, %4, %cst_45 {dimension_numbers = #tpu.dot_dimension_numbers<[1], [0], [0], [1], [0, 0, 1, 1], [], []>} : vector<8x128xf32>, vector<128x512xf32>, vector<8x512xf32> -> vector<8x512xf32>
    %77 = arith.addf %75, %76 : vector<8x512xf32>
    %78 = vector.extract_strided_slice %77 {offsets = [0, 0], sizes = [8, 128], strides = [1, 1]} : vector<8x512xf32> to vector<8x128xf32>
    %cst_46 = arith.constant 5.000000e-01 : f32
    %79 = vector.broadcast %cst_46 : f32 to vector<8x128xf32>
    %80 = arith.mulf %79, %78 : vector<8x128xf32>
    %81 = math.tanh %80 : vector<8x128xf32>
    %cst_47 = arith.constant 5.000000e-01 : f32
    %82 = vector.broadcast %cst_47 : f32 to vector<8x128xf32>
    %83 = arith.mulf %82, %81 : vector<8x128xf32>
    %cst_48 = arith.constant 5.000000e-01 : f32
    %84 = vector.broadcast %cst_48 : f32 to vector<8x128xf32>
    %85 = arith.addf %83, %84 : vector<8x128xf32>
    %86 = vector.extract_strided_slice %77 {offsets = [0, 128], sizes = [8, 128], strides = [1, 1]} : vector<8x512xf32> to vector<8x128xf32>
    %cst_49 = arith.constant 5.000000e-01 : f32
    %87 = vector.broadcast %cst_49 : f32 to vector<8x128xf32>
    %88 = arith.mulf %87, %86 : vector<8x128xf32>
    %89 = math.tanh %88 : vector<8x128xf32>
    %cst_50 = arith.constant 5.000000e-01 : f32
    %90 = vector.broadcast %cst_50 : f32 to vector<8x128xf32>
    %91 = arith.mulf %90, %89 : vector<8x128xf32>
    %cst_51 = arith.constant 5.000000e-01 : f32
    %92 = vector.broadcast %cst_51 : f32 to vector<8x128xf32>
    %93 = arith.addf %91, %92 : vector<8x128xf32>
    %94 = vector.extract_strided_slice %77 {offsets = [0, 256], sizes = [8, 128], strides = [1, 1]} : vector<8x512xf32> to vector<8x128xf32>
    %95 = math.tanh %94 : vector<8x128xf32>
    %96 = vector.extract_strided_slice %77 {offsets = [0, 384], sizes = [8, 128], strides = [1, 1]} : vector<8x512xf32> to vector<8x128xf32>
    %cst_52 = arith.constant 5.000000e-01 : f32
    %97 = vector.broadcast %cst_52 : f32 to vector<8x128xf32>
    %98 = arith.mulf %97, %96 : vector<8x128xf32>
    %99 = math.tanh %98 : vector<8x128xf32>
    %cst_53 = arith.constant 5.000000e-01 : f32
    %100 = vector.broadcast %cst_53 : f32 to vector<8x128xf32>
    %101 = arith.mulf %100, %99 : vector<8x128xf32>
    %cst_54 = arith.constant 5.000000e-01 : f32
    %102 = vector.broadcast %cst_54 : f32 to vector<8x128xf32>
    %103 = arith.addf %101, %102 : vector<8x128xf32>
    %104 = arith.mulf %93, %72 : vector<8x128xf32>
    %105 = arith.mulf %85, %95 : vector<8x128xf32>
    %106 = arith.addf %104, %105 : vector<8x128xf32>
    %107 = math.tanh %106 : vector<8x128xf32>
    %108 = arith.mulf %103, %107 : vector<8x128xf32>
    %c0_55 = arith.constant 0 : index
    %c0_56 = arith.constant 0 : index
    %109 = vector.load %arg13[%c0_55, %c0_56] : memref<8x128xf32, #tpu.memory_space<vmem>>, vector<8x128xf32>
    tpu.vector_store %arg13[%c0_55, %c0_56], %108 {strides = array<i32>} : memref<8x128xf32, #tpu.memory_space<vmem>>, vector<8x128xf32>,
    %c0_57 = arith.constant 0 : index
    %c0_58 = arith.constant 0 : index
    %110 = vector.load %arg14[%c0_57, %c0_58] : memref<8x128xf32, #tpu.memory_space<vmem>>, vector<8x128xf32>
    tpu.vector_store %arg14[%c0_57, %c0_58], %106 {strides = array<i32>} : memref<8x128xf32, #tpu.memory_space<vmem>>, vector<8x128xf32>,
    %111 = arith.index_cast %c1_i32 : i32 to index
    %c0_59 = arith.constant 0 : index
    %c0_60 = arith.constant 0 : index
    %112 = vector.load %arg9[%111, %c0_59, %c0_60] : memref<8x8x128xf32, #tpu.memory_space<vmem>>, vector<1x8x128xf32>
    %113 = vector.shape_cast %112 : vector<1x8x128xf32> to vector<8x128xf32>
    %114 = vector.shape_cast %108 : vector<8x128xf32> to vector<1x8x128xf32>
    tpu.vector_store %arg9[%111, %c0_59, %c0_60], %114 {strides = array<i32>} : memref<8x8x128xf32, #tpu.memory_space<vmem>>, vector<1x8x128xf32>,
    %c2_i32 = arith.constant 2 : i32
    %115 = arith.index_cast %c2_i32 : i32 to index
    %c0_61 = arith.constant 0 : index
    %c0_62 = arith.constant 0 : index
    %116 = vector.load %arg3[%115, %c0_61, %c0_62] : memref<8x8x1xf32, #tpu.memory_space<vmem>>, vector<1x8x1xf32>
    %117 = vector.shape_cast %116 : vector<1x8x1xf32> to vector<8x1xf32>
    %c0_63 = arith.constant 0 : index
    %c0_64 = arith.constant 0 : index
    %118 = vector.load %arg13[%c0_63, %c0_64] : memref<8x128xf32, #tpu.memory_space<vmem>>, vector<8x128xf32>
    %119 = vector.broadcast %117 : vector<8x1xf32> to vector<8x128xf32>
    %120 = arith.mulf %118, %119 : vector<8x128xf32>
    %c0_65 = arith.constant 0 : index
    %c0_66 = arith.constant 0 : index
    %121 = vector.load %arg14[%c0_65, %c0_66] : memref<8x128xf32, #tpu.memory_space<vmem>>, vector<8x128xf32>
    %122 = vector.broadcast %117 : vector<8x1xf32> to vector<8x128xf32>
    %123 = arith.mulf %121, %122 : vector<8x128xf32>
    %124 = arith.index_cast %c2_i32 : i32 to index
    %c0_67 = arith.constant 0 : index
    %c0_68 = arith.constant 0 : index
    %125 = vector.load %arg12[%124, %c0_67, %c0_68] : memref<8x8x512xf32, #tpu.memory_space<vmem>>, vector<1x8x512xf32>
    %126 = vector.shape_cast %125 : vector<1x8x512xf32> to vector<8x512xf32>
    %cst_69 = arith.constant dense<0.000000e+00> : vector<8x512xf32>
    %127 = tpu.matmul %120, %4, %cst_69 {dimension_numbers = #tpu.dot_dimension_numbers<[1], [0], [0], [1], [0, 0, 1, 1], [], []>} : vector<8x128xf32>, vector<128x512xf32>, vector<8x512xf32> -> vector<8x512xf32>
    %128 = arith.addf %126, %127 : vector<8x512xf32>
    %129 = vector.extract_strided_slice %128 {offsets = [0, 0], sizes = [8, 128], strides = [1, 1]} : vector<8x512xf32> to vector<8x128xf32>
    %cst_70 = arith.constant 5.000000e-01 : f32
    %130 = vector.broadcast %cst_70 : f32 to vector<8x128xf32>
    %131 = arith.mulf %130, %129 : vector<8x128xf32>
    %132 = math.tanh %131 : vector<8x128xf32>
    %cst_71 = arith.constant 5.000000e-01 : f32
    %133 = vector.broadcast %cst_71 : f32 to vector<8x128xf32>
    %134 = arith.mulf %133, %132 : vector<8x128xf32>
    %cst_72 = arith.constant 5.000000e-01 : f32
    %135 = vector.broadcast %cst_72 : f32 to vector<8x128xf32>
    %136 = arith.addf %134, %135 : vector<8x128xf32>
    %137 = vector.extract_strided_slice %128 {offsets = [0, 128], sizes = [8, 128], strides = [1, 1]} : vector<8x512xf32> to vector<8x128xf32>
    %cst_73 = arith.constant 5.000000e-01 : f32
    %138 = vector.broadcast %cst_73 : f32 to vector<8x128xf32>
    %139 = arith.mulf %138, %137 : vector<8x128xf32>
    %140 = math.tanh %139 : vector<8x128xf32>
    %cst_74 = arith.constant 5.000000e-01 : f32
    %141 = vector.broadcast %cst_74 : f32 to vector<8x128xf32>
    %142 = arith.mulf %141, %140 : vector<8x128xf32>
    %cst_75 = arith.constant 5.000000e-01 : f32
    %143 = vector.broadcast %cst_75 : f32 to vector<8x128xf32>
    %144 = arith.addf %142, %143 : vector<8x128xf32>
    %145 = vector.extract_strided_slice %128 {offsets = [0, 256], sizes = [8, 128], strides = [1, 1]} : vector<8x512xf32> to vector<8x128xf32>
    %146 = math.tanh %145 : vector<8x128xf32>
    %147 = vector.extract_strided_slice %128 {offsets = [0, 384], sizes = [8, 128], strides = [1, 1]} : vector<8x512xf32> to vector<8x128xf32>
    %cst_76 = arith.constant 5.000000e-01 : f32
    %148 = vector.broadcast %cst_76 : f32 to vector<8x128xf32>
    %149 = arith.mulf %148, %147 : vector<8x128xf32>
    %150 = math.tanh %149 : vector<8x128xf32>
    %cst_77 = arith.constant 5.000000e-01 : f32
    %151 = vector.broadcast %cst_77 : f32 to vector<8x128xf32>
    %152 = arith.mulf %151, %150 : vector<8x128xf32>
    %cst_78 = arith.constant 5.000000e-01 : f32
    %153 = vector.broadcast %cst_78 : f32 to vector<8x128xf32>
    %154 = arith.addf %152, %153 : vector<8x128xf32>
    %155 = arith.mulf %144, %123 : vector<8x128xf32>
    %156 = arith.mulf %136, %146 : vector<8x128xf32>
    %157 = arith.addf %155, %156 : vector<8x128xf32>
    %158 = math.tanh %157 : vector<8x128xf32>
    %159 = arith.mulf %154, %158 : vector<8x128xf32>
    %c0_79 = arith.constant 0 : index
    %c0_80 = arith.constant 0 : index
    %160 = vector.load %arg13[%c0_79, %c0_80] : memref<8x128xf32, #tpu.memory_space<vmem>>, vector<8x128xf32>
    tpu.vector_store %arg13[%c0_79, %c0_80], %159 {strides = array<i32>} : memref<8x128xf32, #tpu.memory_space<vmem>>, vector<8x128xf32>,
    %c0_81 = arith.constant 0 : index
    %c0_82 = arith.constant 0 : index
    %161 = vector.load %arg14[%c0_81, %c0_82] : memref<8x128xf32, #tpu.memory_space<vmem>>, vector<8x128xf32>
    tpu.vector_store %arg14[%c0_81, %c0_82], %157 {strides = array<i32>} : memref<8x128xf32, #tpu.memory_space<vmem>>, vector<8x128xf32>,
    %162 = arith.index_cast %c2_i32 : i32 to index
    %c0_83 = arith.constant 0 : index
    %c0_84 = arith.constant 0 : index
    %163 = vector.load %arg9[%162, %c0_83, %c0_84] : memref<8x8x128xf32, #tpu.memory_space<vmem>>, vector<1x8x128xf32>
    %164 = vector.shape_cast %163 : vector<1x8x128xf32> to vector<8x128xf32>
    %165 = vector.shape_cast %159 : vector<8x128xf32> to vector<1x8x128xf32>
    tpu.vector_store %arg9[%162, %c0_83, %c0_84], %165 {strides = array<i32>} : memref<8x8x128xf32, #tpu.memory_space<vmem>>, vector<1x8x128xf32>,
    %c3_i32 = arith.constant 3 : i32
    %166 = arith.index_cast %c3_i32 : i32 to index
    %c0_85 = arith.constant 0 : index
    %c0_86 = arith.constant 0 : index
    %167 = vector.load %arg3[%166, %c0_85, %c0_86] : memref<8x8x1xf32, #tpu.memory_space<vmem>>, vector<1x8x1xf32>
    %168 = vector.shape_cast %167 : vector<1x8x1xf32> to vector<8x1xf32>
    %c0_87 = arith.constant 0 : index
    %c0_88 = arith.constant 0 : index
    %169 = vector.load %arg13[%c0_87, %c0_88] : memref<8x128xf32, #tpu.memory_space<vmem>>, vector<8x128xf32>
    %170 = vector.broadcast %168 : vector<8x1xf32> to vector<8x128xf32>
    %171 = arith.mulf %169, %170 : vector<8x128xf32>
    %c0_89 = arith.constant 0 : index
    %c0_90 = arith.constant 0 : index
    %172 = vector.load %arg14[%c0_89, %c0_90] : memref<8x128xf32, #tpu.memory_space<vmem>>, vector<8x128xf32>
    %173 = vector.broadcast %168 : vector<8x1xf32> to vector<8x128xf32>
    %174 = arith.mulf %172, %173 : vector<8x128xf32>
    %175 = arith.index_cast %c3_i32 : i32 to index
    %c0_91 = arith.constant 0 : index
    %c0_92 = arith.constant 0 : index
    %176 = vector.load %arg12[%175, %c0_91, %c0_92] : memref<8x8x512xf32, #tpu.memory_space<vmem>>, vector<1x8x512xf32>
    %177 = vector.shape_cast %176 : vector<1x8x512xf32> to vector<8x512xf32>
    %cst_93 = arith.constant dense<0.000000e+00> : vector<8x512xf32>
    %178 = tpu.matmul %171, %4, %cst_93 {dimension_numbers = #tpu.dot_dimension_numbers<[1], [0], [0], [1], [0, 0, 1, 1], [], []>} : vector<8x128xf32>, vector<128x512xf32>, vector<8x512xf32> -> vector<8x512xf32>
    %179 = arith.addf %177, %178 : vector<8x512xf32>
    %180 = vector.extract_strided_slice %179 {offsets = [0, 0], sizes = [8, 128], strides = [1, 1]} : vector<8x512xf32> to vector<8x128xf32>
    %cst_94 = arith.constant 5.000000e-01 : f32
    %181 = vector.broadcast %cst_94 : f32 to vector<8x128xf32>
    %182 = arith.mulf %181, %180 : vector<8x128xf32>
    %183 = math.tanh %182 : vector<8x128xf32>
    %cst_95 = arith.constant 5.000000e-01 : f32
    %184 = vector.broadcast %cst_95 : f32 to vector<8x128xf32>
    %185 = arith.mulf %184, %183 : vector<8x128xf32>
    %cst_96 = arith.constant 5.000000e-01 : f32
    %186 = vector.broadcast %cst_96 : f32 to vector<8x128xf32>
    %187 = arith.addf %185, %186 : vector<8x128xf32>
    %188 = vector.extract_strided_slice %179 {offsets = [0, 128], sizes = [8, 128], strides = [1, 1]} : vector<8x512xf32> to vector<8x128xf32>
    %cst_97 = arith.constant 5.000000e-01 : f32
    %189 = vector.broadcast %cst_97 : f32 to vector<8x128xf32>
    %190 = arith.mulf %189, %188 : vector<8x128xf32>
    %191 = math.tanh %190 : vector<8x128xf32>
    %cst_98 = arith.constant 5.000000e-01 : f32
    %192 = vector.broadcast %cst_98 : f32 to vector<8x128xf32>
    %193 = arith.mulf %192, %191 : vector<8x128xf32>
    %cst_99 = arith.constant 5.000000e-01 : f32
    %194 = vector.broadcast %cst_99 : f32 to vector<8x128xf32>
    %195 = arith.addf %193, %194 : vector<8x128xf32>
    %196 = vector.extract_strided_slice %179 {offsets = [0, 256], sizes = [8, 128], strides = [1, 1]} : vector<8x512xf32> to vector<8x128xf32>
    %197 = math.tanh %196 : vector<8x128xf32>
    %198 = vector.extract_strided_slice %179 {offsets = [0, 384], sizes = [8, 128], strides = [1, 1]} : vector<8x512xf32> to vector<8x128xf32>
    %cst_100 = arith.constant 5.000000e-01 : f32
    %199 = vector.broadcast %cst_100 : f32 to vector<8x128xf32>
    %200 = arith.mulf %199, %198 : vector<8x128xf32>
    %201 = math.tanh %200 : vector<8x128xf32>
    %cst_101 = arith.constant 5.000000e-01 : f32
    %202 = vector.broadcast %cst_101 : f32 to vector<8x128xf32>
    %203 = arith.mulf %202, %201 : vector<8x128xf32>
    %cst_102 = arith.constant 5.000000e-01 : f32
    %204 = vector.broadcast %cst_102 : f32 to vector<8x128xf32>
    %205 = arith.addf %203, %204 : vector<8x128xf32>
    %206 = arith.mulf %195, %174 : vector<8x128xf32>
    %207 = arith.mulf %187, %197 : vector<8x128xf32>
    %208 = arith.addf %206, %207 : vector<8x128xf32>
    %209 = math.tanh %208 : vector<8x128xf32>
    %210 = arith.mulf %205, %209 : vector<8x128xf32>
    %c0_103 = arith.constant 0 : index
    %c0_104 = arith.constant 0 : index
    %211 = vector.load %arg13[%c0_103, %c0_104] : memref<8x128xf32, #tpu.memory_space<vmem>>, vector<8x128xf32>
    tpu.vector_store %arg13[%c0_103, %c0_104], %210 {strides = array<i32>} : memref<8x128xf32, #tpu.memory_space<vmem>>, vector<8x128xf32>,
    %c0_105 = arith.constant 0 : index
    %c0_106 = arith.constant 0 : index
    %212 = vector.load %arg14[%c0_105, %c0_106] : memref<8x128xf32, #tpu.memory_space<vmem>>, vector<8x128xf32>
    tpu.vector_store %arg14[%c0_105, %c0_106], %208 {strides = array<i32>} : memref<8x128xf32, #tpu.memory_space<vmem>>, vector<8x128xf32>,
    %213 = arith.index_cast %c3_i32 : i32 to index
    %c0_107 = arith.constant 0 : index
    %c0_108 = arith.constant 0 : index
    %214 = vector.load %arg9[%213, %c0_107, %c0_108] : memref<8x8x128xf32, #tpu.memory_space<vmem>>, vector<1x8x128xf32>
    %215 = vector.shape_cast %214 : vector<1x8x128xf32> to vector<8x128xf32>
    %216 = vector.shape_cast %210 : vector<8x128xf32> to vector<1x8x128xf32>
    tpu.vector_store %arg9[%213, %c0_107, %c0_108], %216 {strides = array<i32>} : memref<8x8x128xf32, #tpu.memory_space<vmem>>, vector<1x8x128xf32>,
    %c4_i32 = arith.constant 4 : i32
    %217 = arith.index_cast %c4_i32 : i32 to index
    %c0_109 = arith.constant 0 : index
    %c0_110 = arith.constant 0 : index
    %218 = vector.load %arg3[%217, %c0_109, %c0_110] : memref<8x8x1xf32, #tpu.memory_space<vmem>>, vector<1x8x1xf32>
    %219 = vector.shape_cast %218 : vector<1x8x1xf32> to vector<8x1xf32>
    %c0_111 = arith.constant 0 : index
    %c0_112 = arith.constant 0 : index
    %220 = vector.load %arg13[%c0_111, %c0_112] : memref<8x128xf32, #tpu.memory_space<vmem>>, vector<8x128xf32>
    %221 = vector.broadcast %219 : vector<8x1xf32> to vector<8x128xf32>
    %222 = arith.mulf %220, %221 : vector<8x128xf32>
    %c0_113 = arith.constant 0 : index
    %c0_114 = arith.constant 0 : index
    %223 = vector.load %arg14[%c0_113, %c0_114] : memref<8x128xf32, #tpu.memory_space<vmem>>, vector<8x128xf32>
    %224 = vector.broadcast %219 : vector<8x1xf32> to vector<8x128xf32>
    %225 = arith.mulf %223, %224 : vector<8x128xf32>
    %226 = arith.index_cast %c4_i32 : i32 to index
    %c0_115 = arith.constant 0 : index
    %c0_116 = arith.constant 0 : index
    %227 = vector.load %arg12[%226, %c0_115, %c0_116] : memref<8x8x512xf32, #tpu.memory_space<vmem>>, vector<1x8x512xf32>
    %228 = vector.shape_cast %227 : vector<1x8x512xf32> to vector<8x512xf32>
    %cst_117 = arith.constant dense<0.000000e+00> : vector<8x512xf32>
    %229 = tpu.matmul %222, %4, %cst_117 {dimension_numbers = #tpu.dot_dimension_numbers<[1], [0], [0], [1], [0, 0, 1, 1], [], []>} : vector<8x128xf32>, vector<128x512xf32>, vector<8x512xf32> -> vector<8x512xf32>
    %230 = arith.addf %228, %229 : vector<8x512xf32>
    %231 = vector.extract_strided_slice %230 {offsets = [0, 0], sizes = [8, 128], strides = [1, 1]} : vector<8x512xf32> to vector<8x128xf32>
    %cst_118 = arith.constant 5.000000e-01 : f32
    %232 = vector.broadcast %cst_118 : f32 to vector<8x128xf32>
    %233 = arith.mulf %232, %231 : vector<8x128xf32>
    %234 = math.tanh %233 : vector<8x128xf32>
    %cst_119 = arith.constant 5.000000e-01 : f32
    %235 = vector.broadcast %cst_119 : f32 to vector<8x128xf32>
    %236 = arith.mulf %235, %234 : vector<8x128xf32>
    %cst_120 = arith.constant 5.000000e-01 : f32
    %237 = vector.broadcast %cst_120 : f32 to vector<8x128xf32>
    %238 = arith.addf %236, %237 : vector<8x128xf32>
    %239 = vector.extract_strided_slice %230 {offsets = [0, 128], sizes = [8, 128], strides = [1, 1]} : vector<8x512xf32> to vector<8x128xf32>
    %cst_121 = arith.constant 5.000000e-01 : f32
    %240 = vector.broadcast %cst_121 : f32 to vector<8x128xf32>
    %241 = arith.mulf %240, %239 : vector<8x128xf32>
    %242 = math.tanh %241 : vector<8x128xf32>
    %cst_122 = arith.constant 5.000000e-01 : f32
    %243 = vector.broadcast %cst_122 : f32 to vector<8x128xf32>
    %244 = arith.mulf %243, %242 : vector<8x128xf32>
    %cst_123 = arith.constant 5.000000e-01 : f32
    %245 = vector.broadcast %cst_123 : f32 to vector<8x128xf32>
    %246 = arith.addf %244, %245 : vector<8x128xf32>
    %247 = vector.extract_strided_slice %230 {offsets = [0, 256], sizes = [8, 128], strides = [1, 1]} : vector<8x512xf32> to vector<8x128xf32>
    %248 = math.tanh %247 : vector<8x128xf32>
    %249 = vector.extract_strided_slice %230 {offsets = [0, 384], sizes = [8, 128], strides = [1, 1]} : vector<8x512xf32> to vector<8x128xf32>
    %cst_124 = arith.constant 5.000000e-01 : f32
    %250 = vector.broadcast %cst_124 : f32 to vector<8x128xf32>
    %251 = arith.mulf %250, %249 : vector<8x128xf32>
    %252 = math.tanh %251 : vector<8x128xf32>
    %cst_125 = arith.constant 5.000000e-01 : f32
    %253 = vector.broadcast %cst_125 : f32 to vector<8x128xf32>
    %254 = arith.mulf %253, %252 : vector<8x128xf32>
    %cst_126 = arith.constant 5.000000e-01 : f32
    %255 = vector.broadcast %cst_126 : f32 to vector<8x128xf32>
    %256 = arith.addf %254, %255 : vector<8x128xf32>
    %257 = arith.mulf %246, %225 : vector<8x128xf32>
    %258 = arith.mulf %238, %248 : vector<8x128xf32>
    %259 = arith.addf %257, %258 : vector<8x128xf32>
    %260 = math.tanh %259 : vector<8x128xf32>
    %261 = arith.mulf %256, %260 : vector<8x128xf32>
    %c0_127 = arith.constant 0 : index
    %c0_128 = arith.constant 0 : index
    %262 = vector.load %arg13[%c0_127, %c0_128] : memref<8x128xf32, #tpu.memory_space<vmem>>, vector<8x128xf32>
    tpu.vector_store %arg13[%c0_127, %c0_128], %261 {strides = array<i32>} : memref<8x128xf32, #tpu.memory_space<vmem>>, vector<8x128xf32>,
    %c0_129 = arith.constant 0 : index
    %c0_130 = arith.constant 0 : index
    %263 = vector.load %arg14[%c0_129, %c0_130] : memref<8x128xf32, #tpu.memory_space<vmem>>, vector<8x128xf32>
    tpu.vector_store %arg14[%c0_129, %c0_130], %259 {strides = array<i32>} : memref<8x128xf32, #tpu.memory_space<vmem>>, vector<8x128xf32>,
    %264 = arith.index_cast %c4_i32 : i32 to index
    %c0_131 = arith.constant 0 : index
    %c0_132 = arith.constant 0 : index
    %265 = vector.load %arg9[%264, %c0_131, %c0_132] : memref<8x8x128xf32, #tpu.memory_space<vmem>>, vector<1x8x128xf32>
    %266 = vector.shape_cast %265 : vector<1x8x128xf32> to vector<8x128xf32>
    %267 = vector.shape_cast %261 : vector<8x128xf32> to vector<1x8x128xf32>
    tpu.vector_store %arg9[%264, %c0_131, %c0_132], %267 {strides = array<i32>} : memref<8x8x128xf32, #tpu.memory_space<vmem>>, vector<1x8x128xf32>,
    %c5_i32 = arith.constant 5 : i32
    %268 = arith.index_cast %c5_i32 : i32 to index
    %c0_133 = arith.constant 0 : index
    %c0_134 = arith.constant 0 : index
    %269 = vector.load %arg3[%268, %c0_133, %c0_134] : memref<8x8x1xf32, #tpu.memory_space<vmem>>, vector<1x8x1xf32>
    %270 = vector.shape_cast %269 : vector<1x8x1xf32> to vector<8x1xf32>
    %c0_135 = arith.constant 0 : index
    %c0_136 = arith.constant 0 : index
    %271 = vector.load %arg13[%c0_135, %c0_136] : memref<8x128xf32, #tpu.memory_space<vmem>>, vector<8x128xf32>
    %272 = vector.broadcast %270 : vector<8x1xf32> to vector<8x128xf32>
    %273 = arith.mulf %271, %272 : vector<8x128xf32>
    %c0_137 = arith.constant 0 : index
    %c0_138 = arith.constant 0 : index
    %274 = vector.load %arg14[%c0_137, %c0_138] : memref<8x128xf32, #tpu.memory_space<vmem>>, vector<8x128xf32>
    %275 = vector.broadcast %270 : vector<8x1xf32> to vector<8x128xf32>
    %276 = arith.mulf %274, %275 : vector<8x128xf32>
    %277 = arith.index_cast %c5_i32 : i32 to index
    %c0_139 = arith.constant 0 : index
    %c0_140 = arith.constant 0 : index
    %278 = vector.load %arg12[%277, %c0_139, %c0_140] : memref<8x8x512xf32, #tpu.memory_space<vmem>>, vector<1x8x512xf32>
    %279 = vector.shape_cast %278 : vector<1x8x512xf32> to vector<8x512xf32>
    %cst_141 = arith.constant dense<0.000000e+00> : vector<8x512xf32>
    %280 = tpu.matmul %273, %4, %cst_141 {dimension_numbers = #tpu.dot_dimension_numbers<[1], [0], [0], [1], [0, 0, 1, 1], [], []>} : vector<8x128xf32>, vector<128x512xf32>, vector<8x512xf32> -> vector<8x512xf32>
    %281 = arith.addf %279, %280 : vector<8x512xf32>
    %282 = vector.extract_strided_slice %281 {offsets = [0, 0], sizes = [8, 128], strides = [1, 1]} : vector<8x512xf32> to vector<8x128xf32>
    %cst_142 = arith.constant 5.000000e-01 : f32
    %283 = vector.broadcast %cst_142 : f32 to vector<8x128xf32>
    %284 = arith.mulf %283, %282 : vector<8x128xf32>
    %285 = math.tanh %284 : vector<8x128xf32>
    %cst_143 = arith.constant 5.000000e-01 : f32
    %286 = vector.broadcast %cst_143 : f32 to vector<8x128xf32>
    %287 = arith.mulf %286, %285 : vector<8x128xf32>
    %cst_144 = arith.constant 5.000000e-01 : f32
    %288 = vector.broadcast %cst_144 : f32 to vector<8x128xf32>
    %289 = arith.addf %287, %288 : vector<8x128xf32>
    %290 = vector.extract_strided_slice %281 {offsets = [0, 128], sizes = [8, 128], strides = [1, 1]} : vector<8x512xf32> to vector<8x128xf32>
    %cst_145 = arith.constant 5.000000e-01 : f32
    %291 = vector.broadcast %cst_145 : f32 to vector<8x128xf32>
    %292 = arith.mulf %291, %290 : vector<8x128xf32>
    %293 = math.tanh %292 : vector<8x128xf32>
    %cst_146 = arith.constant 5.000000e-01 : f32
    %294 = vector.broadcast %cst_146 : f32 to vector<8x128xf32>
    %295 = arith.mulf %294, %293 : vector<8x128xf32>
    %cst_147 = arith.constant 5.000000e-01 : f32
    %296 = vector.broadcast %cst_147 : f32 to vector<8x128xf32>
    %297 = arith.addf %295, %296 : vector<8x128xf32>
    %298 = vector.extract_strided_slice %281 {offsets = [0, 256], sizes = [8, 128], strides = [1, 1]} : vector<8x512xf32> to vector<8x128xf32>
    %299 = math.tanh %298 : vector<8x128xf32>
    %300 = vector.extract_strided_slice %281 {offsets = [0, 384], sizes = [8, 128], strides = [1, 1]} : vector<8x512xf32> to vector<8x128xf32>
    %cst_148 = arith.constant 5.000000e-01 : f32
    %301 = vector.broadcast %cst_148 : f32 to vector<8x128xf32>
    %302 = arith.mulf %301, %300 : vector<8x128xf32>
    %303 = math.tanh %302 : vector<8x128xf32>
    %cst_149 = arith.constant 5.000000e-01 : f32
    %304 = vector.broadcast %cst_149 : f32 to vector<8x128xf32>
    %305 = arith.mulf %304, %303 : vector<8x128xf32>
    %cst_150 = arith.constant 5.000000e-01 : f32
    %306 = vector.broadcast %cst_150 : f32 to vector<8x128xf32>
    %307 = arith.addf %305, %306 : vector<8x128xf32>
    %308 = arith.mulf %297, %276 : vector<8x128xf32>
    %309 = arith.mulf %289, %299 : vector<8x128xf32>
    %310 = arith.addf %308, %309 : vector<8x128xf32>
    %311 = math.tanh %310 : vector<8x128xf32>
    %312 = arith.mulf %307, %311 : vector<8x128xf32>
    %c0_151 = arith.constant 0 : index
    %c0_152 = arith.constant 0 : index
    %313 = vector.load %arg13[%c0_151, %c0_152] : memref<8x128xf32, #tpu.memory_space<vmem>>, vector<8x128xf32>
    tpu.vector_store %arg13[%c0_151, %c0_152], %312 {strides = array<i32>} : memref<8x128xf32, #tpu.memory_space<vmem>>, vector<8x128xf32>,
    %c0_153 = arith.constant 0 : index
    %c0_154 = arith.constant 0 : index
    %314 = vector.load %arg14[%c0_153, %c0_154] : memref<8x128xf32, #tpu.memory_space<vmem>>, vector<8x128xf32>
    tpu.vector_store %arg14[%c0_153, %c0_154], %310 {strides = array<i32>} : memref<8x128xf32, #tpu.memory_space<vmem>>, vector<8x128xf32>,
    %315 = arith.index_cast %c5_i32 : i32 to index
    %c0_155 = arith.constant 0 : index
    %c0_156 = arith.constant 0 : index
    %316 = vector.load %arg9[%315, %c0_155, %c0_156] : memref<8x8x128xf32, #tpu.memory_space<vmem>>, vector<1x8x128xf32>
    %317 = vector.shape_cast %316 : vector<1x8x128xf32> to vector<8x128xf32>
    %318 = vector.shape_cast %312 : vector<8x128xf32> to vector<1x8x128xf32>
    tpu.vector_store %arg9[%315, %c0_155, %c0_156], %318 {strides = array<i32>} : memref<8x8x128xf32, #tpu.memory_space<vmem>>, vector<1x8x128xf32>,
    %c6_i32 = arith.constant 6 : i32
    %319 = arith.index_cast %c6_i32 : i32 to index
    %c0_157 = arith.constant 0 : index
    %c0_158 = arith.constant 0 : index
    %320 = vector.load %arg3[%319, %c0_157, %c0_158] : memref<8x8x1xf32, #tpu.memory_space<vmem>>, vector<1x8x1xf32>
    %321 = vector.shape_cast %320 : vector<1x8x1xf32> to vector<8x1xf32>
    %c0_159 = arith.constant 0 : index
    %c0_160 = arith.constant 0 : index
    %322 = vector.load %arg13[%c0_159, %c0_160] : memref<8x128xf32, #tpu.memory_space<vmem>>, vector<8x128xf32>
    %323 = vector.broadcast %321 : vector<8x1xf32> to vector<8x128xf32>
    %324 = arith.mulf %322, %323 : vector<8x128xf32>
    %c0_161 = arith.constant 0 : index
    %c0_162 = arith.constant 0 : index
    %325 = vector.load %arg14[%c0_161, %c0_162] : memref<8x128xf32, #tpu.memory_space<vmem>>, vector<8x128xf32>
    %326 = vector.broadcast %321 : vector<8x1xf32> to vector<8x128xf32>
    %327 = arith.mulf %325, %326 : vector<8x128xf32>
    %328 = arith.index_cast %c6_i32 : i32 to index
    %c0_163 = arith.constant 0 : index
    %c0_164 = arith.constant 0 : index
    %329 = vector.load %arg12[%328, %c0_163, %c0_164] : memref<8x8x512xf32, #tpu.memory_space<vmem>>, vector<1x8x512xf32>
    %330 = vector.shape_cast %329 : vector<1x8x512xf32> to vector<8x512xf32>
    %cst_165 = arith.constant dense<0.000000e+00> : vector<8x512xf32>
    %331 = tpu.matmul %324, %4, %cst_165 {dimension_numbers = #tpu.dot_dimension_numbers<[1], [0], [0], [1], [0, 0, 1, 1], [], []>} : vector<8x128xf32>, vector<128x512xf32>, vector<8x512xf32> -> vector<8x512xf32>
    %332 = arith.addf %330, %331 : vector<8x512xf32>
    %333 = vector.extract_strided_slice %332 {offsets = [0, 0], sizes = [8, 128], strides = [1, 1]} : vector<8x512xf32> to vector<8x128xf32>
    %cst_166 = arith.constant 5.000000e-01 : f32
    %334 = vector.broadcast %cst_166 : f32 to vector<8x128xf32>
    %335 = arith.mulf %334, %333 : vector<8x128xf32>
    %336 = math.tanh %335 : vector<8x128xf32>
    %cst_167 = arith.constant 5.000000e-01 : f32
    %337 = vector.broadcast %cst_167 : f32 to vector<8x128xf32>
    %338 = arith.mulf %337, %336 : vector<8x128xf32>
    %cst_168 = arith.constant 5.000000e-01 : f32
    %339 = vector.broadcast %cst_168 : f32 to vector<8x128xf32>
    %340 = arith.addf %338, %339 : vector<8x128xf32>
    %341 = vector.extract_strided_slice %332 {offsets = [0, 128], sizes = [8, 128], strides = [1, 1]} : vector<8x512xf32> to vector<8x128xf32>
    %cst_169 = arith.constant 5.000000e-01 : f32
    %342 = vector.broadcast %cst_169 : f32 to vector<8x128xf32>
    %343 = arith.mulf %342, %341 : vector<8x128xf32>
    %344 = math.tanh %343 : vector<8x128xf32>
    %cst_170 = arith.constant 5.000000e-01 : f32
    %345 = vector.broadcast %cst_170 : f32 to vector<8x128xf32>
    %346 = arith.mulf %345, %344 : vector<8x128xf32>
    %cst_171 = arith.constant 5.000000e-01 : f32
    %347 = vector.broadcast %cst_171 : f32 to vector<8x128xf32>
    %348 = arith.addf %346, %347 : vector<8x128xf32>
    %349 = vector.extract_strided_slice %332 {offsets = [0, 256], sizes = [8, 128], strides = [1, 1]} : vector<8x512xf32> to vector<8x128xf32>
    %350 = math.tanh %349 : vector<8x128xf32>
    %351 = vector.extract_strided_slice %332 {offsets = [0, 384], sizes = [8, 128], strides = [1, 1]} : vector<8x512xf32> to vector<8x128xf32>
    %cst_172 = arith.constant 5.000000e-01 : f32
    %352 = vector.broadcast %cst_172 : f32 to vector<8x128xf32>
    %353 = arith.mulf %352, %351 : vector<8x128xf32>
    %354 = math.tanh %353 : vector<8x128xf32>
    %cst_173 = arith.constant 5.000000e-01 : f32
    %355 = vector.broadcast %cst_173 : f32 to vector<8x128xf32>
    %356 = arith.mulf %355, %354 : vector<8x128xf32>
    %cst_174 = arith.constant 5.000000e-01 : f32
    %357 = vector.broadcast %cst_174 : f32 to vector<8x128xf32>
    %358 = arith.addf %356, %357 : vector<8x128xf32>
    %359 = arith.mulf %348, %327 : vector<8x128xf32>
    %360 = arith.mulf %340, %350 : vector<8x128xf32>
    %361 = arith.addf %359, %360 : vector<8x128xf32>
    %362 = math.tanh %361 : vector<8x128xf32>
    %363 = arith.mulf %358, %362 : vector<8x128xf32>
    %c0_175 = arith.constant 0 : index
    %c0_176 = arith.constant 0 : index
    %364 = vector.load %arg13[%c0_175, %c0_176] : memref<8x128xf32, #tpu.memory_space<vmem>>, vector<8x128xf32>
    tpu.vector_store %arg13[%c0_175, %c0_176], %363 {strides = array<i32>} : memref<8x128xf32, #tpu.memory_space<vmem>>, vector<8x128xf32>,
    %c0_177 = arith.constant 0 : index
    %c0_178 = arith.constant 0 : index
    %365 = vector.load %arg14[%c0_177, %c0_178] : memref<8x128xf32, #tpu.memory_space<vmem>>, vector<8x128xf32>
    tpu.vector_store %arg14[%c0_177, %c0_178], %361 {strides = array<i32>} : memref<8x128xf32, #tpu.memory_space<vmem>>, vector<8x128xf32>,
    %366 = arith.index_cast %c6_i32 : i32 to index
    %c0_179 = arith.constant 0 : index
    %c0_180 = arith.constant 0 : index
    %367 = vector.load %arg9[%366, %c0_179, %c0_180] : memref<8x8x128xf32, #tpu.memory_space<vmem>>, vector<1x8x128xf32>
    %368 = vector.shape_cast %367 : vector<1x8x128xf32> to vector<8x128xf32>
    %369 = vector.shape_cast %363 : vector<8x128xf32> to vector<1x8x128xf32>
    tpu.vector_store %arg9[%366, %c0_179, %c0_180], %369 {strides = array<i32>} : memref<8x8x128xf32, #tpu.memory_space<vmem>>, vector<1x8x128xf32>,
    %c7_i32 = arith.constant 7 : i32
    %370 = arith.index_cast %c7_i32 : i32 to index
    %c0_181 = arith.constant 0 : index
    %c0_182 = arith.constant 0 : index
    %371 = vector.load %arg3[%370, %c0_181, %c0_182] : memref<8x8x1xf32, #tpu.memory_space<vmem>>, vector<1x8x1xf32>
    %372 = vector.shape_cast %371 : vector<1x8x1xf32> to vector<8x1xf32>
    %c0_183 = arith.constant 0 : index
    %c0_184 = arith.constant 0 : index
    %373 = vector.load %arg13[%c0_183, %c0_184] : memref<8x128xf32, #tpu.memory_space<vmem>>, vector<8x128xf32>
    %374 = vector.broadcast %372 : vector<8x1xf32> to vector<8x128xf32>
    %375 = arith.mulf %373, %374 : vector<8x128xf32>
    %c0_185 = arith.constant 0 : index
    %c0_186 = arith.constant 0 : index
    %376 = vector.load %arg14[%c0_185, %c0_186] : memref<8x128xf32, #tpu.memory_space<vmem>>, vector<8x128xf32>
    %377 = vector.broadcast %372 : vector<8x1xf32> to vector<8x128xf32>
    %378 = arith.mulf %376, %377 : vector<8x128xf32>
    %379 = arith.index_cast %c7_i32 : i32 to index
    %c0_187 = arith.constant 0 : index
    %c0_188 = arith.constant 0 : index
    %380 = vector.load %arg12[%379, %c0_187, %c0_188] : memref<8x8x512xf32, #tpu.memory_space<vmem>>, vector<1x8x512xf32>
    %381 = vector.shape_cast %380 : vector<1x8x512xf32> to vector<8x512xf32>
    %cst_189 = arith.constant dense<0.000000e+00> : vector<8x512xf32>
    %382 = tpu.matmul %375, %4, %cst_189 {dimension_numbers = #tpu.dot_dimension_numbers<[1], [0], [0], [1], [0, 0, 1, 1], [], []>} : vector<8x128xf32>, vector<128x512xf32>, vector<8x512xf32> -> vector<8x512xf32>
    %383 = arith.addf %381, %382 : vector<8x512xf32>
    %384 = vector.extract_strided_slice %383 {offsets = [0, 0], sizes = [8, 128], strides = [1, 1]} : vector<8x512xf32> to vector<8x128xf32>
    %cst_190 = arith.constant 5.000000e-01 : f32
    %385 = vector.broadcast %cst_190 : f32 to vector<8x128xf32>
    %386 = arith.mulf %385, %384 : vector<8x128xf32>
    %387 = math.tanh %386 : vector<8x128xf32>
    %cst_191 = arith.constant 5.000000e-01 : f32
    %388 = vector.broadcast %cst_191 : f32 to vector<8x128xf32>
    %389 = arith.mulf %388, %387 : vector<8x128xf32>
    %cst_192 = arith.constant 5.000000e-01 : f32
    %390 = vector.broadcast %cst_192 : f32 to vector<8x128xf32>
    %391 = arith.addf %389, %390 : vector<8x128xf32>
    %392 = vector.extract_strided_slice %383 {offsets = [0, 128], sizes = [8, 128], strides = [1, 1]} : vector<8x512xf32> to vector<8x128xf32>
    %cst_193 = arith.constant 5.000000e-01 : f32
    %393 = vector.broadcast %cst_193 : f32 to vector<8x128xf32>
    %394 = arith.mulf %393, %392 : vector<8x128xf32>
    %395 = math.tanh %394 : vector<8x128xf32>
    %cst_194 = arith.constant 5.000000e-01 : f32
    %396 = vector.broadcast %cst_194 : f32 to vector<8x128xf32>
    %397 = arith.mulf %396, %395 : vector<8x128xf32>
    %cst_195 = arith.constant 5.000000e-01 : f32
    %398 = vector.broadcast %cst_195 : f32 to vector<8x128xf32>
    %399 = arith.addf %397, %398 : vector<8x128xf32>
    %400 = vector.extract_strided_slice %383 {offsets = [0, 256], sizes = [8, 128], strides = [1, 1]} : vector<8x512xf32> to vector<8x128xf32>
    %401 = math.tanh %400 : vector<8x128xf32>
    %402 = vector.extract_strided_slice %383 {offsets = [0, 384], sizes = [8, 128], strides = [1, 1]} : vector<8x512xf32> to vector<8x128xf32>
    %cst_196 = arith.constant 5.000000e-01 : f32
    %403 = vector.broadcast %cst_196 : f32 to vector<8x128xf32>
    %404 = arith.mulf %403, %402 : vector<8x128xf32>
    %405 = math.tanh %404 : vector<8x128xf32>
    %cst_197 = arith.constant 5.000000e-01 : f32
    %406 = vector.broadcast %cst_197 : f32 to vector<8x128xf32>
    %407 = arith.mulf %406, %405 : vector<8x128xf32>
    %cst_198 = arith.constant 5.000000e-01 : f32
    %408 = vector.broadcast %cst_198 : f32 to vector<8x128xf32>
    %409 = arith.addf %407, %408 : vector<8x128xf32>
    %410 = arith.mulf %399, %378 : vector<8x128xf32>
    %411 = arith.mulf %391, %401 : vector<8x128xf32>
    %412 = arith.addf %410, %411 : vector<8x128xf32>
    %413 = math.tanh %412 : vector<8x128xf32>
    %414 = arith.mulf %409, %413 : vector<8x128xf32>
    %c0_199 = arith.constant 0 : index
    %c0_200 = arith.constant 0 : index
    %415 = vector.load %arg13[%c0_199, %c0_200] : memref<8x128xf32, #tpu.memory_space<vmem>>, vector<8x128xf32>
    tpu.vector_store %arg13[%c0_199, %c0_200], %414 {strides = array<i32>} : memref<8x128xf32, #tpu.memory_space<vmem>>, vector<8x128xf32>,
    %c0_201 = arith.constant 0 : index
    %c0_202 = arith.constant 0 : index
    %416 = vector.load %arg14[%c0_201, %c0_202] : memref<8x128xf32, #tpu.memory_space<vmem>>, vector<8x128xf32>
    tpu.vector_store %arg14[%c0_201, %c0_202], %412 {strides = array<i32>} : memref<8x128xf32, #tpu.memory_space<vmem>>, vector<8x128xf32>,
    %417 = arith.index_cast %c7_i32 : i32 to index
    %c0_203 = arith.constant 0 : index
    %c0_204 = arith.constant 0 : index
    %418 = vector.load %arg9[%417, %c0_203, %c0_204] : memref<8x8x128xf32, #tpu.memory_space<vmem>>, vector<1x8x128xf32>
    %419 = vector.shape_cast %418 : vector<1x8x128xf32> to vector<8x128xf32>
    %420 = vector.shape_cast %414 : vector<8x128xf32> to vector<1x8x128xf32>
    tpu.vector_store %arg9[%417, %c0_203, %c0_204], %420 {strides = array<i32>} : memref<8x8x128xf32, #tpu.memory_space<vmem>>, vector<1x8x128xf32>,
    %c8_i32 = arith.constant 8 : i32
    %c0_i32_205 = arith.constant 0 : i32
    %421 = arith.cmpi eq, %arg1, %c0_i32_205 : i32
    %422 = arith.extui %421 : i1 to i32
    %c0_i32_206 = arith.constant 0 : i32
    %423 = arith.cmpi ne, %422, %c0_i32_206 : i32
    scf.if %423 {
      %c0_207 = arith.constant 0 : index
      %c0_208 = arith.constant 0 : index
      %424 = vector.load %arg13[%c0_207, %c0_208] : memref<8x128xf32, #tpu.memory_space<vmem>>, vector<8x128xf32>
      %c0_209 = arith.constant 0 : index
      %c0_210 = arith.constant 0 : index
      %425 = vector.load %arg10[%c0_209, %c0_210] : memref<8x128xf32, #tpu.memory_space<vmem>>, vector<8x128xf32>
      tpu.vector_store %arg10[%c0_209, %c0_210], %424 {strides = array<i32>} : memref<8x128xf32, #tpu.memory_space<vmem>>, vector<8x128xf32>,
      %c0_211 = arith.constant 0 : index
      %c0_212 = arith.constant 0 : index
      %426 = vector.load %arg14[%c0_211, %c0_212] : memref<8x128xf32, #tpu.memory_space<vmem>>, vector<8x128xf32>
      %c0_213 = arith.constant 0 : index
      %c0_214 = arith.constant 0 : index
      %427 = vector.load %arg11[%c0_213, %c0_214] : memref<8x128xf32, #tpu.memory_space<vmem>>, vector<8x128xf32>
      tpu.vector_store %arg11[%c0_213, %c0_214], %426 {strides = array<i32>} : memref<8x128xf32, #tpu.memory_space<vmem>>, vector<8x128xf32>,
    } else {
    }
    return
  }
  func.func @transform_0(%arg0: i32, %arg1: i32) -> (i32, i32, i32) {
    %c0_i32 = arith.constant 0 : i32
    %c0_i32_0 = arith.constant 0 : i32
    return %arg1, %arg0, %c0_i32 : i32, i32, i32
  }
  func.func @transform_1(%arg0: i32, %arg1: i32) -> (i32, i32, i32) {
    %c0_i32 = arith.constant 0 : i32
    %c0_i32_0 = arith.constant 0 : i32
    return %arg1, %arg0, %c0_i32 : i32, i32, i32
  }
  func.func @transform_2(%arg0: i32, %arg1: i32) -> (i32, i32) {
    %c0_i32 = arith.constant 0 : i32
    %c0_i32_0 = arith.constant 0 : i32
    return %arg0, %c0_i32 : i32, i32
  }
  func.func @transform_3(%arg0: i32, %arg1: i32) -> (i32, i32) {
    %c0_i32 = arith.constant 0 : i32
    %c0_i32_0 = arith.constant 0 : i32
    return %arg0, %c0_i32 : i32, i32
  }
  func.func @transform_4(%arg0: i32, %arg1: i32) -> (i32, i32) {
    %c0_i32 = arith.constant 0 : i32
    %c0_i32_0 = arith.constant 0 : i32
    %c0_i32_1 = arith.constant 0 : i32
    return %c0_i32, %c0_i32_0 : i32, i32
  }
  func.func @transform_5(%arg0: i32, %arg1: i32) -> (i32, i32) {
    %c0_i32 = arith.constant 0 : i32
    %c0_i32_0 = arith.constant 0 : i32
    %c0_i32_1 = arith.constant 0 : i32
    return %c0_i32, %c0_i32_0 : i32, i32
  }
  func.func @transform_6(%arg0: i32, %arg1: i32) -> (i32, i32) {
    %c0_i32 = arith.constant 0 : i32
    %c0_i32_0 = arith.constant 0 : i32
    %c0_i32_1 = arith.constant 0 : i32
    return %c0_i32, %c0_i32_0 : i32, i32
  }
  func.func @transform_7(%arg0: i32, %arg1: i32) -> (i32, i32, i32) {
    %c0_i32 = arith.constant 0 : i32
    %c0_i32_0 = arith.constant 0 : i32
    return %arg1, %arg0, %c0_i32 : i32, i32, i32
  }
  func.func @transform_8(%arg0: i32, %arg1: i32) -> (i32, i32) {
    %c0_i32 = arith.constant 0 : i32
    %c0_i32_0 = arith.constant 0 : i32
    return %arg0, %c0_i32 : i32, i32
  }
  func.func @transform_9(%arg0: i32, %arg1: i32) -> (i32, i32) {
    %c0_i32 = arith.constant 0 : i32
    %c0_i32_0 = arith.constant 0 : i32
    return %arg0, %c0_i32 : i32, i32
  }
}

</mosaic_0001>

<bundles_post_ra>
// kernel: tpu_custom_call.1
= control target key start
LH: loop header
LB: loop body
LE: loop exit
PB: predicated region body
PF: predicated region fallthrough
CT: control target
= control target key end

     0   :  { %15 = vsyncpa [#allocation6], 0  ;;  %s3685_s0 = inlined_call_operand.hbm [shape: f32[8,8,128], index: 0, kind: input, shape index: {}]   ;;  %s3686_s1 = inlined_call_operand.hbm [shape: f32[8,8,1], index: 1, kind: input, shape index: {}]   ;;  %s3687_s2 = inlined_call_operand.hbm [shape: f32[8,128], index: 2, kind: input, shape index: {}]   ;;  %s3688_s3 = inlined_call_operand.hbm [shape: f32[8,128], index: 3, kind: input, shape index: {}]   ;;  %s3689_s4 = inlined_call_operand.hbm [shape: f32[128,512], index: 4, kind: input, shape index: {}]   ;;  %s3690_s5 = inlined_call_operand.hbm [shape: f32[128,512], index: 5, kind: input, shape index: {}]   ;;  %s3691_s6 = inlined_call_operand.hbm [shape: f32[1,512], index: 6, kind: input, shape index: {}]   ;;  %s3692_s7 = inlined_call_operand.hbm [shape: f32[8,8,128], index: 7, kind: output, shape index: {0}]   ;;  %s3693_s8 = inlined_call_operand.hbm [shape: f32[8,128], index: 8, kind: output, shape index: {1}]   ;;  %s3694_s9 = inlined_call_operand.hbm [shape: f32[8,128], index: 9, kind: output, shape index: {2}]  }
   0x1   :  { %16 = vsyncpa [#allocation9], 0 }
   0x2   :  { %17 = vsyncpa [#allocation12], 0 }
   0x3   :  { %18 = vsyncpa [#allocation15], 0 }
   0x4   :  { %19 = vsyncpa [#allocation7], 0 }
   0x5   :  { %20 = vsyncpa [#allocation19], 0  ;;  %s3037_s30 = smov [#allocation8]   ;;  %s3038_s11 = smov [#allocation11]  }
   0x6   :  { %s38_s10 = sshll.u32 %s3037_s30, 4  ;;  %s61_s12 = sshll.u32 %s3038_s11, 4  ;;  %s39_s10 = int_to_ptr.vmem [resolvable:$true] %s38_s10  ;;  %s62_s12 = int_to_ptr.vmem [resolvable:$true] %s61_s12 }
   0x7   :  { %s2805_s15 = scalar_lea.hbm %s3686_s1, 1024 }
   0x8   :  { %p2806_p0 = scmp.ne.s32.totalorder %s3686_s1, %s2805_s15  ;;  %p2809_p1 = scmp.lt.u32.totalorder %s2805_s15, %s3686_s1 }
   0xa   :  { %p2811_p2 = pnand %p2809_p1, %p2806_p0 }
   0xc   :  { %2814 = shalt.err (!%p2811_p2)
}
   0xd   :  { %s2815_s20 = scalar_lea.vmem %s39_s10, 1024  ;;  %p2820_p4 = scmp.lt.s32.totalorder %s39_s10, %s39_s10 }
   0xe   :  { %p2816_p3 = scmp.ne.s32.totalorder %s39_s10, %s2815_s20  ;;  %p2821_p5 = scmp.lt.s32.totalorder %s2815_s20, %s2815_s20 }
  0x10   :  { %p2822_p6 = por %p2821_p5, %p2820_p4 }
  0x12   :  { %p2823_p7 = pnand %p2822_p6, %p2816_p3 }
  0x14   :  { %2826 = shalt.err (!%p2823_p7)
}
  0x15   :  { %s3039_s21 = smov 128   ;;  %s3040_s22 = smov 8  }
  0x16   :  { %44 = dma.hbm_to_vmem [thread:$0]  %s3686_s1, 1024, %s39_s10, [#allocation9], %s3039_s21, %s3039_s21, %s3040_s22  }
  0x17   :  { %s2827_s27 = scalar_lea.hbm %s3688_s3, 128 }
  0x18   :  { %p2828_p8 = scmp.ne.s32.totalorder %s3688_s3, %s2827_s27  ;;  %p2831_p9 = scmp.lt.u32.totalorder %s2827_s27, %s3688_s3 }
  0x1a   :  { %p2833_p10 = pnand %p2831_p9, %p2828_p8 }
  0x1c   :  { %2836 = shalt.err (!%p2833_p10)
}
  0x1d   :  { %s2837_s13 = scalar_lea.vmem %s62_s12, 128  ;;  %p2842_p12 = scmp.lt.s32.totalorder %s62_s12, %s62_s12 }
  0x1e   :  { %p2838_p11 = scmp.ne.s32.totalorder %s62_s12, %s2837_s13  ;;  %p2843_p13 = scmp.lt.s32.totalorder %s2837_s13, %s2837_s13 }
  0x20   :  { %p2844_p0 = por %p2843_p13, %p2842_p12 }
  0x22   :  { %p2845_p1 = pnand %p2844_p0, %p2838_p11 }
  0x24   :  { %2848 = shalt.err (!%p2845_p1)
}
  0x25   :  { %64 = dma.hbm_to_vmem [thread:$0]  %s3688_s3, 128, %s62_s12, [#allocation12]  }
  0x26   :  { %s3041_s14 = smov [#allocation14]   ;;  %s3042_s16 = smov [#allocation5]  }
  0x27   :  { %s82_s15 = sshll.u32 %s3041_s14, 4  ;;  %s26_s17 = sshll.u32 %s3042_s16, 4  ;;  %s83_s15 = int_to_ptr.vmem [resolvable:$true] %s82_s15  ;;  %s3130_s17 = int_to_ptr.vmem [resolvable:$true] %s26_s17 }
  0x28   :  { %s2849_s20 = scalar_lea.hbm %s3690_s5, 8192 }
  0x29   :  { %p2850_p2 = scmp.ne.s32.totalorder %s3690_s5, %s2849_s20  ;;  %p2853_p3 = scmp.lt.u32.totalorder %s2849_s20, %s3690_s5 }
  0x2b   :  { %p2855_p4 = pnand %p2853_p3, %p2850_p2 }
  0x2d   :  { %2858 = shalt.err (!%p2855_p4)
}
  0x2e   :  { %s2859_s3 = scalar_lea.vmem %s83_s15, 8192  ;;  %p2864_p6 = scmp.lt.s32.totalorder %s83_s15, %s83_s15 }
  0x2f   :  { %p2860_p5 = scmp.ne.s32.totalorder %s83_s15, %s2859_s3  ;;  %p2865_p7 = scmp.lt.s32.totalorder %s2859_s3, %s2859_s3 }
  0x31   :  { %p2866_p8 = por %p2865_p7, %p2864_p6 }
  0x33   :  { %p2867_p9 = pnand %p2866_p8, %p2860_p5 }
  0x35   :  { %2870 = shalt.err (!%p2867_p9)
}
  0x36   :  { %s3043_s12 = smov 512   ;;  %s3044_s27 = smov 32  }
  0x37   :  { %88 = dma.hbm_to_vmem [thread:$0]  %s3690_s5, 8192, %s83_s15, [#allocation15], %s3043_s12, %s3043_s12, %s3044_s27  }
  0x38   :  { %s2871_s13 = scalar_lea.hbm %s3685_s0, 1024 }
  0x39   :  { %p2872_p10 = scmp.ne.s32.totalorder %s3685_s0, %s2871_s13  ;;  %p2875_p11 = scmp.lt.u32.totalorder %s2871_s13, %s3685_s0 }
  0x3b   :  { %p2877_p12 = pnand %p2875_p11, %p2872_p10 }
  0x3d   :  { %2880 = shalt.err (!%p2877_p12)
}
  0x3e   :  { %s2881_s18 = scalar_lea.vmem %s3130_s17, 1024  ;;  %p2886_p0 = scmp.lt.s32.totalorder %s3130_s17, %s3130_s17 }
  0x3f   :  { %p2882_p13 = scmp.ne.s32.totalorder %s3130_s17, %s2881_s18  ;;  %p2887_p1 = scmp.lt.s32.totalorder %s2881_s18, %s2881_s18 }
  0x41   :  { %p2888_p2 = por %p2887_p1, %p2886_p0 }
  0x43   :  { %p2889_p3 = pnand %p2888_p2, %p2882_p13 }
  0x45   :  { %2892 = shalt.err (!%p2889_p3)
}
  0x46   :  { %32 = dma.hbm_to_vmem [thread:$0]  %s3685_s0, 1024, %s3130_s17, [#allocation6], %s3039_s21, %s3039_s21, %s3040_s22  }
  0x47   :  { %s3045_s19 = smov [#allocation10]   ;;  %s3046_s23 = smov [#allocation13]  }
  0x48   :  { %s51_s20 = sshll.u32 %s3045_s19, 4  ;;  %s70_s24 = sshll.u32 %s3046_s23, 4  ;;  %s52_s20 = int_to_ptr.vmem [resolvable:$true] %s51_s20  ;;  %s3167_s24 = int_to_ptr.vmem [resolvable:$true] %s70_s24 }
  0x49   :  { %s2893_s3 = scalar_lea.hbm %s3687_s2, 128 }
  0x4a   :  { %p2894_p4 = scmp.ne.s32.totalorder %s3687_s2, %s2893_s3  ;;  %p2897_p5 = scmp.lt.u32.totalorder %s2893_s3, %s3687_s2 }
  0x4c   :  { %p2899_p6 = pnand %p2897_p5, %p2894_p4 }
  0x4e   :  { %2902 = shalt.err (!%p2899_p6)
}
  0x4f   :  { %s2903_s0 = scalar_lea.vmem %s52_s20, 128  ;;  %p2908_p8 = scmp.lt.s32.totalorder %s52_s20, %s52_s20 }
  0x50   :  { %p2904_p7 = scmp.ne.s32.totalorder %s52_s20, %s2903_s0  ;;  %p2909_p9 = scmp.lt.s32.totalorder %s2903_s0, %s2903_s0 }
  0x52   :  { %p2910_p10 = por %p2909_p9, %p2908_p8 }
  0x54   :  { %p2911_p11 = pnand %p2910_p10, %p2904_p7 }
  0x56   :  { %2914 = shalt.err (!%p2911_p11)
}
  0x57   :  { %54 = dma.hbm_to_vmem [thread:$0]  %s3687_s2, 128, %s52_s20, [#allocation9]  }
  0x58   :  { %s2915_s14 = scalar_lea.hbm %s3689_s4, 8192 }
  0x59   :  { %p2916_p12 = scmp.ne.s32.totalorder %s3689_s4, %s2915_s14  ;;  %p2919_p13 = scmp.lt.u32.totalorder %s2915_s14, %s3689_s4 }
  0x5b   :  { %p2921_p0 = pnand %p2919_p13, %p2916_p12 }
  0x5d   :  { %2924 = shalt.err (!%p2921_p0)
}
  0x5e   :  { %s2925_s19 = scalar_lea.vmem %s3167_s24, 8192  ;;  %p2930_p2 = scmp.lt.s32.totalorder %s3167_s24, %s3167_s24 }
  0x5f   :  { %p2926_p1 = scmp.ne.s32.totalorder %s3167_s24, %s2925_s19  ;;  %p2931_p3 = scmp.lt.s32.totalorder %s2925_s19, %s2925_s19 }
  0x61   :  { %p2932_p4 = por %p2931_p3, %p2930_p2 }
  0x63   :  { %p2933_p5 = pnand %p2932_p4, %p2926_p1 }
  0x65   :  { %2936 = shalt.err (!%p2933_p5)
}
  0x66   :  { %76 = dma.hbm_to_vmem [thread:$0]  %s3689_s4, 8192, %s3167_s24, [#allocation12], %s3043_s12, %s3043_s12, %s3044_s27  }
  0x67   :  { %s3047_s23 = smov [#allocation16]   ;;  %s2937_s28 = scalar_lea.hbm %s3691_s6, 64 }
  0x68   :  { %s95_s25 = sshll.u32 %s3047_s23, 4  ;;  %p2938_p6 = scmp.ne.s32.totalorder %s3691_s6, %s2937_s28  ;;  %s96_s25 = int_to_ptr.vmem [resolvable:$true] %s95_s25 }
  0x69   :  { %p2941_p7 = scmp.lt.u32.totalorder %s2937_s28, %s3691_s6 }
  0x6b   :  { %p2943_p8 = pnand %p2941_p7, %p2938_p6 }
  0x6d   :  { %2946 = shalt.err (!%p2943_p8)
}
  0x6e   :  { %s2947_s17 = scalar_lea.vmem %s96_s25, 64  ;;  %p2952_p10 = scmp.lt.s32.totalorder %s96_s25, %s96_s25 }
  0x6f   :  { %p2948_p9 = scmp.ne.s32.totalorder %s96_s25, %s2947_s17  ;;  %p2953_p11 = scmp.lt.s32.totalorder %s2947_s17, %s2947_s17 }
  0x71   :  { %p2954_p12 = por %p2953_p11, %p2952_p10 }
  0x73   :  { %p2955_p13 = pnand %p2954_p12, %p2948_p9 }
  0x75   :  { %2958 = shalt.err (!%p2955_p13)
}
  0x76   :  { %98 = dma.hbm_to_vmem [thread:$0]  %s3691_s6, 64, %s96_s25, [#allocation15]  }
  0x77   :  { %3025 = dma.done.wait [#allocation6], 1024  }
  0x78   :  { %3026 = vsyncadd [#allocation6], 4294966272 }
  0x79   :  { %3027 = dma.done.wait [#allocation9], 1152  }
  0x7a   :  { %3028 = vsyncadd [#allocation9], 4294966144 }
  0x7b   :  { %3029 = dma.done.wait [#allocation12], 8320  }
  0x7c   :  { %3030 = vsyncadd [#allocation12], 4294958976 }
  0x7d   :  { %3031 = dma.done.wait [#allocation15], 8256  }
  0x7e   :  { %3032 = vsyncadd [#allocation15], 4294959040  ;;  %v3048_v0 = vmov 0   ;;  %v3049_v1 = vmov 0.0   ;;  %v544_v2 = vld [vmem:[#allocation8] sm:$0xff]  ;;  %v726_v3 = vld [vmem:[#allocation8 + $0x8] sm:$0xff] }
  0x7f   :  { %2723 = vset.pattern.permute.xlu0 %v3048_v0  ;;  %350 = vmatprep.mubr.f32.mxu0 %v3049_v1  ;;  %v129_v4 = vld [vmem:[#allocation13 + $0x8] sm:$0xff]  ;;  %v128_v7 = vld [vmem:[#allocation13] sm:$0xff]  ;;  %v131_v9 = vld [vmem:[#allocation13 + $0x18] sm:$0xff]  ;;  %s3050_s6 = smov [#allocation18]   ;;  %s3051_s24 = smov [#allocation17]  }
  0x80   :  { %463 = vmatprep.mubr.f32.mxu1 %v3049_v1  ;;  %2724 = vset.pattern.permute.xlu1 %v3048_v0  ;;  %v133_v5 = vld [vmem:[#allocation13 + $0x28] sm:$0xff]  ;;  %v132_v8 = vld [vmem:[#allocation13 + $0x20] sm:$0xff]  ;;  %v135_v11 = vld [vmem:[#allocation13 + $0x38] sm:$0xff]  ;;  %s2038_s27 = sshll.u32 %s3050_s6, 4  ;;  %s2025_s13 = sshll.u32 %s3051_s24, 4  ;;  %s2039_s27 = int_to_ptr.vmem [resolvable:$true] %s2038_s27  ;;  %s3632_s13 = int_to_ptr.vmem [resolvable:$true] %s2025_s13 }
  0x81   :  { %548 = vperm.xlu0 %2723, %v544_v2   ;;  %v2067_v6 = vpack.c.bf16 %v133_v5, %v129_v4  ;;  %v2069_v10 = vpack.c.bf16 %v132_v8, %v128_v7  ;;  %v130_v12 = vld [vmem:[#allocation13 + $0x10] sm:$0xff]  ;;  %v2099_v15 = vpack.c.bf16 %v135_v11, %v131_v9  ;;  %v137_v17 = vld [vmem:[#allocation13 + $0x48] sm:$0xff]  ;;  %v136_v19 = vld [vmem:[#allocation13 + $0x40] sm:$0xff]  ;;  %s3052_s1 = smov [#allocation20]   ;;  %s2959_s14 = scalar_lea.vmem %s2039_s27, 128 }
  0x82   :  { %v134_v13 = vld [vmem:[#allocation13 + $0x30] sm:$0xff]  ;;  %v141_v18 = vld [vmem:[#allocation13 + $0x68] sm:$0xff]  ;;  %v140_v21 = vld [vmem:[#allocation13 + $0x60] sm:$0xff]  ;;  %s2048_s10 = sshll.u32 %s3052_s1, 4  ;;  %p2960_p0 = scmp.ne.s32.totalorder %s2039_s27, %s2959_s14  ;;  %s3634_s10 = int_to_ptr.vmem [resolvable:$true] %s2048_s10 }
  0x83   :  { %v1278_v14 = vld [vmem:[#allocation8 + $0x20] sm:$0xff]  ;;  %2068 = vmatprep.subr.bf16.mxu0 %v2067_v6  ;;  %v2101_v16 = vpack.c.bf16 %v134_v13, %v130_v12  ;;  %v2071_v20 = vpack.c.bf16 %v141_v18, %v137_v17  ;;  %v139_v22 = vld [vmem:[#allocation13 + $0x58] sm:$0xff]  ;;  %2100 = vmatprep.subr.bf16.mxu1 %v2099_v15  ;;  %v2073_v24 = vpack.c.bf16 %v140_v21, %v136_v19  ;;  %v145_v28 = vld [vmem:[#allocation13 + $0x88] sm:$0xff]  ;;  %p2964_p1 = scmp.lt.s32.totalorder %s2039_s27, %s2039_s27  ;;  %p2965_p2 = scmp.lt.s32.totalorder %s2959_s14, %s2959_s14 }
  0x84   :  { %2070 = vmatpush1.bf16.msra.mxu0 %v2069_v10  ;;  %v143_v23 = vld [vmem:[#allocation13 + $0x78] sm:$0xff]  ;;  %v138_v26 = vld [vmem:[#allocation13 + $0x50] sm:$0xff]  ;;  %v149_v30 = vld [vmem:[#allocation13 + $0xa8] sm:$0xff] }
  0x85   :  { %730 = vperm.xlu0 %2723, %v726_v3   ;;  %v2103_v25 = vpack.c.bf16 %v143_v23, %v139_v22  ;;  %v142_v27 = vld [vmem:[#allocation13 + $0x70] sm:$0xff]  ;;  %2102 = vmatpush1.bf16.msra.mxu1 %v2101_v16  ;;  %v144_v31 = vld [vmem:[#allocation13 + $0x80] sm:$0xff]  ;;  %v2075_v34 = vpack.c.bf16 %v149_v30, %v145_v28  ;;  %v147_v35 = vld [vmem:[#allocation13 + $0x98] sm:$0xff]  ;;  %p2966_p3 = por %p2965_p2, %p2964_p1 }
  0x86   :  { %2072 = vmatprep.subr.bf16.mxu0 %v2071_v20  ;;  %v2105_v29 = vpack.c.bf16 %v142_v27, %v138_v26  ;;  %v148_v32 = vld [vmem:[#allocation13 + $0xa0] sm:$0xff]  ;;  %v151_v36 = vld [vmem:[#allocation13 + $0xb8] sm:$0xff]  ;;  %v146_v37 = vld [vmem:[#allocation13 + $0x90] sm:$0xff] }
  0x87   :  { %v1646_v33 = vld [vmem:[#allocation8 + $0x30] sm:$0xff]  ;;  %2104 = vmatprep.subr.bf16.mxu1 %v2103_v25  ;;  %v2077_v38 = vpack.c.bf16 %v148_v32, %v144_v31  ;;  %v2107_v39 = vpack.c.bf16 %v151_v36, %v147_v35  ;;  %v150_v40 = vld [vmem:[#allocation13 + $0xb0] sm:$0xff]  ;;  %v153_v41 = vld [vmem:[#allocation13 + $0xc8] sm:$0xff]  ;;  %p2967_p4 = pnand %p2966_p3, %p2960_p0 }
  0x88   :  { %2074 = vmatpush1.bf16.msra.mxu0 %v2073_v24  ;;  %v157_v42 = vld [vmem:[#allocation13 + $0xe8] sm:$0xff]  ;;  %v152_v44 = vld [vmem:[#allocation13 + $0xc0] sm:$0xff]  ;;  %v155_v46 = vld [vmem:[#allocation13 + $0xd8] sm:$0xff]  ;;  %v2109_v47 = vpack.c.bf16 %v150_v40, %v146_v37 }
  0x89   :  { %1282 = vperm.xlu0 %2723, %v1278_v14   ;;  %2076 = vmatprep.subr.bf16.mxu0 %v2075_v34  ;;  %v2079_v43 = vpack.c.bf16 %v157_v42, %v153_v41  ;;  %v156_v45 = vld [vmem:[#allocation13 + $0xe0] sm:$0xff]  ;;  %v159_v48 = vld [vmem:[#allocation13 + $0xf8] sm:$0xff]  ;;  %v154_v49 = vld [vmem:[#allocation13 + $0xd0] sm:$0xff] }
  0x8a   :  { %2106 = vmatpush1.bf16.msra.mxu1 %v2105_v29  ;;  %v2111_v50 = vpack.c.bf16 %v159_v48, %v155_v46  ;;  %v158_v51 = vld [vmem:[#allocation13 + $0xf0] sm:$0xff]  ;;  %v161_v52 = vld [vmem:[#allocation13 + $0x108] sm:$0xff]  ;;  %v2081_v54 = vpack.c.bf16 %v156_v45, %v152_v44  ;;  %v163_v55 = vld [vmem:[#allocation13 + $0x118] sm:$0xff] }
  0x8b   :  { %2108 = vmatprep.subr.bf16.mxu1 %v2107_v39  ;;  %v165_v53 = vld [vmem:[#allocation13 + $0x128] sm:$0xff]  ;;  %v167_v56 = vld [vmem:[#allocation13 + $0x138] sm:$0xff]  ;;  %v160_v58 = vld [vmem:[#allocation13 + $0x100] sm:$0xff]  ;;  %v2113_v60 = vpack.c.bf16 %v158_v51, %v154_v49 }
  0x8c   :  { %2078 = vmatpush1.bf16.msra.mxu0 %v2077_v38  ;;  %v2083_v57 = vpack.c.bf16 %v165_v53, %v161_v52  ;;  %v164_v59 = vld [vmem:[#allocation13 + $0x120] sm:$0xff]  ;;  %v169_v61 = vld [vmem:[#allocation13 + $0x148] sm:$0xff]  ;;  %v2115_v63 = vpack.c.bf16 %v167_v56, %v163_v55  ;;  %v162_v0 = vld [vmem:[#allocation13 + $0x110] sm:$0xff] }
  0x8d   :  { %1650 = vperm.xlu0 %2723, %v1646_v33   ;;  %2080 = vmatprep.subr.bf16.mxu0 %v2079_v43  ;;  %v173_v62 = vld [vmem:[#allocation13 + $0x168] sm:$0xff]  ;;  %v166_v2 = vld [vmem:[#allocation13 + $0x130] sm:$0xff]  ;;  %v2085_v3 = vpack.c.bf16 %v164_v59, %v160_v58  ;;  %v171_v4 = vld [vmem:[#allocation13 + $0x158] sm:$0xff] }
  0x8e   :  { %2110 = vmatpush1.bf16.msra.mxu1 %v2109_v47  ;;  %v175_v5 = vld [vmem:[#allocation13 + $0x178] sm:$0xff]  ;;  %v2087_v6 = vpack.c.bf16 %v173_v62, %v169_v61  ;;  %v168_v7 = vld [vmem:[#allocation13 + $0x140] sm:$0xff]  ;;  %v2117_v9 = vpack.c.bf16 %v166_v2, %v162_v0  ;;  %v177_v10 = vld [vmem:[#allocation13 + $0x188] sm:$0xff] }
  0x8f   :  { %2112 = vmatprep.subr.bf16.mxu1 %v2111_v50  ;;  %v172_v8 = vld [vmem:[#allocation13 + $0x160] sm:$0xff]  ;;  %v181_v11 = vld [vmem:[#allocation13 + $0x1a8] sm:$0xff]  ;;  %v2119_v12 = vpack.c.bf16 %v175_v5, %v171_v4  ;;  %v170_v13 = vld [vmem:[#allocation13 + $0x150] sm:$0xff] }
  0x90   :  { %2082 = vmatpush1.bf16.msra.mxu0 %v2081_v54  ;;  %v174_v14 = vld [vmem:[#allocation13 + $0x170] sm:$0xff]  ;;  %v2089_v15 = vpack.c.bf16 %v172_v8, %v168_v7  ;;  %v179_v16 = vld [vmem:[#allocation13 + $0x198] sm:$0xff]  ;;  %v2091_v18 = vpack.c.bf16 %v181_v11, %v177_v10  ;;  %v176_v19 = vld [vmem:[#allocation13 + $0x180] sm:$0xff] }
  0x91   :  { %2084 = vmatprep.subr.bf16.mxu0 %v2083_v57  ;;  %v183_v17 = vld [vmem:[#allocation13 + $0x1b8] sm:$0xff]  ;;  %v180_v20 = vld [vmem:[#allocation13 + $0x1a0] sm:$0xff]  ;;  %v2121_v21 = vpack.c.bf16 %v174_v14, %v170_v13  ;;  %v185_v22 = vld [vmem:[#allocation13 + $0x1c8] sm:$0xff] }
  0x92   :  { %2114 = vmatpush1.bf16.msra.mxu1 %v2113_v60  ;;  %v189_v23 = vld [vmem:[#allocation13 + $0x1e8] sm:$0xff]  ;;  %v2123_v24 = vpack.c.bf16 %v183_v17, %v179_v16  ;;  %v178_v25 = vld [vmem:[#allocation13 + $0x190] sm:$0xff]  ;;  %v2093_v27 = vpack.c.bf16 %v180_v20, %v176_v19  ;;  %v187_v28 = vld [vmem:[#allocation13 + $0x1d8] sm:$0xff] }
  0x93   :  { %2116 = vmatprep.subr.bf16.mxu1 %v2115_v63  ;;  %v182_v26 = vld [vmem:[#allocation13 + $0x1b0] sm:$0xff]  ;;  %v191_v29 = vld [vmem:[#allocation13 + $0x1f8] sm:$0xff]  ;;  %v2095_v30 = vpack.c.bf16 %v189_v23, %v185_v22  ;;  %v184_v31 = vld [vmem:[#allocation13 + $0x1c0] sm:$0xff] }
  0x94   :  { %2086 = vmatpush1.bf16.msra.mxu0 %v2085_v3  ;;  %v188_v32 = vld [vmem:[#allocation13 + $0x1e0] sm:$0xff]  ;;  %v2125_v33 = vpack.c.bf16 %v182_v26, %v178_v25  ;;  %v193_v34 = vld [vmem:[#allocation14 + $0x8] sm:$0xff]  ;;  %v2127_v36 = vpack.c.bf16 %v191_v29, %v187_v28  ;;  %v186_v37 = vld [vmem:[#allocation13 + $0x1d0] sm:$0xff] }
  0x95   :  { %2088 = vmatprep.subr.bf16.mxu0 %v2087_v6  ;;  %v197_v35 = vld [vmem:[#allocation14 + $0x28] sm:$0xff]  ;;  %v190_v38 = vld [vmem:[#allocation13 + $0x1f0] sm:$0xff]  ;;  %v2097_v39 = vpack.c.bf16 %v188_v32, %v184_v31  ;;  %v195_v40 = vld [vmem:[#allocation14 + $0x18] sm:$0xff] }
  0x96   :  { %2118 = vmatpush1.bf16.msra.mxu1 %v2117_v9  ;;  %v199_v41 = vld [vmem:[#allocation14 + $0x38] sm:$0xff]  ;;  %v3215_v42 = vpack.c.bf16 %v197_v35, %v193_v34  ;;  %v192_v43 = vld [vmem:[#allocation14] sm:$0xff]  ;;  %v2129_v45 = vpack.c.bf16 %v190_v38, %v186_v37  ;;  %v201_v46 = vld [vmem:[#allocation14 + $0x48] sm:$0xff] }
  0x97   :  { %2120 = vmatprep.subr.bf16.mxu1 %v2119_v12  ;;  %v196_v44 = vld [vmem:[#allocation14 + $0x20] sm:$0xff]  ;;  %v205_v47 = vld [vmem:[#allocation14 + $0x68] sm:$0xff]  ;;  %v3217_v48 = vpack.c.bf16 %v199_v41, %v195_v40  ;;  %v194_v49 = vld [vmem:[#allocation14 + $0x10] sm:$0xff] }
  0x98   :  { %2090 = vmatpush1.bf16.msra.mxu0 %v2089_v15  ;;  %v198_v50 = vld [vmem:[#allocation14 + $0x30] sm:$0xff]  ;;  %v3219_v52 = vpack.c.bf16 %v196_v44, %v192_v43  ;;  %v203_v53 = vld [vmem:[#allocation14 + $0x58] sm:$0xff]  ;;  %v3222_v55 = vpack.c.bf16 %v205_v47, %v201_v46  ;;  %v200_v56 = vld [vmem:[#allocation14 + $0x40] sm:$0xff] }
  0x99   :  { %2092 = vmatprep.subr.bf16.mxu0 %v2091_v18  ;;  %v256_v51 = vld [vmem:[#allocation5] sm:$0xff]  ;;  %v207_v54 = vld [vmem:[#allocation14 + $0x78] sm:$0xff]  ;;  %v204_v57 = vld [vmem:[#allocation14 + $0x60] sm:$0xff]  ;;  %v3224_v58 = vpack.c.bf16 %v198_v50, %v194_v49 }
  0x9a   :  { %2122 = vmatpush1.bf16.msra.mxu1 %v2121_v21  ;;  %v209_v59 = vld [vmem:[#allocation14 + $0x88] sm:$0xff]  ;;  %v3227_v61 = vpack.c.bf16 %v207_v54, %v203_v53  ;;  %v202_v62 = vld [vmem:[#allocation14 + $0x50] sm:$0xff]  ;;  %v257_v0 = vld [vmem:[#allocation5 + $0x8] sm:$0xff]  ;;  %v3231_v2 = vpack.c.bf16 %v204_v57, %v200_v56 }
  0x9b   :  { %2124 = vmatprep.subr.bf16.mxu1 %v2123_v24  ;;  %v213_v60 = vld [vmem:[#allocation14 + $0xa8] sm:$0xff]  ;;  %v206_v63 = vld [vmem:[#allocation14 + $0x70] sm:$0xff]  ;;  %v211_v3 = vld [vmem:[#allocation14 + $0x98] sm:$0xff] }
  0x9c   :  { %2094 = vmatpush1.bf16.msra.mxu0 %v2093_v27  ;;  %v215_v4 = vld [vmem:[#allocation14 + $0xb8] sm:$0xff]  ;;  %v3234_v5 = vpack.c.bf16 %v213_v60, %v209_v59  ;;  %v208_v6 = vld [vmem:[#allocation14 + $0x80] sm:$0xff]  ;;  %v3238_v8 = vpack.c.bf16 %v206_v63, %v202_v62  ;;  %v217_v9 = vld [vmem:[#allocation14 + $0xc8] sm:$0xff] }
  0x9d   :  { %2096 = vmatprep.subr.bf16.mxu0 %v2095_v30  ;;  %v212_v7 = vld [vmem:[#allocation14 + $0xa0] sm:$0xff]  ;;  %v221_v10 = vld [vmem:[#allocation14 + $0xe8] sm:$0xff]  ;;  %v3241_v11 = vpack.c.bf16 %v215_v4, %v211_v3  ;;  %v210_v12 = vld [vmem:[#allocation14 + $0x90] sm:$0xff] }
  0x9e   :  { %2126 = vmatpush1.bf16.msra.mxu1 %v2125_v33  ;;  %v214_v13 = vld [vmem:[#allocation14 + $0xb0] sm:$0xff]  ;;  %v258_v14 = vld [vmem:[#allocation5 + $0x10] sm:$0xff]  ;;  %v3245_v15 = vpack.c.bf16 %v212_v7, %v208_v6  ;;  %v219_v16 = vld [vmem:[#allocation14 + $0xd8] sm:$0xff]  ;;  %v3248_v18 = vpack.c.bf16 %v221_v10, %v217_v9 }
  0x9f   :  { %2128 = vmatprep.subr.bf16.mxu1 %v2127_v36  ;;  %v223_v17 = vld [vmem:[#allocation14 + $0xf8] sm:$0xff]  ;;  %v216_v19 = vld [vmem:[#allocation14 + $0xc0] sm:$0xff]  ;;  %v3252_v21 = vpack.c.bf16 %v214_v13, %v210_v12  ;;  %v225_v22 = vld [vmem:[#allocation14 + $0x108] sm:$0xff] }
  0xa0   :  { %2098 = vmatpush1.bf16.msra.mxu0 %v2097_v39  ;;  %v220_v20 = vld [vmem:[#allocation14 + $0xe0] sm:$0xff]  ;;  %v229_v23 = vld [vmem:[#allocation14 + $0x128] sm:$0xff]  ;;  %v3255_v24 = vpack.c.bf16 %v223_v17, %v219_v16  ;;  %v218_v25 = vld [vmem:[#allocation14 + $0xd0] sm:$0xff] }
  0xa1   :  { %2132 = vmatprep.subr.bf16.mxu0 %v3215_v42  ;;  %v222_v26 = vld [vmem:[#allocation14 + $0xf0] sm:$0xff]  ;;  %v259_v27 = vld [vmem:[#allocation5 + $0x18] sm:$0xff]  ;;  %v3259_v28 = vpack.c.bf16 %v220_v20, %v216_v19  ;;  %v227_v29 = vld [vmem:[#allocation14 + $0x118] sm:$0xff]  ;;  %v3262_v31 = vpack.c.bf16 %v229_v23, %v225_v22 }
  0xa2   :  { %2130 = vmatpush1.bf16.msra.mxu1 %v2129_v45  ;;  %v231_v30 = vld [vmem:[#allocation14 + $0x138] sm:$0xff]  ;;  %v224_v32 = vld [vmem:[#allocation14 + $0x100] sm:$0xff]  ;;  %v3266_v34 = vpack.c.bf16 %v222_v26, %v218_v25  ;;  %v233_v35 = vld [vmem:[#allocation14 + $0x148] sm:$0xff] }
  0xa3   :  { %351 = vmatmul.mubr.f32.vlgmr.msra.gmra.mrb[0].mxu0 %v256_v51  ;;  %2164 = vmatprep.subr.bf16.mxu1 %v3217_v48  ;;  %v228_v33 = vld [vmem:[#allocation14 + $0x120] sm:$0xff]  ;;  %v237_v36 = vld [vmem:[#allocation14 + $0x168] sm:$0xff]  ;;  %v3269_v37 = vpack.c.bf16 %v231_v30, %v227_v29  ;;  %v226_v38 = vld [vmem:[#allocation14 + $0x110] sm:$0xff] }
  0xa4   :  { %2134 = vmatpush1.bf16.msra.mxu0 %v3219_v52  ;;  %356 = vmatprep.mubr.f32.mxu0 %v3049_v1  ;;  %v230_v39 = vld [vmem:[#allocation14 + $0x130] sm:$0xff]  ;;  %v3273_v41 = vpack.c.bf16 %v228_v33, %v224_v32  ;;  %v235_v43 = vld [vmem:[#allocation14 + $0x158] sm:$0xff]  ;;  %v3276_v45 = vpack.c.bf16 %v237_v36, %v233_v35  ;;  %v232_v46 = vld [vmem:[#allocation14 + $0x140] sm:$0xff] }
  0xa5   :  { %464 = vmatmul.mubr.f32.vlgmr.msra.gmra.mrb[0].mxu1 %v256_v51  ;;  %2136 = vmatprep.subr.bf16.mxu0 %v3222_v55  ;;  %v260_v40 = vld [vmem:[#allocation5 + $0x20] sm:$0xff]  ;;  %v239_v44 = vld [vmem:[#allocation14 + $0x178] sm:$0xff]  ;;  %v236_v47 = vld [vmem:[#allocation14 + $0x160] sm:$0xff]  ;;  %v3280_v49 = vpack.c.bf16 %v230_v39, %v226_v38 }
  0xa6   :  { %2166 = vmatpush1.bf16.msra.mxu1 %v3224_v58  ;;  %469 = vmatprep.mubr.f32.mxu1 %v3049_v1  ;;  %v241_v50 = vld [vmem:[#allocation14 + $0x188] sm:$0xff]  ;;  %v3283_v53 = vpack.c.bf16 %v239_v44, %v235_v43  ;;  %v234_v54 = vld [vmem:[#allocation14 + $0x150] sm:$0xff]  ;;  %v261_v57 = vld [vmem:[#allocation5 + $0x28] sm:$0xff]  ;;  %v3287_v59 = vpack.c.bf16 %v236_v47, %v232_v46  ;;  %v266_v44 = vlaneseq }
  0xa7   :  { %357 = vmatmul.mubr.f32.gmra.mrb[2].mxu0 %v257_v0  ;;  %2168 = vmatprep.subr.bf16.mxu1 %v3227_v61  ;;  %v245_v51 = vld [vmem:[#allocation14 + $0x1a8] sm:$0xff]  ;;  %v238_v56 = vld [vmem:[#allocation14 + $0x170] sm:$0xff]  ;;  %v243_v60 = vld [vmem:[#allocation14 + $0x198] sm:$0xff] }
  0xa8   :  { %2138 = vmatpush1.bf16.msra.mxu0 %v3231_v2  ;;  %362 = vmatprep.mubr.f32.mxu0 %v3049_v1  ;;  %v247_v62 = vld [vmem:[#allocation14 + $0x1b8] sm:$0xff]  ;;  %v3290_v63 = vpack.c.bf16 %v245_v51, %v241_v50  ;;  %v244_v3 = vld [vmem:[#allocation14 + $0x1a0] sm:$0xff]  ;;  %v3294_v4 = vpack.c.bf16 %v238_v56, %v234_v54  ;;  %v249_v6 = vld [vmem:[#allocation14 + $0x1c8] sm:$0xff]  ;;  %v267_v46 = vshrl.u32 %v266_v44, 7 }
  0xa9   :  { %470 = vmatmul.mubr.f32.gmra.mrb[2].mxu1 %v257_v0  ;;  %2140 = vmatprep.subr.bf16.mxu0 %v3234_v5  ;;  %v240_v0 = vld [vmem:[#allocation14 + $0x180] sm:$0xff]  ;;  %v253_v7 = vld [vmem:[#allocation14 + $0x1e8] sm:$0xff]  ;;  %v3297_v9 = vpack.c.bf16 %v247_v62, %v243_v60  ;;  %v242_v10 = vld [vmem:[#allocation14 + $0x190] sm:$0xff] }
  0xaa   :  { %2170 = vmatpush1.bf16.msra.mxu1 %v3238_v8  ;;  %475 = vmatprep.mubr.f32.mxu1 %v3049_v1  ;;  %v246_v12 = vld [vmem:[#allocation14 + $0x1b0] sm:$0xff]  ;;  %v262_v13 = vld [vmem:[#allocation5 + $0x30] sm:$0xff]  ;;  %v251_v16 = vld [vmem:[#allocation14 + $0x1d8] sm:$0xff]  ;;  %v3304_v19 = vpack.c.bf16 %v253_v7, %v249_v6  ;;  %v268_v47 = vsub.s32 0, %v267_v46  ;;  %v272_v51 = vsub.s32 1, %v267_v46  ;;  %v276_v56 = vsub.s32 2, %v267_v46 }
  0xab   :  { %363 = vmatmul.mubr.f32.gmra.mrb[4].mxu0 %v258_v14  ;;  %2172 = vmatprep.subr.bf16.mxu1 %v3241_v11  ;;  %v255_v17 = vld [vmem:[#allocation14 + $0x1f8] sm:$0xff]  ;;  %v248_v20 = vld [vmem:[#allocation14 + $0x1c0] sm:$0xff]  ;;  %v3308_v23 = vpack.c.bf16 %v246_v12, %v242_v10  ;;  %v250_v26 = vld [vmem:[#allocation14 + $0x1d0] sm:$0xff]  ;;  %v280_v7 = vsub.s32 3, %v267_v46 }
  0xac   :  { %2142 = vmatpush1.bf16.msra.mxu0 %v3245_v15  ;;  %368 = vmatprep.mubr.f32.mxu0 %v3049_v1  ;;  %v252_v22 = vld [vmem:[#allocation14 + $0x1e0] sm:$0xff]  ;;  %v3311_v25 = vpack.c.bf16 %v255_v17, %v251_v16  ;;  %v263_v29 = vld [vmem:[#allocation5 + $0x38] sm:$0xff]  ;;  %v124_v33 = vld [vmem:[#allocation10] sm:$0xff] }
  0xad   :  { %476 = vmatmul.mubr.f32.gmra.mrb[4].mxu1 %v258_v14  ;;  %2144 = vmatprep.subr.bf16.mxu0 %v3248_v18  ;;  %v3301_v14 = vpack.c.bf16 %v244_v3, %v240_v0  ;;  %v3315_v30 = vpack.c.bf16 %v252_v22, %v248_v20  ;;  %v910_v38 = vld [vmem:[#allocation8 + $0x10] sm:$0xff]  ;;  %v1094_v39 = vld [vmem:[#allocation8 + $0x18] sm:$0xff] }
  0xae   :  { %2174 = vmatpush1.bf16.msra.mxu1 %v3252_v21  ;;  %481 = vmatprep.mubr.f32.mxu1 %v3049_v1  ;;  %v1830_v43 = vld [vmem:[#allocation8 + $0x38] sm:$0xff]  ;;  %v264_v50 = vld [vmem:[#allocation16] sm:$0xf] }
  0xaf   :  { %369 = vmatmul.mubr.f32.gmra.mrb[6].mxu0 %v259_v27  ;;  %2176 = vmatprep.subr.bf16.mxu1 %v3255_v24  ;;  %v3366_v54 = vrot.slane %v264_v50, %v268_v47  ;;  %v3371_v3 = vrot.slane %v264_v50, %v276_v56  ;;  %v3375_v20 = vrot.slane %v264_v50, %v280_v7 }
  0xb0   :  { %2146 = vmatpush1.bf16.msra.mxu0 %v3259_v28  ;;  %374 = vmatprep.mubr.f32.mxu0 %v3049_v1 }
  0xb1   :  { %482 = vmatmul.mubr.f32.gmra.mrb[6].mxu1 %v259_v27  ;;  %2148 = vmatprep.subr.bf16.mxu0 %v3262_v31  ;;  %v254_v27 = vld [vmem:[#allocation14 + $0x1f0] sm:$0xff] }
  0xb2   :  { %2178 = vmatpush1.bf16.msra.mxu1 %v3266_v34  ;;  %487 = vmatprep.mubr.f32.mxu1 %v3049_v1  ;;  %v3320_v32 = vpack.c.bf16 %v254_v27, %v250_v26 }
  0xb3   :  { %375 = vmatmul.mubr.f32.gmra.mrb[8].mxu0 %v260_v40  ;;  %2180 = vmatprep.subr.bf16.mxu1 %v3269_v37 }
  0xb4   :  { %2150 = vmatpush1.bf16.msra.mxu0 %v3273_v41  ;;  %380 = vmatprep.mubr.f32.mxu0 %v3049_v1 }
  0xb5   :  { %488 = vmatmul.mubr.f32.gmra.mrb[8].mxu1 %v260_v40  ;;  %2152 = vmatprep.subr.bf16.mxu0 %v3276_v45  ;;  %v1462_v40 = vld [vmem:[#allocation8 + $0x28] sm:$0xff] }
  0xb6   :  { %2182 = vmatpush1.bf16.msra.mxu1 %v3280_v49  ;;  %493 = vmatprep.mubr.f32.mxu1 %v3049_v1 }
  0xb7   :  { %381 = vmatmul.mubr.f32.gmra.mrb[10].mxu0 %v261_v57  ;;  %2184 = vmatprep.subr.bf16.mxu1 %v3283_v53 }
  0xb8   :  { %2154 = vmatpush1.bf16.msra.mxu0 %v3287_v59  ;;  %386 = vmatprep.mubr.f32.mxu0 %v3049_v1 }
  0xb9   :  { %494 = vmatmul.mubr.f32.gmra.mrb[10].mxu1 %v261_v57  ;;  %2156 = vmatprep.subr.bf16.mxu0 %v3290_v63  ;;  %v3368_v57 = vrot.slane %v264_v50, %v272_v51 }
  0xba   :  { %2186 = vmatpush1.bf16.msra.mxu1 %v3294_v4  ;;  %499 = vmatprep.mubr.f32.mxu1 %v3049_v1 }
  0xbb   :  { %387 = vmatmul.mubr.f32.gmra.mrb[12].mxu0 %v262_v13  ;;  %2188 = vmatprep.subr.bf16.mxu1 %v3297_v9 }
  0xbc   :  { %2158 = vmatpush1.bf16.msra.mxu0 %v3301_v14  ;;  %392 = vmatprep.mubr.f32.mxu0 %v3049_v1 }
  0xbd   :  { %500 = vmatmul.mubr.f32.gmra.mrb[12].mxu1 %v262_v13  ;;  %2160 = vmatprep.subr.bf16.mxu0 %v3304_v19 }
  0xbe   :  { %2190 = vmatpush1.bf16.msra.mxu1 %v3308_v23  ;;  %505 = vmatprep.mubr.f32.mxu1 %v3049_v1 }
  0xbf   :  { %393 = vmatmul.mubr.f32.gmra.mrb[14].mxu0 %v263_v29  ;;  %2192 = vmatprep.subr.bf16.mxu1 %v3311_v25 }
  0xc0   :  { %2162 = vmatpush1.bf16.msra.mxu0 %v3315_v30  ;;  %622 = vmatprep.mubr.f32.mxu0 %v3049_v1 }
  0xc1   :  { %506 = vmatmul.mubr.f32.gmra.mrb[14].mxu1 %v263_v29  ;;  %2196 = vmatprep.subr.bf16.mxu0 %v3215_v42 }
  0xc2   :  { %2194 = vmatpush1.bf16.msra.mxu1 %v3320_v32  ;;  %693 = vmatprep.mubr.f32.mxu1 %v3049_v1 }
  0xc3   :  { %2228 = vmatprep.subr.bf16.mxu1 %v3217_v48  ;;  %914 = vperm.xlu1 %2724, %v910_v38  }
  0xc7   :  { %1098 = vperm.xlu1 %2724, %v1094_v39  }
  0xcb   :  { %1466 = vperm.xlu1 %2724, %v1462_v40  }
  0xcf   :  { %1834 = vperm.xlu1 %2724, %v1830_v43  }
 0x100   :  { %v3329_v35 = vpop.permute.xlu0 %548 }
 0x101   :  { %v551_v36 = vmul.f32 %v3329_v35, %v124_v33  ;;  %v126_v33 = vld [vmem:[#allocation11] sm:$0xff] }
 0x102   :  { %v553_v43 = vmul.f32 %v3329_v35, %v126_v33 }
 0x103   :  { %623 = vmatmul.mubr.f32.vlgmr.msra.gmra.mrb[0].mxu0 %v551_v36  ;;  %694 = vmatmul.mubr.f32.vlgmr.msra.gmra.mrb[0].mxu1 %v551_v36 }
 0x104   :  { %2198 = vmatpush1.bf16.msra.mxu0 %v3219_v52  ;;  %2230 = vmatpush1.bf16.msra.mxu1 %v3224_v58 }
 0x105   :  { %2200 = vmatprep.subr.bf16.mxu0 %v3222_v55  ;;  %2232 = vmatprep.subr.bf16.mxu1 %v3227_v61 }
 0x106   :  { %805 = vmatprep.mubr.f32.mxu0 %v3049_v1  ;;  %876 = vmatprep.mubr.f32.mxu1 %v3049_v1 }
 0x108   :  { %2202 = vmatpush1.bf16.msra.mxu0 %v3231_v2  ;;  %2234 = vmatpush1.bf16.msra.mxu1 %v3238_v8 }
 0x109   :  { %2204 = vmatprep.subr.bf16.mxu0 %v3234_v5  ;;  %2236 = vmatprep.subr.bf16.mxu1 %v3241_v11 }
 0x10c   :  { %2206 = vmatpush1.bf16.msra.mxu0 %v3245_v15  ;;  %2238 = vmatpush1.bf16.msra.mxu1 %v3252_v21 }
 0x10d   :  { %2208 = vmatprep.subr.bf16.mxu0 %v3248_v18  ;;  %2240 = vmatprep.subr.bf16.mxu1 %v3255_v24 }
 0x110   :  { %2210 = vmatpush1.bf16.msra.mxu0 %v3259_v28  ;;  %2242 = vmatpush1.bf16.msra.mxu1 %v3266_v34 }
 0x111   :  { %2212 = vmatprep.subr.bf16.mxu0 %v3262_v31  ;;  %2244 = vmatprep.subr.bf16.mxu1 %v3269_v37 }
 0x114   :  { %2214 = vmatpush1.bf16.msra.mxu0 %v3273_v41  ;;  %2246 = vmatpush1.bf16.msra.mxu1 %v3280_v49 }
 0x115   :  { %2216 = vmatprep.subr.bf16.mxu0 %v3276_v45  ;;  %2248 = vmatprep.subr.bf16.mxu1 %v3283_v53 }
 0x118   :  { %2218 = vmatpush1.bf16.msra.mxu0 %v3287_v59  ;;  %2250 = vmatpush1.bf16.msra.mxu1 %v3294_v4 }
 0x119   :  { %2220 = vmatprep.subr.bf16.mxu0 %v3290_v63  ;;  %2252 = vmatprep.subr.bf16.mxu1 %v3297_v9 }
 0x11c   :  { %2222 = vmatpush1.bf16.msra.mxu0 %v3301_v14  ;;  %2254 = vmatpush1.bf16.msra.mxu1 %v3308_v23 }
 0x11d   :  { %2224 = vmatprep.subr.bf16.mxu0 %v3304_v19  ;;  %2256 = vmatprep.subr.bf16.mxu1 %v3311_v25 }
 0x120   :  { %2226 = vmatpush1.bf16.msra.mxu0 %v3315_v30  ;;  %2258 = vmatpush1.bf16.msra.mxu1 %v3320_v32 }
 0x121   :  { %2260 = vmatprep.subr.bf16.mxu0 %v3215_v42  ;;  %2292 = vmatprep.subr.bf16.mxu1 %v3217_v48 }
 0x1d6   :  { %v624_v60 = vpop.f32.mrb[0].mxu0  ;;  %v695_v62 = vpop.f32.mrb[0].mxu1 }
 0x1d7   :  { %v2643_v0 = vadd.f32 %v624_v60, %v3366_v54  ;;  %v626_v6 = vpop.f32.mrb[1].mxu0  ;;  %v697_v10 = vpop.f32.mrb[1].mxu1  ;;  %v2659_v17 = vadd.f32 %v695_v62, %v3371_v3 }
 0x1d8   :  { %v2644_v12 = vadd.f32 %v626_v6, %v3368_v57  ;;  %v2660_v22 = vadd.f32 %v697_v10, %v3375_v20  ;;  %v731_v6 = vpop.permute.xlu0 %730 }
 0x1d9   :  { %v704_v13 = vmul.f32 0.5, %v2643_v0 }
 0x1da   :  { %v708_v16 = vmul.f32 0.5, %v2644_v12  ;;  %v713_v26 = vmul.f32 0.5, %v2660_v22 }
 0x1db   :  { %2725 = vtanh.f32 %v704_v13 }
 0x1dc   :  { %2727 = vtanh.f32 %v708_v16 }
 0x1dd   :  { %2729 = vtanh.f32 %v2659_v17 }
 0x1de   :  { %2731 = vtanh.f32 %v713_v26 }
 0x1e5   :  { %v2726_v27 = vpop.eup %2725 }
 0x1e6   :  { %v2728_v29 = vpop.eup %2727  ;;  %v706_v36 = vmul.f32 0.5, %v2726_v27 }
 0x1e7   :  { %v710_v38 = vmul.f32 0.5, %v2728_v29  ;;  %v2730_v40 = vpop.eup %2729 }
 0x1e8   :  { %v707_v39 = vadd.f32 0.5, %v706_v36  ;;  %v2732_v51 = vpop.eup %2731 }
 0x1e9   :  { %v711_v44 = vadd.f32 0.5, %v710_v38  ;;  %v715_v56 = vmul.f32 0.5, %v2732_v51 }
 0x1ea   :  { %v718_v46 = vmul.f32 %v2730_v40, %v707_v39 }
 0x1eb   :  { %v717_v47 = vmul.f32 %v711_v44, %v553_v43  ;;  %v716_v60 = vadd.f32 0.5, %v715_v56 }
 0x1ed   :  { %v3379_v50 = vadd.f32 %v718_v46, %v717_v47 }
 0x1ef   :  { %2733 = vtanh.f32 %v3379_v50  ;;  %v735_v47 = vmul.f32 %v731_v6, %v3379_v50 }
 0x1f9   :  { %v2734_v62 = vpop.eup %2733 }
 0x1fa   :  { %v721_v0 = vmul.f32 %v2734_v62, %v716_v60 }
 0x1fc   :  { %724 = vst [vmem:[#allocation17] sm:$0xff] %v721_v0  ;;  %v733_v7 = vmul.f32 %v731_v6, %v721_v0 }
 0x1fe   :  { %806 = vmatmul.mubr.f32.vlgmr.msra.gmra.mrb[2].mxu0 %v733_v7  ;;  %877 = vmatmul.mubr.f32.vlgmr.msra.gmra.mrb[2].mxu1 %v733_v7 }
 0x1ff   :  { %2262 = vmatpush1.bf16.msra.mxu0 %v3219_v52  ;;  %2294 = vmatpush1.bf16.msra.mxu1 %v3224_v58 }
 0x200   :  { %2264 = vmatprep.subr.bf16.mxu0 %v3222_v55  ;;  %2296 = vmatprep.subr.bf16.mxu1 %v3227_v61 }
 0x201   :  { %989 = vmatprep.mubr.f32.mxu0 %v3049_v1  ;;  %1060 = vmatprep.mubr.f32.mxu1 %v3049_v1 }
 0x203   :  { %2266 = vmatpush1.bf16.msra.mxu0 %v3231_v2  ;;  %2298 = vmatpush1.bf16.msra.mxu1 %v3238_v8 }
 0x204   :  { %2268 = vmatprep.subr.bf16.mxu0 %v3234_v5  ;;  %2300 = vmatprep.subr.bf16.mxu1 %v3241_v11 }
 0x207   :  { %2270 = vmatpush1.bf16.msra.mxu0 %v3245_v15  ;;  %2302 = vmatpush1.bf16.msra.mxu1 %v3252_v21 }
 0x208   :  { %2272 = vmatprep.subr.bf16.mxu0 %v3248_v18  ;;  %2304 = vmatprep.subr.bf16.mxu1 %v3255_v24 }
 0x20b   :  { %2274 = vmatpush1.bf16.msra.mxu0 %v3259_v28  ;;  %2306 = vmatpush1.bf16.msra.mxu1 %v3266_v34 }
 0x20c   :  { %2276 = vmatprep.subr.bf16.mxu0 %v3262_v31  ;;  %2308 = vmatprep.subr.bf16.mxu1 %v3269_v37 }
 0x20f   :  { %2278 = vmatpush1.bf16.msra.mxu0 %v3273_v41  ;;  %2310 = vmatpush1.bf16.msra.mxu1 %v3280_v49 }
 0x210   :  { %2280 = vmatprep.subr.bf16.mxu0 %v3276_v45  ;;  %2312 = vmatprep.subr.bf16.mxu1 %v3283_v53 }
 0x213   :  { %2282 = vmatpush1.bf16.msra.mxu0 %v3287_v59  ;;  %2314 = vmatpush1.bf16.msra.mxu1 %v3294_v4 }
 0x214   :  { %2284 = vmatprep.subr.bf16.mxu0 %v3290_v63  ;;  %2316 = vmatprep.subr.bf16.mxu1 %v3297_v9 }
 0x217   :  { %2286 = vmatpush1.bf16.msra.mxu0 %v3301_v14  ;;  %2318 = vmatpush1.bf16.msra.mxu1 %v3308_v23 }
 0x218   :  { %2288 = vmatprep.subr.bf16.mxu0 %v3304_v19  ;;  %2320 = vmatprep.subr.bf16.mxu1 %v3311_v25 }
 0x21b   :  { %2290 = vmatpush1.bf16.msra.mxu0 %v3315_v30  ;;  %2322 = vmatpush1.bf16.msra.mxu1 %v3320_v32 }
 0x21c   :  { %2324 = vmatprep.subr.bf16.mxu0 %v3215_v42  ;;  %2356 = vmatprep.subr.bf16.mxu1 %v3217_v48 }
 0x2d1   :  { %v807_v35 = vpop.f32.mrb[2].mxu0  ;;  %v878_v10 = vpop.f32.mrb[2].mxu1 }
 0x2d2   :  { %v2645_v12 = vadd.f32 %v807_v35, %v3366_v54  ;;  %v809_v13 = vpop.f32.mrb[3].mxu0  ;;  %v880_v16 = vpop.f32.mrb[3].mxu1  ;;  %v2661_v27 = vadd.f32 %v878_v10, %v3371_v3 }
 0x2d3   :  { %v2646_v17 = vadd.f32 %v809_v13, %v3368_v57  ;;  %v2662_v29 = vadd.f32 %v880_v16, %v3375_v20 }
 0x2d4   :  { %v887_v22 = vmul.f32 0.5, %v2645_v12  ;;  %v915_v12 = vpop.permute.xlu1 %914 }
 0x2d5   :  { %v891_v26 = vmul.f32 0.5, %v2646_v17  ;;  %v896_v33 = vmul.f32 0.5, %v2662_v29 }
 0x2d6   :  { %2735 = vtanh.f32 %v887_v22 }
 0x2d7   :  { %2737 = vtanh.f32 %v891_v26 }
 0x2d8   :  { %2739 = vtanh.f32 %v2661_v27 }
 0x2d9   :  { %2741 = vtanh.f32 %v896_v33 }
 0x2e0   :  { %v2736_v36 = vpop.eup %2735 }
 0x2e1   :  { %v2738_v38 = vpop.eup %2737  ;;  %v889_v39 = vmul.f32 0.5, %v2736_v36 }
 0x2e2   :  { %v893_v40 = vmul.f32 0.5, %v2738_v38  ;;  %v2740_v44 = vpop.eup %2739 }
 0x2e3   :  { %v890_v43 = vadd.f32 0.5, %v889_v39  ;;  %v2742_v62 = vpop.eup %2741 }
 0x2e4   :  { %v894_v46 = vadd.f32 0.5, %v893_v40  ;;  %v898_v0 = vmul.f32 0.5, %v2742_v62 }
 0x2e5   :  { %v901_v51 = vmul.f32 %v2740_v44, %v890_v43 }
 0x2e6   :  { %v900_v56 = vmul.f32 %v894_v46, %v735_v47  ;;  %v899_v7 = vadd.f32 0.5, %v898_v0 }
 0x2e8   :  { %v3421_v60 = vadd.f32 %v901_v51, %v900_v56 }
 0x2ea   :  { %2743 = vtanh.f32 %v3421_v60  ;;  %v919_v51 = vmul.f32 %v915_v12, %v3421_v60 }
 0x2f4   :  { %v2744_v35 = vpop.eup %2743 }
 0x2f5   :  { %v904_v10 = vmul.f32 %v2744_v35, %v899_v7 }
 0x2f7   :  { %908 = vst [vmem:[#allocation17 + $0x8] sm:$0xff] %v904_v10  ;;  %v917_v13 = vmul.f32 %v915_v12, %v904_v10 }
 0x2f9   :  { %990 = vmatmul.mubr.f32.vlgmr.msra.gmra.mrb[4].mxu0 %v917_v13  ;;  %1061 = vmatmul.mubr.f32.vlgmr.msra.gmra.mrb[4].mxu1 %v917_v13 }
 0x2fa   :  { %2326 = vmatpush1.bf16.msra.mxu0 %v3219_v52  ;;  %2358 = vmatpush1.bf16.msra.mxu1 %v3224_v58 }
 0x2fb   :  { %2328 = vmatprep.subr.bf16.mxu0 %v3222_v55  ;;  %2360 = vmatprep.subr.bf16.mxu1 %v3227_v61 }
 0x2fc   :  { %1173 = vmatprep.mubr.f32.mxu0 %v3049_v1  ;;  %1244 = vmatprep.mubr.f32.mxu1 %v3049_v1 }
 0x2fe   :  { %2330 = vmatpush1.bf16.msra.mxu0 %v3231_v2  ;;  %2362 = vmatpush1.bf16.msra.mxu1 %v3238_v8 }
 0x2ff   :  { %2332 = vmatprep.subr.bf16.mxu0 %v3234_v5  ;;  %2364 = vmatprep.subr.bf16.mxu1 %v3241_v11 }
 0x302   :  { %2334 = vmatpush1.bf16.msra.mxu0 %v3245_v15  ;;  %2366 = vmatpush1.bf16.msra.mxu1 %v3252_v21 }
 0x303   :  { %2336 = vmatprep.subr.bf16.mxu0 %v3248_v18  ;;  %2368 = vmatprep.subr.bf16.mxu1 %v3255_v24 }
 0x306   :  { %2338 = vmatpush1.bf16.msra.mxu0 %v3259_v28  ;;  %2370 = vmatpush1.bf16.msra.mxu1 %v3266_v34 }
 0x307   :  { %2340 = vmatprep.subr.bf16.mxu0 %v3262_v31  ;;  %2372 = vmatprep.subr.bf16.mxu1 %v3269_v37 }
 0x30a   :  { %2342 = vmatpush1.bf16.msra.mxu0 %v3273_v41  ;;  %2374 = vmatpush1.bf16.msra.mxu1 %v3280_v49 }
 0x30b   :  { %2344 = vmatprep.subr.bf16.mxu0 %v3276_v45  ;;  %2376 = vmatprep.subr.bf16.mxu1 %v3283_v53 }
 0x30e   :  { %2346 = vmatpush1.bf16.msra.mxu0 %v3287_v59  ;;  %2378 = vmatpush1.bf16.msra.mxu1 %v3294_v4 }
 0x30f   :  { %2348 = vmatprep.subr.bf16.mxu0 %v3290_v63  ;;  %2380 = vmatprep.subr.bf16.mxu1 %v3297_v9 }
 0x312   :  { %2350 = vmatpush1.bf16.msra.mxu0 %v3301_v14  ;;  %2382 = vmatpush1.bf16.msra.mxu1 %v3308_v23 }
 0x313   :  { %2352 = vmatprep.subr.bf16.mxu0 %v3304_v19  ;;  %2384 = vmatprep.subr.bf16.mxu1 %v3311_v25 }
 0x316   :  { %2354 = vmatpush1.bf16.msra.mxu0 %v3315_v30  ;;  %2386 = vmatpush1.bf16.msra.mxu1 %v3320_v32 }
 0x317   :  { %2388 = vmatprep.subr.bf16.mxu0 %v3215_v42  ;;  %2420 = vmatprep.subr.bf16.mxu1 %v3217_v48 }
 0x3cc   :  { %v991_v50 = vpop.f32.mrb[4].mxu0  ;;  %v1062_v6 = vpop.f32.mrb[4].mxu1 }
 0x3cd   :  { %v2647_v16 = vadd.f32 %v991_v50, %v3366_v54  ;;  %v993_v17 = vpop.f32.mrb[5].mxu0  ;;  %v1064_v22 = vpop.f32.mrb[5].mxu1  ;;  %v2663_v33 = vadd.f32 %v1062_v6, %v3371_v3 }
 0x3ce   :  { %v2648_v26 = vadd.f32 %v993_v17, %v3368_v57  ;;  %v2664_v36 = vadd.f32 %v1064_v22, %v3375_v20 }
 0x3cf   :  { %v1071_v27 = vmul.f32 0.5, %v2647_v16  ;;  %v1099_v16 = vpop.permute.xlu1 %1098 }
 0x3d0   :  { %v1075_v29 = vmul.f32 0.5, %v2648_v26  ;;  %v1080_v38 = vmul.f32 0.5, %v2664_v36 }
 0x3d1   :  { %2745 = vtanh.f32 %v1071_v27 }
 0x3d2   :  { %2747 = vtanh.f32 %v1075_v29 }
 0x3d3   :  { %2749 = vtanh.f32 %v2663_v33 }
 0x3d4   :  { %2751 = vtanh.f32 %v1080_v38 }
 0x3db   :  { %v2746_v39 = vpop.eup %2745 }
 0x3dc   :  { %v2748_v40 = vpop.eup %2747  ;;  %v1073_v43 = vmul.f32 0.5, %v2746_v39 }
 0x3dd   :  { %v1077_v44 = vmul.f32 0.5, %v2748_v40  ;;  %v2750_v47 = vpop.eup %2749 }
 0x3de   :  { %v1074_v46 = vadd.f32 0.5, %v1073_v43  ;;  %v2752_v35 = vpop.eup %2751 }
 0x3df   :  { %v1078_v56 = vadd.f32 0.5, %v1077_v44  ;;  %v1082_v10 = vmul.f32 0.5, %v2752_v35 }
 0x3e0   :  { %v1085_v62 = vmul.f32 %v2750_v47, %v1074_v46 }
 0x3e1   :  { %v1084_v0 = vmul.f32 %v1078_v56, %v919_v51  ;;  %v1083_v13 = vadd.f32 0.5, %v1082_v10 }
 0x3e3   :  { %v3463_v7 = vadd.f32 %v1085_v62, %v1084_v0 }
 0x3e5   :  { %2753 = vtanh.f32 %v3463_v7  ;;  %v1103_v62 = vmul.f32 %v1099_v16, %v3463_v7 }
 0x3ef   :  { %v2754_v50 = vpop.eup %2753 }
 0x3f0   :  { %v1088_v6 = vmul.f32 %v2754_v50, %v1083_v13 }
 0x3f2   :  { %1092 = vst [vmem:[#allocation17 + $0x10] sm:$0xff] %v1088_v6  ;;  %v1101_v17 = vmul.f32 %v1099_v16, %v1088_v6 }
 0x3f4   :  { %1174 = vmatmul.mubr.f32.vlgmr.msra.gmra.mrb[6].mxu0 %v1101_v17  ;;  %1245 = vmatmul.mubr.f32.vlgmr.msra.gmra.mrb[6].mxu1 %v1101_v17 }
 0x3f5   :  { %2390 = vmatpush1.bf16.msra.mxu0 %v3219_v52  ;;  %2422 = vmatpush1.bf16.msra.mxu1 %v3224_v58 }
 0x3f6   :  { %2392 = vmatprep.subr.bf16.mxu0 %v3222_v55  ;;  %2424 = vmatprep.subr.bf16.mxu1 %v3227_v61 }
 0x3f7   :  { %1357 = vmatprep.mubr.f32.mxu0 %v3049_v1  ;;  %1428 = vmatprep.mubr.f32.mxu1 %v3049_v1 }
 0x3f9   :  { %2394 = vmatpush1.bf16.msra.mxu0 %v3231_v2  ;;  %2426 = vmatpush1.bf16.msra.mxu1 %v3238_v8 }
 0x3fa   :  { %2396 = vmatprep.subr.bf16.mxu0 %v3234_v5  ;;  %2428 = vmatprep.subr.bf16.mxu1 %v3241_v11 }
 0x3fd   :  { %2398 = vmatpush1.bf16.msra.mxu0 %v3245_v15  ;;  %2430 = vmatpush1.bf16.msra.mxu1 %v3252_v21 }
 0x3fe   :  { %2400 = vmatprep.subr.bf16.mxu0 %v3248_v18  ;;  %2432 = vmatprep.subr.bf16.mxu1 %v3255_v24 }
 0x401   :  { %2402 = vmatpush1.bf16.msra.mxu0 %v3259_v28  ;;  %2434 = vmatpush1.bf16.msra.mxu1 %v3266_v34 }
 0x402   :  { %2404 = vmatprep.subr.bf16.mxu0 %v3262_v31  ;;  %2436 = vmatprep.subr.bf16.mxu1 %v3269_v37 }
 0x405   :  { %2406 = vmatpush1.bf16.msra.mxu0 %v3273_v41  ;;  %2438 = vmatpush1.bf16.msra.mxu1 %v3280_v49 }
 0x406   :  { %2408 = vmatprep.subr.bf16.mxu0 %v3276_v45  ;;  %2440 = vmatprep.subr.bf16.mxu1 %v3283_v53 }
 0x409   :  { %2410 = vmatpush1.bf16.msra.mxu0 %v3287_v59  ;;  %2442 = vmatpush1.bf16.msra.mxu1 %v3294_v4 }
 0x40a   :  { %2412 = vmatprep.subr.bf16.mxu0 %v3290_v63  ;;  %2444 = vmatprep.subr.bf16.mxu1 %v3297_v9 }
 0x40d   :  { %2414 = vmatpush1.bf16.msra.mxu0 %v3301_v14  ;;  %2446 = vmatpush1.bf16.msra.mxu1 %v3308_v23 }
 0x40e   :  { %2416 = vmatprep.subr.bf16.mxu0 %v3304_v19  ;;  %2448 = vmatprep.subr.bf16.mxu1 %v3311_v25 }
 0x411   :  { %2418 = vmatpush1.bf16.msra.mxu0 %v3315_v30  ;;  %2450 = vmatpush1.bf16.msra.mxu1 %v3320_v32 }
 0x412   :  { %2452 = vmatprep.subr.bf16.mxu0 %v3215_v42  ;;  %2484 = vmatprep.subr.bf16.mxu1 %v3217_v48 }
 0x4c7   :  { %v1175_v60 = vpop.f32.mrb[6].mxu0  ;;  %v1246_v12 = vpop.f32.mrb[6].mxu1 }
 0x4c8   :  { %v2649_v22 = vadd.f32 %v1175_v60, %v3366_v54  ;;  %v1177_v26 = vpop.f32.mrb[7].mxu0  ;;  %v1248_v27 = vpop.f32.mrb[7].mxu1  ;;  %v2665_v38 = vadd.f32 %v1246_v12, %v3371_v3 }
 0x4c9   :  { %v2650_v29 = vadd.f32 %v1177_v26, %v3368_v57  ;;  %v2666_v39 = vadd.f32 %v1248_v27, %v3375_v20 }
 0x4ca   :  { %v1255_v33 = vmul.f32 0.5, %v2649_v22  ;;  %v1283_v22 = vpop.permute.xlu0 %1282 }
 0x4cb   :  { %v1259_v36 = vmul.f32 0.5, %v2650_v29  ;;  %v1264_v40 = vmul.f32 0.5, %v2666_v39 }
 0x4cc   :  { %2755 = vtanh.f32 %v1255_v33 }
 0x4cd   :  { %2757 = vtanh.f32 %v1259_v36 }
 0x4ce   :  { %2759 = vtanh.f32 %v2665_v38 }
 0x4cf   :  { %2761 = vtanh.f32 %v1264_v40 }
 0x4d6   :  { %v2756_v43 = vpop.eup %2755 }
 0x4d7   :  { %v2758_v44 = vpop.eup %2757  ;;  %v1257_v46 = vmul.f32 0.5, %v2756_v43 }
 0x4d8   :  { %v1261_v47 = vmul.f32 0.5, %v2758_v44  ;;  %v2760_v56 = vpop.eup %2759 }
 0x4d9   :  { %v1258_v51 = vadd.f32 0.5, %v1257_v46  ;;  %v2762_v50 = vpop.eup %2761 }
 0x4da   :  { %v1262_v0 = vadd.f32 0.5, %v1261_v47  ;;  %v1266_v6 = vmul.f32 0.5, %v2762_v50 }
 0x4db   :  { %v1269_v35 = vmul.f32 %v2760_v56, %v1258_v51 }
 0x4dc   :  { %v1268_v10 = vmul.f32 %v1262_v0, %v1103_v62  ;;  %v1267_v17 = vadd.f32 0.5, %v1266_v6 }
 0x4de   :  { %v3505_v13 = vadd.f32 %v1269_v35, %v1268_v10 }
 0x4e0   :  { %2763 = vtanh.f32 %v3505_v13  ;;  %v1287_v35 = vmul.f32 %v1283_v22, %v3505_v13 }
 0x4ea   :  { %v2764_v60 = vpop.eup %2763 }
 0x4eb   :  { %v1272_v12 = vmul.f32 %v2764_v60, %v1267_v17 }
 0x4ed   :  { %1276 = vst [vmem:[#allocation17 + $0x18] sm:$0xff] %v1272_v12  ;;  %v1285_v26 = vmul.f32 %v1283_v22, %v1272_v12 }
 0x4ef   :  { %1358 = vmatmul.mubr.f32.vlgmr.msra.gmra.mrb[8].mxu0 %v1285_v26  ;;  %1429 = vmatmul.mubr.f32.vlgmr.msra.gmra.mrb[8].mxu1 %v1285_v26 }
 0x4f0   :  { %2454 = vmatpush1.bf16.msra.mxu0 %v3219_v52  ;;  %2486 = vmatpush1.bf16.msra.mxu1 %v3224_v58 }
 0x4f1   :  { %2456 = vmatprep.subr.bf16.mxu0 %v3222_v55  ;;  %2488 = vmatprep.subr.bf16.mxu1 %v3227_v61 }
 0x4f2   :  { %1541 = vmatprep.mubr.f32.mxu0 %v3049_v1  ;;  %1612 = vmatprep.mubr.f32.mxu1 %v3049_v1 }
 0x4f4   :  { %2458 = vmatpush1.bf16.msra.mxu0 %v3231_v2  ;;  %2490 = vmatpush1.bf16.msra.mxu1 %v3238_v8 }
 0x4f5   :  { %2460 = vmatprep.subr.bf16.mxu0 %v3234_v5  ;;  %2492 = vmatprep.subr.bf16.mxu1 %v3241_v11 }
 0x4f8   :  { %2462 = vmatpush1.bf16.msra.mxu0 %v3245_v15  ;;  %2494 = vmatpush1.bf16.msra.mxu1 %v3252_v21 }
 0x4f9   :  { %2464 = vmatprep.subr.bf16.mxu0 %v3248_v18  ;;  %2496 = vmatprep.subr.bf16.mxu1 %v3255_v24 }
 0x4fc   :  { %2466 = vmatpush1.bf16.msra.mxu0 %v3259_v28  ;;  %2498 = vmatpush1.bf16.msra.mxu1 %v3266_v34 }
 0x4fd   :  { %2468 = vmatprep.subr.bf16.mxu0 %v3262_v31  ;;  %2500 = vmatprep.subr.bf16.mxu1 %v3269_v37 }
 0x500   :  { %2470 = vmatpush1.bf16.msra.mxu0 %v3273_v41  ;;  %2502 = vmatpush1.bf16.msra.mxu1 %v3280_v49 }
 0x501   :  { %2472 = vmatprep.subr.bf16.mxu0 %v3276_v45  ;;  %2504 = vmatprep.subr.bf16.mxu1 %v3283_v53 }
 0x504   :  { %2474 = vmatpush1.bf16.msra.mxu0 %v3287_v59  ;;  %2506 = vmatpush1.bf16.msra.mxu1 %v3294_v4 }
 0x505   :  { %2476 = vmatprep.subr.bf16.mxu0 %v3290_v63  ;;  %2508 = vmatprep.subr.bf16.mxu1 %v3297_v9 }
 0x508   :  { %2478 = vmatpush1.bf16.msra.mxu0 %v3301_v14  ;;  %2510 = vmatpush1.bf16.msra.mxu1 %v3308_v23 }
 0x509   :  { %2480 = vmatprep.subr.bf16.mxu0 %v3304_v19  ;;  %2512 = vmatprep.subr.bf16.mxu1 %v3311_v25 }
 0x50c   :  { %2482 = vmatpush1.bf16.msra.mxu0 %v3315_v30  ;;  %2514 = vmatpush1.bf16.msra.mxu1 %v3320_v32 }
 0x50d   :  { %2516 = vmatprep.subr.bf16.mxu0 %v3215_v42  ;;  %2548 = vmatprep.subr.bf16.mxu1 %v3217_v48 }
 0x5c2   :  { %v1359_v7 = vpop.f32.mrb[8].mxu0  ;;  %v1430_v16 = vpop.f32.mrb[8].mxu1 }
 0x5c3   :  { %v2651_v27 = vadd.f32 %v1359_v7, %v3366_v54  ;;  %v1361_v29 = vpop.f32.mrb[9].mxu0  ;;  %v1432_v33 = vpop.f32.mrb[9].mxu1  ;;  %v2667_v40 = vadd.f32 %v1430_v16, %v3371_v3 }
 0x5c4   :  { %v2652_v36 = vadd.f32 %v1361_v29, %v3368_v57  ;;  %v2668_v43 = vadd.f32 %v1432_v33, %v3375_v20 }
 0x5c5   :  { %v1439_v38 = vmul.f32 0.5, %v2651_v27  ;;  %v1467_v27 = vpop.permute.xlu1 %1466 }
 0x5c6   :  { %v1443_v39 = vmul.f32 0.5, %v2652_v36  ;;  %v1448_v44 = vmul.f32 0.5, %v2668_v43 }
 0x5c7   :  { %2765 = vtanh.f32 %v1439_v38 }
 0x5c8   :  { %2767 = vtanh.f32 %v1443_v39 }
 0x5c9   :  { %2769 = vtanh.f32 %v2667_v40 }
 0x5ca   :  { %2771 = vtanh.f32 %v1448_v44 }
 0x5d1   :  { %v2766_v46 = vpop.eup %2765 }
 0x5d2   :  { %v2768_v47 = vpop.eup %2767  ;;  %v1441_v51 = vmul.f32 0.5, %v2766_v46 }
 0x5d3   :  { %v1445_v56 = vmul.f32 0.5, %v2768_v47  ;;  %v2770_v0 = vpop.eup %2769 }
 0x5d4   :  { %v1442_v62 = vadd.f32 0.5, %v1441_v51  ;;  %v2772_v60 = vpop.eup %2771 }
 0x5d5   :  { %v1446_v10 = vadd.f32 0.5, %v1445_v56  ;;  %v1450_v12 = vmul.f32 0.5, %v2772_v60 }
 0x5d6   :  { %v1453_v50 = vmul.f32 %v2770_v0, %v1442_v62 }
 0x5d7   :  { %v1452_v6 = vmul.f32 %v1446_v10, %v1287_v35  ;;  %v1451_v26 = vadd.f32 0.5, %v1450_v12  ;;  %v1651_v12 = vpop.permute.xlu0 %1650 }
 0x5d9   :  { %v3547_v17 = vadd.f32 %v1453_v50, %v1452_v6 }
 0x5db   :  { %2773 = vtanh.f32 %v3547_v17  ;;  %v1471_v35 = vmul.f32 %v1467_v27, %v3547_v17 }
 0x5e5   :  { %v2774_v7 = vpop.eup %2773 }
 0x5e6   :  { %v1456_v16 = vmul.f32 %v2774_v7, %v1451_v26 }
 0x5e8   :  { %1460 = vst [vmem:[#allocation17 + $0x20] sm:$0xff] %v1456_v16  ;;  %v1469_v29 = vmul.f32 %v1467_v27, %v1456_v16 }
 0x5ea   :  { %1542 = vmatmul.mubr.f32.vlgmr.msra.gmra.mrb[10].mxu0 %v1469_v29  ;;  %1613 = vmatmul.mubr.f32.vlgmr.msra.gmra.mrb[10].mxu1 %v1469_v29 }
 0x5eb   :  { %2518 = vmatpush1.bf16.msra.mxu0 %v3219_v52  ;;  %2550 = vmatpush1.bf16.msra.mxu1 %v3224_v58 }
 0x5ec   :  { %2520 = vmatprep.subr.bf16.mxu0 %v3222_v55  ;;  %2552 = vmatprep.subr.bf16.mxu1 %v3227_v61 }
 0x5ed   :  { %1725 = vmatprep.mubr.f32.mxu0 %v3049_v1  ;;  %1796 = vmatprep.mubr.f32.mxu1 %v3049_v1 }
 0x5ef   :  { %2522 = vmatpush1.bf16.msra.mxu0 %v3231_v2  ;;  %2554 = vmatpush1.bf16.msra.mxu1 %v3238_v8 }
 0x5f0   :  { %2524 = vmatprep.subr.bf16.mxu0 %v3234_v5  ;;  %2556 = vmatprep.subr.bf16.mxu1 %v3241_v11 }
 0x5f3   :  { %2526 = vmatpush1.bf16.msra.mxu0 %v3245_v15  ;;  %2558 = vmatpush1.bf16.msra.mxu1 %v3252_v21 }
 0x5f4   :  { %2528 = vmatprep.subr.bf16.mxu0 %v3248_v18  ;;  %2560 = vmatprep.subr.bf16.mxu1 %v3255_v24 }
 0x5f7   :  { %2530 = vmatpush1.bf16.msra.mxu0 %v3259_v28  ;;  %2562 = vmatpush1.bf16.msra.mxu1 %v3266_v34 }
 0x5f8   :  { %2532 = vmatprep.subr.bf16.mxu0 %v3262_v31  ;;  %2564 = vmatprep.subr.bf16.mxu1 %v3269_v37 }
 0x5fb   :  { %2534 = vmatpush1.bf16.msra.mxu0 %v3273_v41  ;;  %2566 = vmatpush1.bf16.msra.mxu1 %v3280_v49 }
 0x5fc   :  { %2536 = vmatprep.subr.bf16.mxu0 %v3276_v45  ;;  %2568 = vmatprep.subr.bf16.mxu1 %v3283_v53 }
 0x5ff   :  { %2538 = vmatpush1.bf16.msra.mxu0 %v3287_v59  ;;  %2570 = vmatpush1.bf16.msra.mxu1 %v3294_v4 }
 0x600   :  { %2540 = vmatprep.subr.bf16.mxu0 %v3290_v63  ;;  %2572 = vmatprep.subr.bf16.mxu1 %v3297_v9 }
 0x603   :  { %2542 = vmatpush1.bf16.msra.mxu0 %v3301_v14  ;;  %2574 = vmatpush1.bf16.msra.mxu1 %v3308_v23 }
 0x604   :  { %2544 = vmatprep.subr.bf16.mxu0 %v3304_v19  ;;  %2576 = vmatprep.subr.bf16.mxu1 %v3311_v25 }
 0x607   :  { %2546 = vmatpush1.bf16.msra.mxu0 %v3315_v30  ;;  %2578 = vmatpush1.bf16.msra.mxu1 %v3320_v32 }
 0x608   :  { %2580 = vmatprep.subr.bf16.mxu0 %v3215_v42  ;;  %2612 = vmatprep.subr.bf16.mxu1 %v3217_v48 }
 0x6bd   :  { %v1543_v13 = vpop.f32.mrb[10].mxu0  ;;  %v1614_v22 = vpop.f32.mrb[10].mxu1 }
 0x6be   :  { %v2653_v33 = vadd.f32 %v1543_v13, %v3366_v54  ;;  %v1545_v36 = vpop.f32.mrb[11].mxu0  ;;  %v1616_v38 = vpop.f32.mrb[11].mxu1  ;;  %v2669_v44 = vadd.f32 %v1614_v22, %v3371_v3 }
 0x6bf   :  { %v2654_v39 = vadd.f32 %v1545_v36, %v3368_v57  ;;  %v2670_v46 = vadd.f32 %v1616_v38, %v3375_v20 }
 0x6c0   :  { %v1623_v40 = vmul.f32 0.5, %v2653_v33 }
 0x6c1   :  { %v1627_v43 = vmul.f32 0.5, %v2654_v39  ;;  %v1632_v42 = vmul.f32 0.5, %v2670_v46 }
 0x6c2   :  { %2775 = vtanh.f32 %v1623_v40 }
 0x6c3   :  { %2777 = vtanh.f32 %v1627_v43 }
 0x6c4   :  { %2779 = vtanh.f32 %v2669_v44 }
 0x6c5   :  { %2781 = vtanh.f32 %v1632_v42 }
 0x6cc   :  { %v2776_v47 = vpop.eup %2775 }
 0x6cd   :  { %v2778_v48 = vpop.eup %2777  ;;  %v1625_v51 = vmul.f32 0.5, %v2776_v47 }
 0x6ce   :  { %v1629_v56 = vmul.f32 0.5, %v2778_v48  ;;  %v2780_v0 = vpop.eup %2779 }
 0x6cf   :  { %v1626_v62 = vadd.f32 0.5, %v1625_v51  ;;  %v2782_v7 = vpop.eup %2781 }
 0x6d0   :  { %v1630_v10 = vadd.f32 0.5, %v1629_v56  ;;  %v1634_v16 = vmul.f32 0.5, %v2782_v7 }
 0x6d1   :  { %v1637_v50 = vmul.f32 %v2780_v0, %v1626_v62 }
 0x6d2   :  { %v1636_v6 = vmul.f32 %v1630_v10, %v1471_v35  ;;  %v1635_v29 = vadd.f32 0.5, %v1634_v16 }
 0x6d4   :  { %v1638_v60 = vadd.f32 %v1637_v50, %v1636_v6 }
 0x6d6   :  { %2783 = vtanh.f32 %v1638_v60  ;;  %v3589_v26 = vmul.f32 %v1651_v12, %v1638_v60 }
 0x6e0   :  { %v2784_v13 = vpop.eup %2783 }
 0x6e1   :  { %v1640_v22 = vmul.f32 %v2784_v13, %v1635_v29 }
 0x6e3   :  { %1644 = vst [vmem:[#allocation17 + $0x28] sm:$0xff] %v1640_v22  ;;  %v1653_v33 = vmul.f32 %v1651_v12, %v1640_v22 }
 0x6e5   :  { %1726 = vmatmul.mubr.f32.vlgmr.msra.gmra.mrb[12].mxu0 %v1653_v33  ;;  %1797 = vmatmul.mubr.f32.vlgmr.msra.gmra.mrb[12].mxu1 %v1653_v33 }
 0x6e6   :  { %2582 = vmatpush1.bf16.msra.mxu0 %v3219_v52  ;;  %2614 = vmatpush1.bf16.msra.mxu1 %v3224_v58 }
 0x6e7   :  { %2584 = vmatprep.subr.bf16.mxu0 %v3222_v55  ;;  %2616 = vmatprep.subr.bf16.mxu1 %v3227_v61 }
 0x6e8   :  { %1909 = vmatprep.mubr.f32.mxu0 %v3049_v1  ;;  %1980 = vmatprep.mubr.f32.mxu1 %v3049_v1 }
 0x6ea   :  { %2586 = vmatpush1.bf16.msra.mxu0 %v3231_v2  ;;  %2618 = vmatpush1.bf16.msra.mxu1 %v3238_v8 }
 0x6eb   :  { %2588 = vmatprep.subr.bf16.mxu0 %v3234_v5  ;;  %2620 = vmatprep.subr.bf16.mxu1 %v3241_v11 }
 0x6ee   :  { %2590 = vmatpush1.bf16.msra.mxu0 %v3245_v15  ;;  %2622 = vmatpush1.bf16.msra.mxu1 %v3252_v21 }
 0x6ef   :  { %2592 = vmatprep.subr.bf16.mxu0 %v3248_v18  ;;  %2624 = vmatprep.subr.bf16.mxu1 %v3255_v24 }
 0x6f2   :  { %2594 = vmatpush1.bf16.msra.mxu0 %v3259_v28  ;;  %2626 = vmatpush1.bf16.msra.mxu1 %v3266_v34 }
 0x6f3   :  { %2596 = vmatprep.subr.bf16.mxu0 %v3262_v31  ;;  %2628 = vmatprep.subr.bf16.mxu1 %v3269_v37 }
 0x6f6   :  { %2598 = vmatpush1.bf16.msra.mxu0 %v3273_v41  ;;  %2630 = vmatpush1.bf16.msra.mxu1 %v3280_v49 }
 0x6f7   :  { %2600 = vmatprep.subr.bf16.mxu0 %v3276_v45  ;;  %2632 = vmatprep.subr.bf16.mxu1 %v3283_v53 }
 0x6fa   :  { %2602 = vmatpush1.bf16.msra.mxu0 %v3287_v59  ;;  %2634 = vmatpush1.bf16.msra.mxu1 %v3294_v4  ;;  %v1835_v59 = vpop.permute.xlu1 %1834 }
 0x6fb   :  { %2604 = vmatprep.subr.bf16.mxu0 %v3290_v63  ;;  %2636 = vmatprep.subr.bf16.mxu1 %v3297_v9 }
 0x6fe   :  { %2606 = vmatpush1.bf16.msra.mxu0 %v3301_v14  ;;  %2638 = vmatpush1.bf16.msra.mxu1 %v3308_v23 }
 0x6ff   :  { %2608 = vmatprep.subr.bf16.mxu0 %v3304_v19  ;;  %2640 = vmatprep.subr.bf16.mxu1 %v3311_v25 }
 0x702   :  { %2610 = vmatpush1.bf16.msra.mxu0 %v3315_v30  ;;  %2642 = vmatpush1.bf16.msra.mxu1 %v3320_v32 }
 0x7b8   :  { %v1727_v1 = vpop.f32.mrb[12].mxu0  ;;  %v1798_v52 = vpop.f32.mrb[12].mxu1 }
 0x7b9   :  { %v2655_v55 = vadd.f32 %v1727_v1, %v3366_v54  ;;  %v1729_v58 = vpop.f32.mrb[13].mxu0  ;;  %v1800_v61 = vpop.f32.mrb[13].mxu1  ;;  %v2671_v11 = vadd.f32 %v1798_v52, %v3371_v3 }
 0x7ba   :  { %v2656_v2 = vadd.f32 %v1729_v58, %v3368_v57  ;;  %v2672_v15 = vadd.f32 %v1800_v61, %v3375_v20 }
 0x7bb   :  { %v1807_v5 = vmul.f32 0.5, %v2655_v55 }
 0x7bc   :  { %v1811_v8 = vmul.f32 0.5, %v2656_v2  ;;  %v1816_v18 = vmul.f32 0.5, %v2672_v15 }
 0x7bd   :  { %2785 = vtanh.f32 %v1807_v5 }
 0x7be   :  { %2787 = vtanh.f32 %v1811_v8 }
 0x7bf   :  { %2789 = vtanh.f32 %v2671_v11 }
 0x7c0   :  { %2791 = vtanh.f32 %v1816_v18 }
 0x7c7   :  { %v2786_v21 = vpop.eup %2785 }
 0x7c8   :  { %v2788_v24 = vpop.eup %2787  ;;  %v1809_v28 = vmul.f32 0.5, %v2786_v21 }
 0x7c9   :  { %v1813_v31 = vmul.f32 0.5, %v2788_v24  ;;  %v2790_v37 = vpop.eup %2789 }
 0x7ca   :  { %v1810_v34 = vadd.f32 0.5, %v1809_v28  ;;  %v2792_v4 = vpop.eup %2791 }
 0x7cb   :  { %v1814_v41 = vadd.f32 0.5, %v1813_v31  ;;  %v1818_v9 = vmul.f32 0.5, %v2792_v4 }
 0x7cc   :  { %v1821_v45 = vmul.f32 %v2790_v37, %v1810_v34 }
 0x7cd   :  { %v1820_v49 = vmul.f32 %v1814_v41, %v3589_v26  ;;  %v1819_v14 = vadd.f32 0.5, %v1818_v9 }
 0x7cf   :  { %v1822_v53 = vadd.f32 %v1821_v45, %v1820_v49 }
 0x7d1   :  { %2793 = vtanh.f32 %v1822_v53  ;;  %v1839_v63 = vmul.f32 %v1835_v59, %v1822_v53 }
 0x7db   :  { %v2794_v19 = vpop.eup %2793 }
 0x7dc   :  { %v1824_v23 = vmul.f32 %v2794_v19, %v1819_v14 }
 0x7de   :  { %1828 = vst [vmem:[#allocation17 + $0x30] sm:$0xff] %v1824_v23  ;;  %v1837_v25 = vmul.f32 %v1835_v59, %v1824_v23 }
 0x7e0   :  { %1910 = vmatmul.mubr.f32.vlgmr.msra.gmra.mrb[14].mxu0 %v1837_v25  ;;  %1981 = vmatmul.mubr.f32.vlgmr.msra.gmra.mrb[14].mxu1 %v1837_v25 }
 0x8b3   :  { %v1911_v30 = vpop.f32.mrb[14].mxu0  ;;  %v1982_v32 = vpop.f32.mrb[14].mxu1 }
 0x8b4   :  { %v2657_v17 = vadd.f32 %v1911_v30, %v3366_v54  ;;  %v1913_v27 = vpop.f32.mrb[15].mxu0  ;;  %v1984_v36 = vpop.f32.mrb[15].mxu1  ;;  %v2673_v43 = vadd.f32 %v1982_v32, %v3371_v3 }
 0x8b5   :  { %v2658_v38 = vadd.f32 %v1913_v27, %v3368_v57  ;;  %v2674_v44 = vadd.f32 %v1984_v36, %v3375_v20 }
 0x8b6   :  { %v1991_v39 = vmul.f32 0.5, %v2657_v17 }
 0x8b7   :  { %v1995_v40 = vmul.f32 0.5, %v2658_v38  ;;  %v2000_v46 = vmul.f32 0.5, %v2674_v44 }
 0x8b8   :  { %2795 = vtanh.f32 %v1991_v39 }
 0x8b9   :  { %2797 = vtanh.f32 %v1995_v40 }
 0x8ba   :  { %2799 = vtanh.f32 %v2673_v43 }
 0x8bb   :  { %2801 = vtanh.f32 %v2000_v46 }
 0x8c2   :  { %v2796_v42 = vpop.eup %2795 }
 0x8c3   :  { %v2798_v47 = vpop.eup %2797  ;;  %v1993_v48 = vmul.f32 0.5, %v2796_v42 }
 0x8c4   :  { %v1997_v51 = vmul.f32 0.5, %v2798_v47  ;;  %v2800_v56 = vpop.eup %2799 }
 0x8c5   :  { %v1994_v54 = vadd.f32 0.5, %v1993_v48  ;;  %v2802_v10 = vpop.eup %2801 }
 0x8c6   :  { %v1998_v62 = vadd.f32 0.5, %v1997_v51  ;;  %v2002_v3 = vmul.f32 0.5, %v2802_v10 }
 0x8c7   :  { %v2005_v0 = vmul.f32 %v2800_v56, %v1994_v54 }
 0x8c8   :  { %v2004_v57 = vmul.f32 %v1998_v62, %v1839_v63  ;;  %v2003_v50 = vadd.f32 0.5, %v2002_v3 }
 0x8ca   :  { %v2006_v35 = vadd.f32 %v2005_v0, %v2004_v57 }
 0x8cc   :  { %2803 = vtanh.f32 %v2006_v35  ;;  %2019 = vst [vmem:[#allocation20] sm:$0xff] %v2006_v35 }
 0x8d6   :  { %v2804_v20 = vpop.eup %2803 }
 0x8d7   :  { %v2008_v6 = vmul.f32 %v2804_v20, %v2003_v50 }
 0x8d9   :  { %2012 = vst [vmem:[#allocation17 + $0x38] sm:$0xff] %v2008_v6  ;;  %2017 = vst [vmem:[#allocation18] sm:$0xff] %v2008_v6 }
 0x8da   :  { %2970 = shalt.err (!%p2967_p4)
}
 0x8db   :  { %s2971_s5 = scalar_lea.hbm %s3693_s8, 128 }
 0x8dc   :  { %p2972_p5 = scmp.ne.s32.totalorder %s3693_s8, %s2971_s5  ;;  %p2975_p6 = scmp.lt.u32.totalorder %s2971_s5, %s3693_s8 }
 0x8de   :  { %p2977_p7 = pnand %p2975_p6, %p2972_p5 }
 0x8e0   :  { %2980 = shalt.err (!%p2977_p7)
}
 0x8e1   :  { %2041 = dma.vmem_to_hbm [thread:$0]  %s2039_s27, 128, %s3693_s8, [#allocation19]  }
 0x8e2   :  { %s2981_s26 = scalar_lea.vmem %s3632_s13, 1024  ;;  %p2986_p9 = scmp.lt.s32.totalorder %s3632_s13, %s3632_s13 }
 0x8e3   :  { %p2982_p8 = scmp.ne.s32.totalorder %s3632_s13, %s2981_s26  ;;  %p2987_p10 = scmp.lt.s32.totalorder %s2981_s26, %s2981_s26 }
 0x8e5   :  { %p2988_p11 = por %p2987_p10, %p2986_p9 }
 0x8e7   :  { %p2989_p12 = pnand %p2988_p11, %p2982_p8 }
 0x8e9   :  { %2992 = shalt.err (!%p2989_p12)
}
 0x8ea   :  { %s2993_s29 = scalar_lea.hbm %s3692_s7, 1024 }
 0x8eb   :  { %p2994_p13 = scmp.ne.s32.totalorder %s3692_s7, %s2993_s29  ;;  %p2997_p0 = scmp.lt.u32.totalorder %s2993_s29, %s3692_s7 }
 0x8ed   :  { %p2999_p1 = pnand %p2997_p0, %p2994_p13 }
 0x8ef   :  { %3002 = shalt.err (!%p2999_p1)
}
 0x8f0   :  { %2031 = dma.vmem_to_hbm [thread:$0]  %s3632_s13, 1024, %s3692_s7, [#allocation7], %s3039_s21, %s3039_s21, %s3040_s22  }
 0x8f1   :  { %s3003_s12 = scalar_lea.vmem %s3634_s10, 128  ;;  %p3008_p3 = scmp.lt.s32.totalorder %s3634_s10, %s3634_s10 }
 0x8f2   :  { %p3004_p2 = scmp.ne.s32.totalorder %s3634_s10, %s3003_s12  ;;  %p3009_p4 = scmp.lt.s32.totalorder %s3003_s12, %s3003_s12 }
 0x8f4   :  { %p3010_p5 = por %p3009_p4, %p3008_p3 }
 0x8f6   :  { %p3011_p6 = pnand %p3010_p5, %p3004_p2 }
 0x8f8   :  { %3014 = shalt.err (!%p3011_p6)
}
 0x8f9   :  { %s3015_s24 = scalar_lea.hbm %s3694_s9, 128 }
 0x8fa   :  { %p3016_p7 = scmp.ne.s32.totalorder %s3694_s9, %s3015_s24  ;;  %p3019_p8 = scmp.lt.u32.totalorder %s3015_s24, %s3694_s9 }
 0x8fc   :  { %p3021_p9 = pnand %p3019_p8, %p3016_p7 }
 0x8fe   :  { %3024 = shalt.err (!%p3021_p9)
}
 0x8ff   :  { %2051 = dma.vmem_to_hbm [thread:$0]  %s3634_s10, 128, %s3694_s9, [#allocation19]  }
 0x900   :  { %3033 = dma.done.wait [#allocation7], 1024  }
 0x901   :  { %3034 = vsyncadd [#allocation7], 4294966272 }
 0x902   :  { %3035 = dma.done.wait [#allocation19], 256  }
 0x903   :  { %3036 = vsyncadd [#allocation19], 4294967040 }
 0x904   :  { %2061 = vsyncpa [#allocation6], 1 }
 0x905   :  { %2062 = vsyncpa [#allocation9], 1 }
 0x906   :  { %2063 = vsyncpa [#allocation12], 1 }
 0x907   :  { %2064 = vsyncpa [#allocation15], 1 }
 0x908   :  { %2065 = vsyncpa [#allocation7], 1 }
 0x909   :  { %2066 = vsyncpa [#allocation19], 1 }

// kernel: tpu_custom_call.1
= control target key start
LH: loop header
LB: loop body
LE: loop exit
PB: predicated region body
PF: predicated region fallthrough
CT: control target
= control target key end

     0   :  { %15 = vsyncpa [#allocation6], 0  ;;  %s3685_s0 = inlined_call_operand.hbm [shape: f32[8,8,128], index: 0, kind: input, shape index: {}]   ;;  %s3686_s1 = inlined_call_operand.hbm [shape: f32[8,8,1], index: 1, kind: input, shape index: {}]   ;;  %s3687_s2 = inlined_call_operand.hbm [shape: f32[8,128], index: 2, kind: input, shape index: {}]   ;;  %s3688_s3 = inlined_call_operand.hbm [shape: f32[8,128], index: 3, kind: input, shape index: {}]   ;;  %s3689_s4 = inlined_call_operand.hbm [shape: f32[128,512], index: 4, kind: input, shape index: {}]   ;;  %s3690_s5 = inlined_call_operand.hbm [shape: f32[128,512], index: 5, kind: input, shape index: {}]   ;;  %s3691_s6 = inlined_call_operand.hbm [shape: f32[1,512], index: 6, kind: input, shape index: {}]   ;;  %s3692_s7 = inlined_call_operand.hbm [shape: f32[8,8,128], index: 7, kind: output, shape index: {0}]   ;;  %s3693_s8 = inlined_call_operand.hbm [shape: f32[8,128], index: 8, kind: output, shape index: {1}]   ;;  %s3694_s9 = inlined_call_operand.hbm [shape: f32[8,128], index: 9, kind: output, shape index: {2}]  }
   0x1   :  { %16 = vsyncpa [#allocation9], 0 }
   0x2   :  { %17 = vsyncpa [#allocation12], 0 }
   0x3   :  { %18 = vsyncpa [#allocation15], 0 }
   0x4   :  { %19 = vsyncpa [#allocation7], 0 }
   0x5   :  { %20 = vsyncpa [#allocation19], 0  ;;  %s3037_s30 = smov [#allocation8]   ;;  %s3038_s11 = smov [#allocation11]  }
   0x6   :  { %s38_s10 = sshll.u32 %s3037_s30, 4  ;;  %s61_s12 = sshll.u32 %s3038_s11, 4  ;;  %s39_s10 = int_to_ptr.vmem [resolvable:$true] %s38_s10  ;;  %s62_s12 = int_to_ptr.vmem [resolvable:$true] %s61_s12 }
   0x7   :  { %s2805_s15 = scalar_lea.hbm %s3686_s1, 1024 }
   0x8   :  { %p2806_p0 = scmp.ne.s32.totalorder %s3686_s1, %s2805_s15  ;;  %p2809_p1 = scmp.lt.u32.totalorder %s2805_s15, %s3686_s1 }
   0xa   :  { %p2811_p2 = pnand %p2809_p1, %p2806_p0 }
   0xc   :  { %2814 = shalt.err (!%p2811_p2)
}
   0xd   :  { %s2815_s20 = scalar_lea.vmem %s39_s10, 1024  ;;  %p2820_p4 = scmp.lt.s32.totalorder %s39_s10, %s39_s10 }
   0xe   :  { %p2816_p3 = scmp.ne.s32.totalorder %s39_s10, %s2815_s20  ;;  %p2821_p5 = scmp.lt.s32.totalorder %s2815_s20, %s2815_s20 }
  0x10   :  { %p2822_p6 = por %p2821_p5, %p2820_p4 }
  0x12   :  { %p2823_p7 = pnand %p2822_p6, %p2816_p3 }
  0x14   :  { %2826 = shalt.err (!%p2823_p7)
}
  0x15   :  { %s3039_s21 = smov 128   ;;  %s3040_s22 = smov 8  }
  0x16   :  { %44 = dma.hbm_to_vmem [thread:$0]  %s3686_s1, 1024, %s39_s10, [#allocation9], %s3039_s21, %s3039_s21, %s3040_s22  }
  0x17   :  { %s2827_s27 = scalar_lea.hbm %s3688_s3, 128 }
  0x18   :  { %p2828_p8 = scmp.ne.s32.totalorder %s3688_s3, %s2827_s27  ;;  %p2831_p9 = scmp.lt.u32.totalorder %s2827_s27, %s3688_s3 }
  0x1a   :  { %p2833_p10 = pnand %p2831_p9, %p2828_p8 }
  0x1c   :  { %2836 = shalt.err (!%p2833_p10)
}
  0x1d   :  { %s2837_s13 = scalar_lea.vmem %s62_s12, 128  ;;  %p2842_p12 = scmp.lt.s32.totalorder %s62_s12, %s62_s12 }
  0x1e   :  { %p2838_p11 = scmp.ne.s32.totalorder %s62_s12, %s2837_s13  ;;  %p2843_p13 = scmp.lt.s32.totalorder %s2837_s13, %s2837_s13 }
  0x20   :  { %p2844_p0 = por %p2843_p13, %p2842_p12 }
  0x22   :  { %p2845_p1 = pnand %p2844_p0, %p2838_p11 }
  0x24   :  { %2848 = shalt.err (!%p2845_p1)
}
  0x25   :  { %64 = dma.hbm_to_vmem [thread:$0]  %s3688_s3, 128, %s62_s12, [#allocation12]  }
  0x26   :  { %s3041_s14 = smov [#allocation14]   ;;  %s3042_s16 = smov [#allocation5]  }
  0x27   :  { %s82_s15 = sshll.u32 %s3041_s14, 4  ;;  %s26_s17 = sshll.u32 %s3042_s16, 4  ;;  %s83_s15 = int_to_ptr.vmem [resolvable:$true] %s82_s15  ;;  %s3130_s17 = int_to_ptr.vmem [resolvable:$true] %s26_s17 }
  0x28   :  { %s2849_s20 = scalar_lea.hbm %s3690_s5, 8192 }
  0x29   :  { %p2850_p2 = scmp.ne.s32.totalorder %s3690_s5, %s2849_s20  ;;  %p2853_p3 = scmp.lt.u32.totalorder %s2849_s20, %s3690_s5 }
  0x2b   :  { %p2855_p4 = pnand %p2853_p3, %p2850_p2 }
  0x2d   :  { %2858 = shalt.err (!%p2855_p4)
}
  0x2e   :  { %s2859_s3 = scalar_lea.vmem %s83_s15, 8192  ;;  %p2864_p6 = scmp.lt.s32.totalorder %s83_s15, %s83_s15 }
  0x2f   :  { %p2860_p5 = scmp.ne.s32.totalorder %s83_s15, %s2859_s3  ;;  %p2865_p7 = scmp.lt.s32.totalorder %s2859_s3, %s2859_s3 }
  0x31   :  { %p2866_p8 = por %p2865_p7, %p2864_p6 }
  0x33   :  { %p2867_p9 = pnand %p2866_p8, %p2860_p5 }
  0x35   :  { %2870 = shalt.err (!%p2867_p9)
}
  0x36   :  { %s3043_s12 = smov 512   ;;  %s3044_s27 = smov 32  }
  0x37   :  { %88 = dma.hbm_to_vmem [thread:$0]  %s3690_s5, 8192, %s83_s15, [#allocation15], %s3043_s12, %s3043_s12, %s3044_s27  }
  0x38   :  { %s2871_s13 = scalar_lea.hbm %s3685_s0, 1024 }
  0x39   :  { %p2872_p10 = scmp.ne.s32.totalorder %s3685_s0, %s2871_s13  ;;  %p2875_p11 = scmp.lt.u32.totalorder %s2871_s13, %s3685_s0 }
  0x3b   :  { %p2877_p12 = pnand %p2875_p11, %p2872_p10 }
  0x3d   :  { %2880 = shalt.err (!%p2877_p12)
}
  0x3e   :  { %s2881_s18 = scalar_lea.vmem %s3130_s17, 1024  ;;  %p2886_p0 = scmp.lt.s32.totalorder %s3130_s17, %s3130_s17 }
  0x3f   :  { %p2882_p13 = scmp.ne.s32.totalorder %s3130_s17, %s2881_s18  ;;  %p2887_p1 = scmp.lt.s32.totalorder %s2881_s18, %s2881_s18 }
  0x41   :  { %p2888_p2 = por %p2887_p1, %p2886_p0 }
  0x43   :  { %p2889_p3 = pnand %p2888_p2, %p2882_p13 }
  0x45   :  { %2892 = shalt.err (!%p2889_p3)
}
  0x46   :  { %32 = dma.hbm_to_vmem [thread:$0]  %s3685_s0, 1024, %s3130_s17, [#allocation6], %s3039_s21, %s3039_s21, %s3040_s22  }
  0x47   :  { %s3045_s19 = smov [#allocation10]   ;;  %s3046_s23 = smov [#allocation13]  }
  0x48   :  { %s51_s20 = sshll.u32 %s3045_s19, 4  ;;  %s70_s24 = sshll.u32 %s3046_s23, 4  ;;  %s52_s20 = int_to_ptr.vmem [resolvable:$true] %s51_s20  ;;  %s3167_s24 = int_to_ptr.vmem [resolvable:$true] %s70_s24 }
  0x49   :  { %s2893_s3 = scalar_lea.hbm %s3687_s2, 128 }
  0x4a   :  { %p2894_p4 = scmp.ne.s32.totalorder %s3687_s2, %s2893_s3  ;;  %p2897_p5 = scmp.lt.u32.totalorder %s2893_s3, %s3687_s2 }
  0x4c   :  { %p2899_p6 = pnand %p2897_p5, %p2894_p4 }
  0x4e   :  { %2902 = shalt.err (!%p2899_p6)
}
  0x4f   :  { %s2903_s0 = scalar_lea.vmem %s52_s20, 128  ;;  %p2908_p8 = scmp.lt.s32.totalorder %s52_s20, %s52_s20 }
  0x50   :  { %p2904_p7 = scmp.ne.s32.totalorder %s52_s20, %s2903_s0  ;;  %p2909_p9 = scmp.lt.s32.totalorder %s2903_s0, %s2903_s0 }
  0x52   :  { %p2910_p10 = por %p2909_p9, %p2908_p8 }
  0x54   :  { %p2911_p11 = pnand %p2910_p10, %p2904_p7 }
  0x56   :  { %2914 = shalt.err (!%p2911_p11)
}
  0x57   :  { %54 = dma.hbm_to_vmem [thread:$0]  %s3687_s2, 128, %s52_s20, [#allocation9]  }
  0x58   :  { %s2915_s14 = scalar_lea.hbm %s3689_s4, 8192 }
  0x59   :  { %p2916_p12 = scmp.ne.s32.totalorder %s3689_s4, %s2915_s14  ;;  %p2919_p13 = scmp.lt.u32.totalorder %s2915_s14, %s3689_s4 }
  0x5b   :  { %p2921_p0 = pnand %p2919_p13, %p2916_p12 }
  0x5d   :  { %2924 = shalt.err (!%p2921_p0)
}
  0x5e   :  { %s2925_s19 = scalar_lea.vmem %s3167_s24, 8192  ;;  %p2930_p2 = scmp.lt.s32.totalorder %s3167_s24, %s3167_s24 }
  0x5f   :  { %p2926_p1 = scmp.ne.s32.totalorder %s3167_s24, %s2925_s19  ;;  %p2931_p3 = scmp.lt.s32.totalorder %s2925_s19, %s2925_s19 }
  0x61   :  { %p2932_p4 = por %p2931_p3, %p2930_p2 }
  0x63   :  { %p2933_p5 = pnand %p2932_p4, %p2926_p1 }
  0x65   :  { %2936 = shalt.err (!%p2933_p5)
}
  0x66   :  { %76 = dma.hbm_to_vmem [thread:$0]  %s3689_s4, 8192, %s3167_s24, [#allocation12], %s3043_s12, %s3043_s12, %s3044_s27  }
  0x67   :  { %s3047_s23 = smov [#allocation16]   ;;  %s2937_s28 = scalar_lea.hbm %s3691_s6, 64 }
  0x68   :  { %s95_s25 = sshll.u32 %s3047_s23, 4  ;;  %p2938_p6 = scmp.ne.s32.totalorder %s3691_s6, %s2937_s28  ;;  %s96_s25 = int_to_ptr.vmem [resolvable:$true] %s95_s25 }
  0x69   :  { %p2941_p7 = scmp.lt.u32.totalorder %s2937_s28, %s3691_s6 }
  0x6b   :  { %p2943_p8 = pnand %p2941_p7, %p2938_p6 }
  0x6d   :  { %2946 = shalt.err (!%p2943_p8)
}
  0x6e   :  { %s2947_s17 = scalar_lea.vmem %s96_s25, 64  ;;  %p2952_p10 = scmp.lt.s32.totalorder %s96_s25, %s96_s25 }
  0x6f   :  { %p2948_p9 = scmp.ne.s32.totalorder %s96_s25, %s2947_s17  ;;  %p2953_p11 = scmp.lt.s32.totalorder %s2947_s17, %s2947_s17 }
  0x71   :  { %p2954_p12 = por %p2953_p11, %p2952_p10 }
  0x73   :  { %p2955_p13 = pnand %p2954_p12, %p2948_p9 }
  0x75   :  { %2958 = shalt.err (!%p2955_p13)
}
  0x76   :  { %98 = dma.hbm_to_vmem [thread:$0]  %s3691_s6, 64, %s96_s25, [#allocation15]  }
  0x77   :  { %3025 = dma.done.wait [#allocation6], 1024  }
  0x78   :  { %3026 = vsyncadd [#allocation6], 4294966272 }
  0x79   :  { %3027 = dma.done.wait [#allocation9], 1152  }
  0x7a   :  { %3028 = vsyncadd [#allocation9], 4294966144 }
  0x7b   :  { %3029 = dma.done.wait [#allocation12], 8320  }
  0x7c   :  { %3030 = vsyncadd [#allocation12], 4294958976 }
  0x7d   :  { %3031 = dma.done.wait [#allocation15], 8256  }
  0x7e   :  { %3032 = vsyncadd [#allocation15], 4294959040  ;;  %v3048_v0 = vmov 0   ;;  %v3049_v1 = vmov 0.0   ;;  %v544_v2 = vld [vmem:[#allocation8] sm:$0xff]  ;;  %v726_v3 = vld [vmem:[#allocation8 + $0x8] sm:$0xff] }
  0x7f   :  { %2723 = vset.pattern.permute.xlu0 %v3048_v0  ;;  %350 = vmatprep.mubr.f32.mxu0 %v3049_v1  ;;  %v129_v4 = vld [vmem:[#allocation13 + $0x8] sm:$0xff]  ;;  %v128_v7 = vld [vmem:[#allocation13] sm:$0xff]  ;;  %v131_v9 = vld [vmem:[#allocation13 + $0x18] sm:$0xff]  ;;  %s3050_s6 = smov [#allocation18]   ;;  %s3051_s24 = smov [#allocation17]  }
  0x80   :  { %463 = vmatprep.mubr.f32.mxu1 %v3049_v1  ;;  %2724 = vset.pattern.permute.xlu1 %v3048_v0  ;;  %v133_v5 = vld [vmem:[#allocation13 + $0x28] sm:$0xff]  ;;  %v132_v8 = vld [vmem:[#allocation13 + $0x20] sm:$0xff]  ;;  %v135_v11 = vld [vmem:[#allocation13 + $0x38] sm:$0xff]  ;;  %s2038_s27 = sshll.u32 %s3050_s6, 4  ;;  %s2025_s13 = sshll.u32 %s3051_s24, 4  ;;  %s2039_s27 = int_to_ptr.vmem [resolvable:$true] %s2038_s27  ;;  %s3632_s13 = int_to_ptr.vmem [resolvable:$true] %s2025_s13 }
  0x81   :  { %548 = vperm.xlu0 %2723, %v544_v2   ;;  %v2067_v6 = vpack.c.bf16 %v133_v5, %v129_v4  ;;  %v2069_v10 = vpack.c.bf16 %v132_v8, %v128_v7  ;;  %v130_v12 = vld [vmem:[#allocation13 + $0x10] sm:$0xff]  ;;  %v2099_v15 = vpack.c.bf16 %v135_v11, %v131_v9  ;;  %v137_v17 = vld [vmem:[#allocation13 + $0x48] sm:$0xff]  ;;  %v136_v19 = vld [vmem:[#allocation13 + $0x40] sm:$0xff]  ;;  %s3052_s1 = smov [#allocation20]   ;;  %s2959_s14 = scalar_lea.vmem %s2039_s27, 128 }
  0x82   :  { %v134_v13 = vld [vmem:[#allocation13 + $0x30] sm:$0xff]  ;;  %v141_v18 = vld [vmem:[#allocation13 + $0x68] sm:$0xff]  ;;  %v140_v21 = vld [vmem:[#allocation13 + $0x60] sm:$0xff]  ;;  %s2048_s10 = sshll.u32 %s3052_s1, 4  ;;  %p2960_p0 = scmp.ne.s32.totalorder %s2039_s27, %s2959_s14  ;;  %s3634_s10 = int_to_ptr.vmem [resolvable:$true] %s2048_s10 }
  0x83   :  { %v1278_v14 = vld [vmem:[#allocation8 + $0x20] sm:$0xff]  ;;  %2068 = vmatprep.subr.bf16.mxu0 %v2067_v6  ;;  %v2101_v16 = vpack.c.bf16 %v134_v13, %v130_v12  ;;  %v2071_v20 = vpack.c.bf16 %v141_v18, %v137_v17  ;;  %v139_v22 = vld [vmem:[#allocation13 + $0x58] sm:$0xff]  ;;  %2100 = vmatprep.subr.bf16.mxu1 %v2099_v15  ;;  %v2073_v24 = vpack.c.bf16 %v140_v21, %v136_v19  ;;  %v145_v28 = vld [vmem:[#allocation13 + $0x88] sm:$0xff]  ;;  %p2964_p1 = scmp.lt.s32.totalorder %s2039_s27, %s2039_s27  ;;  %p2965_p2 = scmp.lt.s32.totalorder %s2959_s14, %s2959_s14 }
  0x84   :  { %2070 = vmatpush1.bf16.msra.mxu0 %v2069_v10  ;;  %v143_v23 = vld [vmem:[#allocation13 + $0x78] sm:$0xff]  ;;  %v138_v26 = vld [vmem:[#allocation13 + $0x50] sm:$0xff]  ;;  %v149_v30 = vld [vmem:[#allocation13 + $0xa8] sm:$0xff] }
  0x85   :  { %730 = vperm.xlu0 %2723, %v726_v3   ;;  %v2103_v25 = vpack.c.bf16 %v143_v23, %v139_v22  ;;  %v142_v27 = vld [vmem:[#allocation13 + $0x70] sm:$0xff]  ;;  %2102 = vmatpush1.bf16.msra.mxu1 %v2101_v16  ;;  %v144_v31 = vld [vmem:[#allocation13 + $0x80] sm:$0xff]  ;;  %v2075_v34 = vpack.c.bf16 %v149_v30, %v145_v28  ;;  %v147_v35 = vld [vmem:[#allocation13 + $0x98] sm:$0xff]  ;;  %p2966_p3 = por %p2965_p2, %p2964_p1 }
  0x86   :  { %2072 = vmatprep.subr.bf16.mxu0 %v2071_v20  ;;  %v2105_v29 = vpack.c.bf16 %v142_v27, %v138_v26  ;;  %v148_v32 = vld [vmem:[#allocation13 + $0xa0] sm:$0xff]  ;;  %v151_v36 = vld [vmem:[#allocation13 + $0xb8] sm:$0xff]  ;;  %v146_v37 = vld [vmem:[#allocation13 + $0x90] sm:$0xff] }
  0x87   :  { %v1646_v33 = vld [vmem:[#allocation8 + $0x30] sm:$0xff]  ;;  %2104 = vmatprep.subr.bf16.mxu1 %v2103_v25  ;;  %v2077_v38 = vpack.c.bf16 %v148_v32, %v144_v31  ;;  %v2107_v39 = vpack.c.bf16 %v151_v36, %v147_v35  ;;  %v150_v40 = vld [vmem:[#allocation13 + $0xb0] sm:$0xff]  ;;  %v153_v41 = vld [vmem:[#allocation13 + $0xc8] sm:$0xff]  ;;  %p2967_p4 = pnand %p2966_p3, %p2960_p0 }
  0x88   :  { %2074 = vmatpush1.bf16.msra.mxu0 %v2073_v24  ;;  %v157_v42 = vld [vmem:[#allocation13 + $0xe8] sm:$0xff]  ;;  %v152_v44 = vld [vmem:[#allocation13 + $0xc0] sm:$0xff]  ;;  %v155_v46 = vld [vmem:[#allocation13 + $0xd8] sm:$0xff]  ;;  %v2109_v47 = vpack.c.bf16 %v150_v40, %v146_v37 }
  0x89   :  { %1282 = vperm.xlu0 %2723, %v1278_v14   ;;  %2076 = vmatprep.subr.bf16.mxu0 %v2075_v34  ;;  %v2079_v43 = vpack.c.bf16 %v157_v42, %v153_v41  ;;  %v156_v45 = vld [vmem:[#allocation13 + $0xe0] sm:$0xff]  ;;  %v159_v48 = vld [vmem:[#allocation13 + $0xf8] sm:$0xff]  ;;  %v154_v49 = vld [vmem:[#allocation13 + $0xd0] sm:$0xff] }
  0x8a   :  { %2106 = vmatpush1.bf16.msra.mxu1 %v2105_v29  ;;  %v2111_v50 = vpack.c.bf16 %v159_v48, %v155_v46  ;;  %v158_v51 = vld [vmem:[#allocation13 + $0xf0] sm:$0xff]  ;;  %v161_v52 = vld [vmem:[#allocation13 + $0x108] sm:$0xff]  ;;  %v2081_v54 = vpack.c.bf16 %v156_v45, %v152_v44  ;;  %v163_v55 = vld [vmem:[#allocation13 + $0x118] sm:$0xff] }
  0x8b   :  { %2108 = vmatprep.subr.bf16.mxu1 %v2107_v39  ;;  %v165_v53 = vld [vmem:[#allocation13 + $0x128] sm:$0xff]  ;;  %v167_v56 = vld [vmem:[#allocation13 + $0x138] sm:$0xff]  ;;  %v160_v58 = vld [vmem:[#allocation13 + $0x100] sm:$0xff]  ;;  %v2113_v60 = vpack.c.bf16 %v158_v51, %v154_v49 }
  0x8c   :  { %2078 = vmatpush1.bf16.msra.mxu0 %v2077_v38  ;;  %v2083_v57 = vpack.c.bf16 %v165_v53, %v161_v52  ;;  %v164_v59 = vld [vmem:[#allocation13 + $0x120] sm:$0xff]  ;;  %v169_v61 = vld [vmem:[#allocation13 + $0x148] sm:$0xff]  ;;  %v2115_v63 = vpack.c.bf16 %v167_v56, %v163_v55  ;;  %v162_v0 = vld [vmem:[#allocation13 + $0x110] sm:$0xff] }
  0x8d   :  { %1650 = vperm.xlu0 %2723, %v1646_v33   ;;  %2080 = vmatprep.subr.bf16.mxu0 %v2079_v43  ;;  %v173_v62 = vld [vmem:[#allocation13 + $0x168] sm:$0xff]  ;;  %v166_v2 = vld [vmem:[#allocation13 + $0x130] sm:$0xff]  ;;  %v2085_v3 = vpack.c.bf16 %v164_v59, %v160_v58  ;;  %v171_v4 = vld [vmem:[#allocation13 + $0x158] sm:$0xff] }
  0x8e   :  { %2110 = vmatpush1.bf16.msra.mxu1 %v2109_v47  ;;  %v175_v5 = vld [vmem:[#allocation13 + $0x178] sm:$0xff]  ;;  %v2087_v6 = vpack.c.bf16 %v173_v62, %v169_v61  ;;  %v168_v7 = vld [vmem:[#allocation13 + $0x140] sm:$0xff]  ;;  %v2117_v9 = vpack.c.bf16 %v166_v2, %v162_v0  ;;  %v177_v10 = vld [vmem:[#allocation13 + $0x188] sm:$0xff] }
  0x8f   :  { %2112 = vmatprep.subr.bf16.mxu1 %v2111_v50  ;;  %v172_v8 = vld [vmem:[#allocation13 + $0x160] sm:$0xff]  ;;  %v181_v11 = vld [vmem:[#allocation13 + $0x1a8] sm:$0xff]  ;;  %v2119_v12 = vpack.c.bf16 %v175_v5, %v171_v4  ;;  %v170_v13 = vld [vmem:[#allocation13 + $0x150] sm:$0xff] }
  0x90   :  { %2082 = vmatpush1.bf16.msra.mxu0 %v2081_v54  ;;  %v174_v14 = vld [vmem:[#allocation13 + $0x170] sm:$0xff]  ;;  %v2089_v15 = vpack.c.bf16 %v172_v8, %v168_v7  ;;  %v179_v16 = vld [vmem:[#allocation13 + $0x198] sm:$0xff]  ;;  %v2091_v18 = vpack.c.bf16 %v181_v11, %v177_v10  ;;  %v176_v19 = vld [vmem:[#allocation13 + $0x180] sm:$0xff] }
  0x91   :  { %2084 = vmatprep.subr.bf16.mxu0 %v2083_v57  ;;  %v183_v17 = vld [vmem:[#allocation13 + $0x1b8] sm:$0xff]  ;;  %v180_v20 = vld [vmem:[#allocation13 + $0x1a0] sm:$0xff]  ;;  %v2121_v21 = vpack.c.bf16 %v174_v14, %v170_v13  ;;  %v185_v22 = vld [vmem:[#allocation13 + $0x1c8] sm:$0xff] }
  0x92   :  { %2114 = vmatpush1.bf16.msra.mxu1 %v2113_v60  ;;  %v189_v23 = vld [vmem:[#allocation13 + $0x1e8] sm:$0xff]  ;;  %v2123_v24 = vpack.c.bf16 %v183_v17, %v179_v16  ;;  %v178_v25 = vld [vmem:[#allocation13 + $0x190] sm:$0xff]  ;;  %v2093_v27 = vpack.c.bf16 %v180_v20, %v176_v19  ;;  %v187_v28 = vld [vmem:[#allocation13 + $0x1d8] sm:$0xff] }
  0x93   :  { %2116 = vmatprep.subr.bf16.mxu1 %v2115_v63  ;;  %v182_v26 = vld [vmem:[#allocation13 + $0x1b0] sm:$0xff]  ;;  %v191_v29 = vld [vmem:[#allocation13 + $0x1f8] sm:$0xff]  ;;  %v2095_v30 = vpack.c.bf16 %v189_v23, %v185_v22  ;;  %v184_v31 = vld [vmem:[#allocation13 + $0x1c0] sm:$0xff] }
  0x94   :  { %2086 = vmatpush1.bf16.msra.mxu0 %v2085_v3  ;;  %v188_v32 = vld [vmem:[#allocation13 + $0x1e0] sm:$0xff]  ;;  %v2125_v33 = vpack.c.bf16 %v182_v26, %v178_v25  ;;  %v193_v34 = vld [vmem:[#allocation14 + $0x8] sm:$0xff]  ;;  %v2127_v36 = vpack.c.bf16 %v191_v29, %v187_v28  ;;  %v186_v37 = vld [vmem:[#allocation13 + $0x1d0] sm:$0xff] }
  0x95   :  { %2088 = vmatprep.subr.bf16.mxu0 %v2087_v6  ;;  %v197_v35 = vld [vmem:[#allocation14 + $0x28] sm:$0xff]  ;;  %v190_v38 = vld [vmem:[#allocation13 + $0x1f0] sm:$0xff]  ;;  %v2097_v39 = vpack.c.bf16 %v188_v32, %v184_v31  ;;  %v195_v40 = vld [vmem:[#allocation14 + $0x18] sm:$0xff] }
  0x96   :  { %2118 = vmatpush1.bf16.msra.mxu1 %v2117_v9  ;;  %v199_v41 = vld [vmem:[#allocation14 + $0x38] sm:$0xff]  ;;  %v3215_v42 = vpack.c.bf16 %v197_v35, %v193_v34  ;;  %v192_v43 = vld [vmem:[#allocation14] sm:$0xff]  ;;  %v2129_v45 = vpack.c.bf16 %v190_v38, %v186_v37  ;;  %v201_v46 = vld [vmem:[#allocation14 + $0x48] sm:$0xff] }
  0x97   :  { %2120 = vmatprep.subr.bf16.mxu1 %v2119_v12  ;;  %v196_v44 = vld [vmem:[#allocation14 + $0x20] sm:$0xff]  ;;  %v205_v47 = vld [vmem:[#allocation14 + $0x68] sm:$0xff]  ;;  %v3217_v48 = vpack.c.bf16 %v199_v41, %v195_v40  ;;  %v194_v49 = vld [vmem:[#allocation14 + $0x10] sm:$0xff] }
  0x98   :  { %2090 = vmatpush1.bf16.msra.mxu0 %v2089_v15  ;;  %v198_v50 = vld [vmem:[#allocation14 + $0x30] sm:$0xff]  ;;  %v3219_v52 = vpack.c.bf16 %v196_v44, %v192_v43  ;;  %v203_v53 = vld [vmem:[#allocation14 + $0x58] sm:$0xff]  ;;  %v3222_v55 = vpack.c.bf16 %v205_v47, %v201_v46  ;;  %v200_v56 = vld [vmem:[#allocation14 + $0x40] sm:$0xff] }
  0x99   :  { %2092 = vmatprep.subr.bf16.mxu0 %v2091_v18  ;;  %v256_v51 = vld [vmem:[#allocation5] sm:$0xff]  ;;  %v207_v54 = vld [vmem:[#allocation14 + $0x78] sm:$0xff]  ;;  %v204_v57 = vld [vmem:[#allocation14 + $0x60] sm:$0xff]  ;;  %v3224_v58 = vpack.c.bf16 %v198_v50, %v194_v49 }
  0x9a   :  { %2122 = vmatpush1.bf16.msra.mxu1 %v2121_v21  ;;  %v209_v59 = vld [vmem:[#allocation14 + $0x88] sm:$0xff]  ;;  %v3227_v61 = vpack.c.bf16 %v207_v54, %v203_v53  ;;  %v202_v62 = vld [vmem:[#allocation14 + $0x50] sm:$0xff]  ;;  %v257_v0 = vld [vmem:[#allocation5 + $0x8] sm:$0xff]  ;;  %v3231_v2 = vpack.c.bf16 %v204_v57, %v200_v56 }
  0x9b   :  { %2124 = vmatprep.subr.bf16.mxu1 %v2123_v24  ;;  %v213_v60 = vld [vmem:[#allocation14 + $0xa8] sm:$0xff]  ;;  %v206_v63 = vld [vmem:[#allocation14 + $0x70] sm:$0xff]  ;;  %v211_v3 = vld [vmem:[#allocation14 + $0x98] sm:$0xff] }
  0x9c   :  { %2094 = vmatpush1.bf16.msra.mxu0 %v2093_v27  ;;  %v215_v4 = vld [vmem:[#allocation14 + $0xb8] sm:$0xff]  ;;  %v3234_v5 = vpack.c.bf16 %v213_v60, %v209_v59  ;;  %v208_v6 = vld [vmem:[#allocation14 + $0x80] sm:$0xff]  ;;  %v3238_v8 = vpack.c.bf16 %v206_v63, %v202_v62  ;;  %v217_v9 = vld [vmem:[#allocation14 + $0xc8] sm:$0xff] }
  0x9d   :  { %2096 = vmatprep.subr.bf16.mxu0 %v2095_v30  ;;  %v212_v7 = vld [vmem:[#allocation14 + $0xa0] sm:$0xff]  ;;  %v221_v10 = vld [vmem:[#allocation14 + $0xe8] sm:$0xff]  ;;  %v3241_v11 = vpack.c.bf16 %v215_v4, %v211_v3  ;;  %v210_v12 = vld [vmem:[#allocation14 + $0x90] sm:$0xff] }
  0x9e   :  { %2126 = vmatpush1.bf16.msra.mxu1 %v2125_v33  ;;  %v214_v13 = vld [vmem:[#allocation14 + $0xb0] sm:$0xff]  ;;  %v258_v14 = vld [vmem:[#allocation5 + $0x10] sm:$0xff]  ;;  %v3245_v15 = vpack.c.bf16 %v212_v7, %v208_v6  ;;  %v219_v16 = vld [vmem:[#allocation14 + $0xd8] sm:$0xff]  ;;  %v3248_v18 = vpack.c.bf16 %v221_v10, %v217_v9 }
  0x9f   :  { %2128 = vmatprep.subr.bf16.mxu1 %v2127_v36  ;;  %v223_v17 = vld [vmem:[#allocation14 + $0xf8] sm:$0xff]  ;;  %v216_v19 = vld [vmem:[#allocation14 + $0xc0] sm:$0xff]  ;;  %v3252_v21 = vpack.c.bf16 %v214_v13, %v210_v12  ;;  %v225_v22 = vld [vmem:[#allocation14 + $0x108] sm:$0xff] }
  0xa0   :  { %2098 = vmatpush1.bf16.msra.mxu0 %v2097_v39  ;;  %v220_v20 = vld [vmem:[#allocation14 + $0xe0] sm:$0xff]  ;;  %v229_v23 = vld [vmem:[#allocation14 + $0x128] sm:$0xff]  ;;  %v3255_v24 = vpack.c.bf16 %v223_v17, %v219_v16  ;;  %v218_v25 = vld [vmem:[#allocation14 + $0xd0] sm:$0xff] }
  0xa1   :  { %2132 = vmatprep.subr.bf16.mxu0 %v3215_v42  ;;  %v222_v26 = vld [vmem:[#allocation14 + $0xf0] sm:$0xff]  ;;  %v259_v27 = vld [vmem:[#allocation5 + $0x18] sm:$0xff]  ;;  %v3259_v28 = vpack.c.bf16 %v220_v20, %v216_v19  ;;  %v227_v29 = vld [vmem:[#allocation14 + $0x118] sm:$0xff]  ;;  %v3262_v31 = vpack.c.bf16 %v229_v23, %v225_v22 }
  0xa2   :  { %2130 = vmatpush1.bf16.msra.mxu1 %v2129_v45  ;;  %v231_v30 = vld [vmem:[#allocation14 + $0x138] sm:$0xff]  ;;  %v224_v32 = vld [vmem:[#allocation14 + $0x100] sm:$0xff]  ;;  %v3266_v34 = vpack.c.bf16 %v222_v26, %v218_v25  ;;  %v233_v35 = vld [vmem:[#allocation14 + $0x148] sm:$0xff] }
  0xa3   :  { %351 = vmatmul.mubr.f32.vlgmr.msra.gmra.mrb[0].mxu0 %v256_v51  ;;  %2164 = vmatprep.subr.bf16.mxu1 %v3217_v48  ;;  %v228_v33 = vld [vmem:[#allocation14 + $0x120] sm:$0xff]  ;;  %v237_v36 = vld [vmem:[#allocation14 + $0x168] sm:$0xff]  ;;  %v3269_v37 = vpack.c.bf16 %v231_v30, %v227_v29  ;;  %v226_v38 = vld [vmem:[#allocation14 + $0x110] sm:$0xff] }
  0xa4   :  { %2134 = vmatpush1.bf16.msra.mxu0 %v3219_v52  ;;  %356 = vmatprep.mubr.f32.mxu0 %v3049_v1  ;;  %v230_v39 = vld [vmem:[#allocation14 + $0x130] sm:$0xff]  ;;  %v3273_v41 = vpack.c.bf16 %v228_v33, %v224_v32  ;;  %v235_v43 = vld [vmem:[#allocation14 + $0x158] sm:$0xff]  ;;  %v3276_v45 = vpack.c.bf16 %v237_v36, %v233_v35  ;;  %v232_v46 = vld [vmem:[#allocation14 + $0x140] sm:$0xff] }
  0xa5   :  { %464 = vmatmul.mubr.f32.vlgmr.msra.gmra.mrb[0].mxu1 %v256_v51  ;;  %2136 = vmatprep.subr.bf16.mxu0 %v3222_v55  ;;  %v260_v40 = vld [vmem:[#allocation5 + $0x20] sm:$0xff]  ;;  %v239_v44 = vld [vmem:[#allocation14 + $0x178] sm:$0xff]  ;;  %v236_v47 = vld [vmem:[#allocation14 + $0x160] sm:$0xff]  ;;  %v3280_v49 = vpack.c.bf16 %v230_v39, %v226_v38 }
  0xa6   :  { %2166 = vmatpush1.bf16.msra.mxu1 %v3224_v58  ;;  %469 = vmatprep.mubr.f32.mxu1 %v3049_v1  ;;  %v241_v50 = vld [vmem:[#allocation14 + $0x188] sm:$0xff]  ;;  %v3283_v53 = vpack.c.bf16 %v239_v44, %v235_v43  ;;  %v234_v54 = vld [vmem:[#allocation14 + $0x150] sm:$0xff]  ;;  %v261_v57 = vld [vmem:[#allocation5 + $0x28] sm:$0xff]  ;;  %v3287_v59 = vpack.c.bf16 %v236_v47, %v232_v46  ;;  %v266_v44 = vlaneseq }
  0xa7   :  { %357 = vmatmul.mubr.f32.gmra.mrb[2].mxu0 %v257_v0  ;;  %2168 = vmatprep.subr.bf16.mxu1 %v3227_v61  ;;  %v245_v51 = vld [vmem:[#allocation14 + $0x1a8] sm:$0xff]  ;;  %v238_v56 = vld [vmem:[#allocation14 + $0x170] sm:$0xff]  ;;  %v243_v60 = vld [vmem:[#allocation14 + $0x198] sm:$0xff] }
  0xa8   :  { %2138 = vmatpush1.bf16.msra.mxu0 %v3231_v2  ;;  %362 = vmatprep.mubr.f32.mxu0 %v3049_v1  ;;  %v247_v62 = vld [vmem:[#allocation14 + $0x1b8] sm:$0xff]  ;;  %v3290_v63 = vpack.c.bf16 %v245_v51, %v241_v50  ;;  %v244_v3 = vld [vmem:[#allocation14 + $0x1a0] sm:$0xff]  ;;  %v3294_v4 = vpack.c.bf16 %v238_v56, %v234_v54  ;;  %v249_v6 = vld [vmem:[#allocation14 + $0x1c8] sm:$0xff]  ;;  %v267_v46 = vshrl.u32 %v266_v44, 7 }
  0xa9   :  { %470 = vmatmul.mubr.f32.gmra.mrb[2].mxu1 %v257_v0  ;;  %2140 = vmatprep.subr.bf16.mxu0 %v3234_v5  ;;  %v240_v0 = vld [vmem:[#allocation14 + $0x180] sm:$0xff]  ;;  %v253_v7 = vld [vmem:[#allocation14 + $0x1e8] sm:$0xff]  ;;  %v3297_v9 = vpack.c.bf16 %v247_v62, %v243_v60  ;;  %v242_v10 = vld [vmem:[#allocation14 + $0x190] sm:$0xff] }
  0xaa   :  { %2170 = vmatpush1.bf16.msra.mxu1 %v3238_v8  ;;  %475 = vmatprep.mubr.f32.mxu1 %v3049_v1  ;;  %v246_v12 = vld [vmem:[#allocation14 + $0x1b0] sm:$0xff]  ;;  %v262_v13 = vld [vmem:[#allocation5 + $0x30] sm:$0xff]  ;;  %v251_v16 = vld [vmem:[#allocation14 + $0x1d8] sm:$0xff]  ;;  %v3304_v19 = vpack.c.bf16 %v253_v7, %v249_v6  ;;  %v268_v47 = vsub.s32 0, %v267_v46  ;;  %v272_v51 = vsub.s32 1, %v267_v46  ;;  %v276_v56 = vsub.s32 2, %v267_v46 }
  0xab   :  { %363 = vmatmul.mubr.f32.gmra.mrb[4].mxu0 %v258_v14  ;;  %2172 = vmatprep.subr.bf16.mxu1 %v3241_v11  ;;  %v255_v17 = vld [vmem:[#allocation14 + $0x1f8] sm:$0xff]  ;;  %v248_v20 = vld [vmem:[#allocation14 + $0x1c0] sm:$0xff]  ;;  %v3308_v23 = vpack.c.bf16 %v246_v12, %v242_v10  ;;  %v250_v26 = vld [vmem:[#allocation14 + $0x1d0] sm:$0xff]  ;;  %v280_v7 = vsub.s32 3, %v267_v46 }
  0xac   :  { %2142 = vmatpush1.bf16.msra.mxu0 %v3245_v15  ;;  %368 = vmatprep.mubr.f32.mxu0 %v3049_v1  ;;  %v252_v22 = vld [vmem:[#allocation14 + $0x1e0] sm:$0xff]  ;;  %v3311_v25 = vpack.c.bf16 %v255_v17, %v251_v16  ;;  %v263_v29 = vld [vmem:[#allocation5 + $0x38] sm:$0xff]  ;;  %v124_v33 = vld [vmem:[#allocation10] sm:$0xff] }
  0xad   :  { %476 = vmatmul.mubr.f32.gmra.mrb[4].mxu1 %v258_v14  ;;  %2144 = vmatprep.subr.bf16.mxu0 %v3248_v18  ;;  %v3301_v14 = vpack.c.bf16 %v244_v3, %v240_v0  ;;  %v3315_v30 = vpack.c.bf16 %v252_v22, %v248_v20  ;;  %v910_v38 = vld [vmem:[#allocation8 + $0x10] sm:$0xff]  ;;  %v1094_v39 = vld [vmem:[#allocation8 + $0x18] sm:$0xff] }
  0xae   :  { %2174 = vmatpush1.bf16.msra.mxu1 %v3252_v21  ;;  %481 = vmatprep.mubr.f32.mxu1 %v3049_v1  ;;  %v1830_v43 = vld [vmem:[#allocation8 + $0x38] sm:$0xff]  ;;  %v264_v50 = vld [vmem:[#allocation16] sm:$0xf] }
  0xaf   :  { %369 = vmatmul.mubr.f32.gmra.mrb[6].mxu0 %v259_v27  ;;  %2176 = vmatprep.subr.bf16.mxu1 %v3255_v24  ;;  %v3366_v54 = vrot.slane %v264_v50, %v268_v47  ;;  %v3371_v3 = vrot.slane %v264_v50, %v276_v56  ;;  %v3375_v20 = vrot.slane %v264_v50, %v280_v7 }
  0xb0   :  { %2146 = vmatpush1.bf16.msra.mxu0 %v3259_v28  ;;  %374 = vmatprep.mubr.f32.mxu0 %v3049_v1 }
  0xb1   :  { %482 = vmatmul.mubr.f32.gmra.mrb[6].mxu1 %v259_v27  ;;  %2148 = vmatprep.subr.bf16.mxu0 %v3262_v31  ;;  %v254_v27 = vld [vmem:[#allocation14 + $0x1f0] sm:$0xff] }
  0xb2   :  { %2178 = vmatpush1.bf16.msra.mxu1 %v3266_v34  ;;  %487 = vmatprep.mubr.f32.mxu1 %v3049_v1  ;;  %v3320_v32 = vpack.c.bf16 %v254_v27, %v250_v26 }
  0xb3   :  { %375 = vmatmul.mubr.f32.gmra.mrb[8].mxu0 %v260_v40  ;;  %2180 = vmatprep.subr.bf16.mxu1 %v3269_v37 }
  0xb4   :  { %2150 = vmatpush1.bf16.msra.mxu0 %v3273_v41  ;;  %380 = vmatprep.mubr.f32.mxu0 %v3049_v1 }
  0xb5   :  { %488 = vmatmul.mubr.f32.gmra.mrb[8].mxu1 %v260_v40  ;;  %2152 = vmatprep.subr.bf16.mxu0 %v3276_v45  ;;  %v1462_v40 = vld [vmem:[#allocation8 + $0x28] sm:$0xff] }
  0xb6   :  { %2182 = vmatpush1.bf16.msra.mxu1 %v3280_v49  ;;  %493 = vmatprep.mubr.f32.mxu1 %v3049_v1 }
  0xb7   :  { %381 = vmatmul.mubr.f32.gmra.mrb[10].mxu0 %v261_v57  ;;  %2184 = vmatprep.subr.bf16.mxu1 %v3283_v53 }
  0xb8   :  { %2154 = vmatpush1.bf16.msra.mxu0 %v3287_v59  ;;  %386 = vmatprep.mubr.f32.mxu0 %v3049_v1 }
  0xb9   :  { %494 = vmatmul.mubr.f32.gmra.mrb[10].mxu1 %v261_v57  ;;  %2156 = vmatprep.subr.bf16.mxu0 %v3290_v63  ;;  %v3368_v57 = vrot.slane %v264_v50, %v272_v51 }
  0xba   :  { %2186 = vmatpush1.bf16.msra.mxu1 %v3294_v4  ;;  %499 = vmatprep.mubr.f32.mxu1 %v3049_v1 }
  0xbb   :  { %387 = vmatmul.mubr.f32.gmra.mrb[12].mxu0 %v262_v13  ;;  %2188 = vmatprep.subr.bf16.mxu1 %v3297_v9 }
  0xbc   :  { %2158 = vmatpush1.bf16.msra.mxu0 %v3301_v14  ;;  %392 = vmatprep.mubr.f32.mxu0 %v3049_v1 }
  0xbd   :  { %500 = vmatmul.mubr.f32.gmra.mrb[12].mxu1 %v262_v13  ;;  %2160 = vmatprep.subr.bf16.mxu0 %v3304_v19 }
  0xbe   :  { %2190 = vmatpush1.bf16.msra.mxu1 %v3308_v23  ;;  %505 = vmatprep.mubr.f32.mxu1 %v3049_v1 }
  0xbf   :  { %393 = vmatmul.mubr.f32.gmra.mrb[14].mxu0 %v263_v29  ;;  %2192 = vmatprep.subr.bf16.mxu1 %v3311_v25 }
  0xc0   :  { %2162 = vmatpush1.bf16.msra.mxu0 %v3315_v30  ;;  %622 = vmatprep.mubr.f32.mxu0 %v3049_v1 }
  0xc1   :  { %506 = vmatmul.mubr.f32.gmra.mrb[14].mxu1 %v263_v29  ;;  %2196 = vmatprep.subr.bf16.mxu0 %v3215_v42 }
  0xc2   :  { %2194 = vmatpush1.bf16.msra.mxu1 %v3320_v32  ;;  %693 = vmatprep.mubr.f32.mxu1 %v3049_v1 }
  0xc3   :  { %2228 = vmatprep.subr.bf16.mxu1 %v3217_v48  ;;  %914 = vperm.xlu1 %2724, %v910_v38  }
  0xc7   :  { %1098 = vperm.xlu1 %2724, %v1094_v39  }
  0xcb   :  { %1466 = vperm.xlu1 %2724, %v1462_v40  }
  0xcf   :  { %1834 = vperm.xlu1 %2724, %v1830_v43  }
 0x100   :  { %v3329_v35 = vpop.permute.xlu0 %548 }
 0x101   :  { %v551_v36 = vmul.f32 %v3329_v35, %v124_v33  ;;  %v126_v33 = vld [vmem:[#allocation11] sm:$0xff] }
 0x102   :  { %v553_v43 = vmul.f32 %v3329_v35, %v126_v33 }
 0x103   :  { %623 = vmatmul.mubr.f32.vlgmr.msra.gmra.mrb[0].mxu0 %v551_v36  ;;  %694 = vmatmul.mubr.f32.vlgmr.msra.gmra.mrb[0].mxu1 %v551_v36 }
 0x104   :  { %2198 = vmatpush1.bf16.msra.mxu0 %v3219_v52  ;;  %2230 = vmatpush1.bf16.msra.mxu1 %v3224_v58 }
 0x105   :  { %2200 = vmatprep.subr.bf16.mxu0 %v3222_v55  ;;  %2232 = vmatprep.subr.bf16.mxu1 %v3227_v61 }
 0x106   :  { %805 = vmatprep.mubr.f32.mxu0 %v3049_v1  ;;  %876 = vmatprep.mubr.f32.mxu1 %v3049_v1 }
 0x108   :  { %2202 = vmatpush1.bf16.msra.mxu0 %v3231_v2  ;;  %2234 = vmatpush1.bf16.msra.mxu1 %v3238_v8 }
 0x109   :  { %2204 = vmatprep.subr.bf16.mxu0 %v3234_v5  ;;  %2236 = vmatprep.subr.bf16.mxu1 %v3241_v11 }
 0x10c   :  { %2206 = vmatpush1.bf16.msra.mxu0 %v3245_v15  ;;  %2238 = vmatpush1.bf16.msra.mxu1 %v3252_v21 }
 0x10d   :  { %2208 = vmatprep.subr.bf16.mxu0 %v3248_v18  ;;  %2240 = vmatprep.subr.bf16.mxu1 %v3255_v24 }
 0x110   :  { %2210 = vmatpush1.bf16.msra.mxu0 %v3259_v28  ;;  %2242 = vmatpush1.bf16.msra.mxu1 %v3266_v34 }
 0x111   :  { %2212 = vmatprep.subr.bf16.mxu0 %v3262_v31  ;;  %2244 = vmatprep.subr.bf16.mxu1 %v3269_v37 }
 0x114   :  { %2214 = vmatpush1.bf16.msra.mxu0 %v3273_v41  ;;  %2246 = vmatpush1.bf16.msra.mxu1 %v3280_v49 }
 0x115   :  { %2216 = vmatprep.subr.bf16.mxu0 %v3276_v45  ;;  %2248 = vmatprep.subr.bf16.mxu1 %v3283_v53 }
 0x118   :  { %2218 = vmatpush1.bf16.msra.mxu0 %v3287_v59  ;;  %2250 = vmatpush1.bf16.msra.mxu1 %v3294_v4 }
 0x119   :  { %2220 = vmatprep.subr.bf16.mxu0 %v3290_v63  ;;  %2252 = vmatprep.subr.bf16.mxu1 %v3297_v9 }
 0x11c   :  { %2222 = vmatpush1.bf16.msra.mxu0 %v3301_v14  ;;  %2254 = vmatpush1.bf16.msra.mxu1 %v3308_v23 }
 0x11d   :  { %2224 = vmatprep.subr.bf16.mxu0 %v3304_v19  ;;  %2256 = vmatprep.subr.bf16.mxu1 %v3311_v25 }
 0x120   :  { %2226 = vmatpush1.bf16.msra.mxu0 %v3315_v30  ;;  %2258 = vmatpush1.bf16.msra.mxu1 %v3320_v32 }
 0x121   :  { %2260 = vmatprep.subr.bf16.mxu0 %v3215_v42  ;;  %2292 = vmatprep.subr.bf16.mxu1 %v3217_v48 }
 0x1d6   :  { %v624_v60 = vpop.f32.mrb[0].mxu0  ;;  %v695_v62 = vpop.f32.mrb[0].mxu1 }
 0x1d7   :  { %v2643_v0 = vadd.f32 %v624_v60, %v3366_v54  ;;  %v626_v6 = vpop.f32.mrb[1].mxu0  ;;  %v697_v10 = vpop.f32.mrb[1].mxu1  ;;  %v2659_v17 = vadd.f32 %v695_v62, %v3371_v3 }
 0x1d8   :  { %v2644_v12 = vadd.f32 %v626_v6, %v3368_v57  ;;  %v2660_v22 = vadd.f32 %v697_v10, %v3375_v20  ;;  %v731_v6 = vpop.permute.xlu0 %730 }
 0x1d9   :  { %v704_v13 = vmul.f32 0.5, %v2643_v0 }
 0x1da   :  { %v708_v16 = vmul.f32 0.5, %v2644_v12  ;;  %v713_v26 = vmul.f32 0.5, %v2660_v22 }
 0x1db   :  { %2725 = vtanh.f32 %v704_v13 }
 0x1dc   :  { %2727 = vtanh.f32 %v708_v16 }
 0x1dd   :  { %2729 = vtanh.f32 %v2659_v17 }
 0x1de   :  { %2731 = vtanh.f32 %v713_v26 }
 0x1e5   :  { %v2726_v27 = vpop.eup %2725 }
 0x1e6   :  { %v2728_v29 = vpop.eup %2727  ;;  %v706_v36 = vmul.f32 0.5, %v2726_v27 }
 0x1e7   :  { %v710_v38 = vmul.f32 0.5, %v2728_v29  ;;  %v2730_v40 = vpop.eup %2729 }
 0x1e8   :  { %v707_v39 = vadd.f32 0.5, %v706_v36  ;;  %v2732_v51 = vpop.eup %2731 }
 0x1e9   :  { %v711_v44 = vadd.f32 0.5, %v710_v38  ;;  %v715_v56 = vmul.f32 0.5, %v2732_v51 }
 0x1ea   :  { %v718_v46 = vmul.f32 %v2730_v40, %v707_v39 }
 0x1eb   :  { %v717_v47 = vmul.f32 %v711_v44, %v553_v43  ;;  %v716_v60 = vadd.f32 0.5, %v715_v56 }
 0x1ed   :  { %v3379_v50 = vadd.f32 %v718_v46, %v717_v47 }
 0x1ef   :  { %2733 = vtanh.f32 %v3379_v50  ;;  %v735_v47 = vmul.f32 %v731_v6, %v3379_v50 }
 0x1f9   :  { %v2734_v62 = vpop.eup %2733 }
 0x1fa   :  { %v721_v0 = vmul.f32 %v2734_v62, %v716_v60 }
 0x1fc   :  { %724 = vst [vmem:[#allocation17] sm:$0xff] %v721_v0  ;;  %v733_v7 = vmul.f32 %v731_v6, %v721_v0 }
 0x1fe   :  { %806 = vmatmul.mubr.f32.vlgmr.msra.gmra.mrb[2].mxu0 %v733_v7  ;;  %877 = vmatmul.mubr.f32.vlgmr.msra.gmra.mrb[2].mxu1 %v733_v7 }
 0x1ff   :  { %2262 = vmatpush1.bf16.msra.mxu0 %v3219_v52  ;;  %2294 = vmatpush1.bf16.msra.mxu1 %v3224_v58 }
 0x200   :  { %2264 = vmatprep.subr.bf16.mxu0 %v3222_v55  ;;  %2296 = vmatprep.subr.bf16.mxu1 %v3227_v61 }
 0x201   :  { %989 = vmatprep.mubr.f32.mxu0 %v3049_v1  ;;  %1060 = vmatprep.mubr.f32.mxu1 %v3049_v1 }
 0x203   :  { %2266 = vmatpush1.bf16.msra.mxu0 %v3231_v2  ;;  %2298 = vmatpush1.bf16.msra.mxu1 %v3238_v8 }
 0x204   :  { %2268 = vmatprep.subr.bf16.mxu0 %v3234_v5  ;;  %2300 = vmatprep.subr.bf16.mxu1 %v3241_v11 }
 0x207   :  { %2270 = vmatpush1.bf16.msra.mxu0 %v3245_v15  ;;  %2302 = vmatpush1.bf16.msra.mxu1 %v3252_v21 }
 0x208   :  { %2272 = vmatprep.subr.bf16.mxu0 %v3248_v18  ;;  %2304 = vmatprep.subr.bf16.mxu1 %v3255_v24 }
 0x20b   :  { %2274 = vmatpush1.bf16.msra.mxu0 %v3259_v28  ;;  %2306 = vmatpush1.bf16.msra.mxu1 %v3266_v34 }
 0x20c   :  { %2276 = vmatprep.subr.bf16.mxu0 %v3262_v31  ;;  %2308 = vmatprep.subr.bf16.mxu1 %v3269_v37 }
 0x20f   :  { %2278 = vmatpush1.bf16.msra.mxu0 %v3273_v41  ;;  %2310 = vmatpush1.bf16.msra.mxu1 %v3280_v49 }
 0x210   :  { %2280 = vmatprep.subr.bf16.mxu0 %v3276_v45  ;;  %2312 = vmatprep.subr.bf16.mxu1 %v3283_v53 }
 0x213   :  { %2282 = vmatpush1.bf16.msra.mxu0 %v3287_v59  ;;  %2314 = vmatpush1.bf16.msra.mxu1 %v3294_v4 }
 0x214   :  { %2284 = vmatprep.subr.bf16.mxu0 %v3290_v63  ;;  %2316 = vmatprep.subr.bf16.mxu1 %v3297_v9 }
 0x217   :  { %2286 = vmatpush1.bf16.msra.mxu0 %v3301_v14  ;;  %2318 = vmatpush1.bf16.msra.mxu1 %v3308_v23 }
 0x218   :  { %2288 = vmatprep.subr.bf16.mxu0 %v3304_v19  ;;  %2320 = vmatprep.subr.bf16.mxu1 %v3311_v25 }
 0x21b   :  { %2290 = vmatpush1.bf16.msra.mxu0 %v3315_v30  ;;  %2322 = vmatpush1.bf16.msra.mxu1 %v3320_v32 }
 0x21c   :  { %2324 = vmatprep.subr.bf16.mxu0 %v3215_v42  ;;  %2356 = vmatprep.subr.bf16.mxu1 %v3217_v48 }
 0x2d1   :  { %v807_v35 = vpop.f32.mrb[2].mxu0  ;;  %v878_v10 = vpop.f32.mrb[2].mxu1 }
 0x2d2   :  { %v2645_v12 = vadd.f32 %v807_v35, %v3366_v54  ;;  %v809_v13 = vpop.f32.mrb[3].mxu0  ;;  %v880_v16 = vpop.f32.mrb[3].mxu1  ;;  %v2661_v27 = vadd.f32 %v878_v10, %v3371_v3 }
 0x2d3   :  { %v2646_v17 = vadd.f32 %v809_v13, %v3368_v57  ;;  %v2662_v29 = vadd.f32 %v880_v16, %v3375_v20 }
 0x2d4   :  { %v887_v22 = vmul.f32 0.5, %v2645_v12  ;;  %v915_v12 = vpop.permute.xlu1 %914 }
 0x2d5   :  { %v891_v26 = vmul.f32 0.5, %v2646_v17  ;;  %v896_v33 = vmul.f32 0.5, %v2662_v29 }
 0x2d6   :  { %2735 = vtanh.f32 %v887_v22 }
 0x2d7   :  { %2737 = vtanh.f32 %v891_v26 }
 0x2d8   :  { %2739 = vtanh.f32 %v2661_v27 }
 0x2d9   :  { %2741 = vtanh.f32 %v896_v33 }
 0x2e0   :  { %v2736_v36 = vpop.eup %2735 }
 0x2e1   :  { %v2738_v38 = vpop.eup %2737  ;;  %v889_v39 = vmul.f32 0.5, %v2736_v36 }
 0x2e2   :  { %v893_v40 = vmul.f32 0.5, %v2738_v38  ;;  %v2740_v44 = vpop.eup %2739 }
 0x2e3   :  { %v890_v43 = vadd.f32 0.5, %v889_v39  ;;  %v2742_v62 = vpop.eup %2741 }
 0x2e4   :  { %v894_v46 = vadd.f32 0.5, %v893_v40  ;;  %v898_v0 = vmul.f32 0.5, %v2742_v62 }
 0x2e5   :  { %v901_v51 = vmul.f32 %v2740_v44, %v890_v43 }
 0x2e6   :  { %v900_v56 = vmul.f32 %v894_v46, %v735_v47  ;;  %v899_v7 = vadd.f32 0.5, %v898_v0 }
 0x2e8   :  { %v3421_v60 = vadd.f32 %v901_v51, %v900_v56 }
 0x2ea   :  { %2743 = vtanh.f32 %v3421_v60  ;;  %v919_v51 = vmul.f32 %v915_v12, %v3421_v60 }
 0x2f4   :  { %v2744_v35 = vpop.eup %2743 }
 0x2f5   :  { %v904_v10 = vmul.f32 %v2744_v35, %v899_v7 }
 0x2f7   :  { %908 = vst [vmem:[#allocation17 + $0x8] sm:$0xff] %v904_v10  ;;  %v917_v13 = vmul.f32 %v915_v12, %v904_v10 }
 0x2f9   :  { %990 = vmatmul.mubr.f32.vlgmr.msra.gmra.mrb[4].mxu0 %v917_v13  ;;  %1061 = vmatmul.mubr.f32.vlgmr.msra.gmra.mrb[4].mxu1 %v917_v13 }
 0x2fa   :  { %2326 = vmatpush1.bf16.msra.mxu0 %v3219_v52  ;;  %2358 = vmatpush1.bf16.msra.mxu1 %v3224_v58 }
 0x2fb   :  { %2328 = vmatprep.subr.bf16.mxu0 %v3222_v55  ;;  %2360 = vmatprep.subr.bf16.mxu1 %v3227_v61 }
 0x2fc   :  { %1173 = vmatprep.mubr.f32.mxu0 %v3049_v1  ;;  %1244 = vmatprep.mubr.f32.mxu1 %v3049_v1 }
 0x2fe   :  { %2330 = vmatpush1.bf16.msra.mxu0 %v3231_v2  ;;  %2362 = vmatpush1.bf16.msra.mxu1 %v3238_v8 }
 0x2ff   :  { %2332 = vmatprep.subr.bf16.mxu0 %v3234_v5  ;;  %2364 = vmatprep.subr.bf16.mxu1 %v3241_v11 }
 0x302   :  { %2334 = vmatpush1.bf16.msra.mxu0 %v3245_v15  ;;  %2366 = vmatpush1.bf16.msra.mxu1 %v3252_v21 }
 0x303   :  { %2336 = vmatprep.subr.bf16.mxu0 %v3248_v18  ;;  %2368 = vmatprep.subr.bf16.mxu1 %v3255_v24 }
 0x306   :  { %2338 = vmatpush1.bf16.msra.mxu0 %v3259_v28  ;;  %2370 = vmatpush1.bf16.msra.mxu1 %v3266_v34 }
 0x307   :  { %2340 = vmatprep.subr.bf16.mxu0 %v3262_v31  ;;  %2372 = vmatprep.subr.bf16.mxu1 %v3269_v37 }
 0x30a   :  { %2342 = vmatpush1.bf16.msra.mxu0 %v3273_v41  ;;  %2374 = vmatpush1.bf16.msra.mxu1 %v3280_v49 }
 0x30b   :  { %2344 = vmatprep.subr.bf16.mxu0 %v3276_v45  ;;  %2376 = vmatprep.subr.bf16.mxu1 %v3283_v53 }
 0x30e   :  { %2346 = vmatpush1.bf16.msra.mxu0 %v3287_v59  ;;  %2378 = vmatpush1.bf16.msra.mxu1 %v3294_v4 }
 0x30f   :  { %2348 = vmatprep.subr.bf16.mxu0 %v3290_v63  ;;  %2380 = vmatprep.subr.bf16.mxu1 %v3297_v9 }
 0x312   :  { %2350 = vmatpush1.bf16.msra.mxu0 %v3301_v14  ;;  %2382 = vmatpush1.bf16.msra.mxu1 %v3308_v23 }
 0x313   :  { %2352 = vmatprep.subr.bf16.mxu0 %v3304_v19  ;;  %2384 = vmatprep.subr.bf16.mxu1 %v3311_v25 }
 0x316   :  { %2354 = vmatpush1.bf16.msra.mxu0 %v3315_v30  ;;  %2386 = vmatpush1.bf16.msra.mxu1 %v3320_v32 }
 0x317   :  { %2388 = vmatprep.subr.bf16.mxu0 %v3215_v42  ;;  %2420 = vmatprep.subr.bf16.mxu1 %v3217_v48 }
 0x3cc   :  { %v991_v50 = vpop.f32.mrb[4].mxu0  ;;  %v1062_v6 = vpop.f32.mrb[4].mxu1 }
 0x3cd   :  { %v2647_v16 = vadd.f32 %v991_v50, %v3366_v54  ;;  %v993_v17 = vpop.f32.mrb[5].mxu0  ;;  %v1064_v22 = vpop.f32.mrb[5].mxu1  ;;  %v2663_v33 = vadd.f32 %v1062_v6, %v3371_v3 }
 0x3ce   :  { %v2648_v26 = vadd.f32 %v993_v17, %v3368_v57  ;;  %v2664_v36 = vadd.f32 %v1064_v22, %v3375_v20 }
 0x3cf   :  { %v1071_v27 = vmul.f32 0.5, %v2647_v16  ;;  %v1099_v16 = vpop.permute.xlu1 %1098 }
 0x3d0   :  { %v1075_v29 = vmul.f32 0.5, %v2648_v26  ;;  %v1080_v38 = vmul.f32 0.5, %v2664_v36 }
 0x3d1   :  { %2745 = vtanh.f32 %v1071_v27 }
 0x3d2   :  { %2747 = vtanh.f32 %v1075_v29 }
 0x3d3   :  { %2749 = vtanh.f32 %v2663_v33 }
 0x3d4   :  { %2751 = vtanh.f32 %v1080_v38 }
 0x3db   :  { %v2746_v39 = vpop.eup %2745 }
 0x3dc   :  { %v2748_v40 = vpop.eup %2747  ;;  %v1073_v43 = vmul.f32 0.5, %v2746_v39 }
 0x3dd   :  { %v1077_v44 = vmul.f32 0.5, %v2748_v40  ;;  %v2750_v47 = vpop.eup %2749 }
 0x3de   :  { %v1074_v46 = vadd.f32 0.5, %v1073_v43  ;;  %v2752_v35 = vpop.eup %2751 }
 0x3df   :  { %v1078_v56 = vadd.f32 0.5, %v1077_v44  ;;  %v1082_v10 = vmul.f32 0.5, %v2752_v35 }
 0x3e0   :  { %v1085_v62 = vmul.f32 %v2750_v47, %v1074_v46 }
 0x3e1   :  { %v1084_v0 = vmul.f32 %v1078_v56, %v919_v51  ;;  %v1083_v13 = vadd.f32 0.5, %v1082_v10 }
 0x3e3   :  { %v3463_v7 = vadd.f32 %v1085_v62, %v1084_v0 }
 0x3e5   :  { %2753 = vtanh.f32 %v3463_v7  ;;  %v1103_v62 = vmul.f32 %v1099_v16, %v3463_v7 }
 0x3ef   :  { %v2754_v50 = vpop.eup %2753 }
 0x3f0   :  { %v1088_v6 = vmul.f32 %v2754_v50, %v1083_v13 }
 0x3f2   :  { %1092 = vst [vmem:[#allocation17 + $0x10] sm:$0xff] %v1088_v6  ;;  %v1101_v17 = vmul.f32 %v1099_v16, %v1088_v6 }
 0x3f4   :  { %1174 = vmatmul.mubr.f32.vlgmr.msra.gmra.mrb[6].mxu0 %v1101_v17  ;;  %1245 = vmatmul.mubr.f32.vlgmr.msra.gmra.mrb[6].mxu1 %v1101_v17 }
 0x3f5   :  { %2390 = vmatpush1.bf16.msra.mxu0 %v3219_v52  ;;  %2422 = vmatpush1.bf16.msra.mxu1 %v3224_v58 }
 0x3f6   :  { %2392 = vmatprep.subr.bf16.mxu0 %v3222_v55  ;;  %2424 = vmatprep.subr.bf16.mxu1 %v3227_v61 }
 0x3f7   :  { %1357 = vmatprep.mubr.f32.mxu0 %v3049_v1  ;;  %1428 = vmatprep.mubr.f32.mxu1 %v3049_v1 }
 0x3f9   :  { %2394 = vmatpush1.bf16.msra.mxu0 %v3231_v2  ;;  %2426 = vmatpush1.bf16.msra.mxu1 %v3238_v8 }
 0x3fa   :  { %2396 = vmatprep.subr.bf16.mxu0 %v3234_v5  ;;  %2428 = vmatprep.subr.bf16.mxu1 %v3241_v11 }
 0x3fd   :  { %2398 = vmatpush1.bf16.msra.mxu0 %v3245_v15  ;;  %2430 = vmatpush1.bf16.msra.mxu1 %v3252_v21 }
 0x3fe   :  { %2400 = vmatprep.subr.bf16.mxu0 %v3248_v18  ;;  %2432 = vmatprep.subr.bf16.mxu1 %v3255_v24 }
 0x401   :  { %2402 = vmatpush1.bf16.msra.mxu0 %v3259_v28  ;;  %2434 = vmatpush1.bf16.msra.mxu1 %v3266_v34 }
 0x402   :  { %2404 = vmatprep.subr.bf16.mxu0 %v3262_v31  ;;  %2436 = vmatprep.subr.bf16.mxu1 %v3269_v37 }
 0x405   :  { %2406 = vmatpush1.bf16.msra.mxu0 %v3273_v41  ;;  %2438 = vmatpush1.bf16.msra.mxu1 %v3280_v49 }
 0x406   :  { %2408 = vmatprep.subr.bf16.mxu0 %v3276_v45  ;;  %2440 = vmatprep.subr.bf16.mxu1 %v3283_v53 }
 0x409   :  { %2410 = vmatpush1.bf16.msra.mxu0 %v3287_v59  ;;  %2442 = vmatpush1.bf16.msra.mxu1 %v3294_v4 }
 0x40a   :  { %2412 = vmatprep.subr.bf16.mxu0 %v3290_v63  ;;  %2444 = vmatprep.subr.bf16.mxu1 %v3297_v9 }
 0x40d   :  { %2414 = vmatpush1.bf16.msra.mxu0 %v3301_v14  ;;  %2446 = vmatpush1.bf16.msra.mxu1 %v3308_v23 }
 0x40e   :  { %2416 = vmatprep.subr.bf16.mxu0 %v3304_v19  ;;  %2448 = vmatprep.subr.bf16.mxu1 %v3311_v25 }
 0x411   :  { %2418 = vmatpush1.bf16.msra.mxu0 %v3315_v30  ;;  %2450 = vmatpush1.bf16.msra.mxu1 %v3320_v32 }
 0x412   :  { %2452 = vmatprep.subr.bf16.mxu0 %v3215_v42  ;;  %2484 = vmatprep.subr.bf16.mxu1 %v3217_v48 }
 0x4c7   :  { %v1175_v60 = vpop.f32.mrb[6].mxu0  ;;  %v1246_v12 = vpop.f32.mrb[6].mxu1 }
 0x4c8   :  { %v2649_v22 = vadd.f32 %v1175_v60, %v3366_v54  ;;  %v1177_v26 = vpop.f32.mrb[7].mxu0  ;;  %v1248_v27 = vpop.f32.mrb[7].mxu1  ;;  %v2665_v38 = vadd.f32 %v1246_v12, %v3371_v3 }
 0x4c9   :  { %v2650_v29 = vadd.f32 %v1177_v26, %v3368_v57  ;;  %v2666_v39 = vadd.f32 %v1248_v27, %v3375_v20 }
 0x4ca   :  { %v1255_v33 = vmul.f32 0.5, %v2649_v22  ;;  %v1283_v22 = vpop.permute.xlu0 %1282 }
 0x4cb   :  { %v1259_v36 = vmul.f32 0.5, %v2650_v29  ;;  %v1264_v40 = vmul.f32 0.5, %v2666_v39 }
 0x4cc   :  { %2755 = vtanh.f32 %v1255_v33 }
 0x4cd   :  { %2757 = vtanh.f32 %v1259_v36 }
 0x4ce   :  { %2759 = vtanh.f32 %v2665_v38 }
 0x4cf   :  { %2761 = vtanh.f32 %v1264_v40 }
 0x4d6   :  { %v2756_v43 = vpop.eup %2755 }
 0x4d7   :  { %v2758_v44 = vpop.eup %2757  ;;  %v1257_v46 = vmul.f32 0.5, %v2756_v43 }
 0x4d8   :  { %v1261_v47 = vmul.f32 0.5, %v2758_v44  ;;  %v2760_v56 = vpop.eup %2759 }
 0x4d9   :  { %v1258_v51 = vadd.f32 0.5, %v1257_v46  ;;  %v2762_v50 = vpop.eup %2761 }
 0x4da   :  { %v1262_v0 = vadd.f32 0.5, %v1261_v47  ;;  %v1266_v6 = vmul.f32 0.5, %v2762_v50 }
 0x4db   :  { %v1269_v35 = vmul.f32 %v2760_v56, %v1258_v51 }
 0x4dc   :  { %v1268_v10 = vmul.f32 %v1262_v0, %v1103_v62  ;;  %v1267_v17 = vadd.f32 0.5, %v1266_v6 }
 0x4de   :  { %v3505_v13 = vadd.f32 %v1269_v35, %v1268_v10 }
 0x4e0   :  { %2763 = vtanh.f32 %v3505_v13  ;;  %v1287_v35 = vmul.f32 %v1283_v22, %v3505_v13 }
 0x4ea   :  { %v2764_v60 = vpop.eup %2763 }
 0x4eb   :  { %v1272_v12 = vmul.f32 %v2764_v60, %v1267_v17 }
 0x4ed   :  { %1276 = vst [vmem:[#allocation17 + $0x18] sm:$0xff] %v1272_v12  ;;  %v1285_v26 = vmul.f32 %v1283_v22, %v1272_v12 }
 0x4ef   :  { %1358 = vmatmul.mubr.f32.vlgmr.msra.gmra.mrb[8].mxu0 %v1285_v26  ;;  %1429 = vmatmul.mubr.f32.vlgmr.msra.gmra.mrb[8].mxu1 %v1285_v26 }
 0x4f0   :  { %2454 = vmatpush1.bf16.msra.mxu0 %v3219_v52  ;;  %2486 = vmatpush1.bf16.msra.mxu1 %v3224_v58 }
 0x4f1   :  { %2456 = vmatprep.subr.bf16.mxu0 %v3222_v55  ;;  %2488 = vmatprep.subr.bf16.mxu1 %v3227_v61 }
 0x4f2   :  { %1541 = vmatprep.mubr.f32.mxu0 %v3049_v1  ;;  %1612 = vmatprep.mubr.f32.mxu1 %v3049_v1 }
 0x4f4   :  { %2458 = vmatpush1.bf16.msra.mxu0 %v3231_v2  ;;  %2490 = vmatpush1.bf16.msra.mxu1 %v3238_v8 }
 0x4f5   :  { %2460 = vmatprep.subr.bf16.mxu0 %v3234_v5  ;;  %2492 = vmatprep.subr.bf16.mxu1 %v3241_v11 }
 0x4f8   :  { %2462 = vmatpush1.bf16.msra.mxu0 %v3245_v15  ;;  %2494 = vmatpush1.bf16.msra.mxu1 %v3252_v21 }
 0x4f9   :  { %2464 = vmatprep.subr.bf16.mxu0 %v3248_v18  ;;  %2496 = vmatprep.subr.bf16.mxu1 %v3255_v24 }
 0x4fc   :  { %2466 = vmatpush1.bf16.msra.mxu0 %v3259_v28  ;;  %2498 = vmatpush1.bf16.msra.mxu1 %v3266_v34 }
 0x4fd   :  { %2468 = vmatprep.subr.bf16.mxu0 %v3262_v31  ;;  %2500 = vmatprep.subr.bf16.mxu1 %v3269_v37 }
 0x500   :  { %2470 = vmatpush1.bf16.msra.mxu0 %v3273_v41  ;;  %2502 = vmatpush1.bf16.msra.mxu1 %v3280_v49 }
 0x501   :  { %2472 = vmatprep.subr.bf16.mxu0 %v3276_v45  ;;  %2504 = vmatprep.subr.bf16.mxu1 %v3283_v53 }
 0x504   :  { %2474 = vmatpush1.bf16.msra.mxu0 %v3287_v59  ;;  %2506 = vmatpush1.bf16.msra.mxu1 %v3294_v4 }
 0x505   :  { %2476 = vmatprep.subr.bf16.mxu0 %v3290_v63  ;;  %2508 = vmatprep.subr.bf16.mxu1 %v3297_v9 }
 0x508   :  { %2478 = vmatpush1.bf16.msra.mxu0 %v3301_v14  ;;  %2510 = vmatpush1.bf16.msra.mxu1 %v3308_v23 }
 0x509   :  { %2480 = vmatprep.subr.bf16.mxu0 %v3304_v19  ;;  %2512 = vmatprep.subr.bf16.mxu1 %v3311_v25 }
 0x50c   :  { %2482 = vmatpush1.bf16.msra.mxu0 %v3315_v30  ;;  %2514 = vmatpush1.bf16.msra.mxu1 %v3320_v32 }
 0x50d   :  { %2516 = vmatprep.subr.bf16.mxu0 %v3215_v42  ;;  %2548 = vmatprep.subr.bf16.mxu1 %v3217_v48 }
 0x5c2   :  { %v1359_v7 = vpop.f32.mrb[8].mxu0  ;;  %v1430_v16 = vpop.f32.mrb[8].mxu1 }
 0x5c3   :  { %v2651_v27 = vadd.f32 %v1359_v7, %v3366_v54  ;;  %v1361_v29 = vpop.f32.mrb[9].mxu0  ;;  %v1432_v33 = vpop.f32.mrb[9].mxu1  ;;  %v2667_v40 = vadd.f32 %v1430_v16, %v3371_v3 }
 0x5c4   :  { %v2652_v36 = vadd.f32 %v1361_v29, %v3368_v57  ;;  %v2668_v43 = vadd.f32 %v1432_v33, %v3375_v20 }
 0x5c5   :  { %v1439_v38 = vmul.f32 0.5, %v2651_v27  ;;  %v1467_v27 = vpop.permute.xlu1 %1466 }
 0x5c6   :  { %v1443_v39 = vmul.f32 0.5, %v2652_v36  ;;  %v1448_v44 = vmul.f32 0.5, %v2668_v43 }
 0x5c7   :  { %2765 = vtanh.f32 %v1439_v38 }
 0x5c8   :  { %2767 = vtanh.f32 %v1443_v39 }
 0x5c9   :  { %2769 = vtanh.f32 %v2667_v40 }
 0x5ca   :  { %2771 = vtanh.f32 %v1448_v44 }
 0x5d1   :  { %v2766_v46 = vpop.eup %2765 }
 0x5d2   :  { %v2768_v47 = vpop.eup %2767  ;;  %v1441_v51 = vmul.f32 0.5, %v2766_v46 }
 0x5d3   :  { %v1445_v56 = vmul.f32 0.5, %v2768_v47  ;;  %v2770_v0 = vpop.eup %2769 }
 0x5d4   :  { %v1442_v62 = vadd.f32 0.5, %v1441_v51  ;;  %v2772_v60 = vpop.eup %2771 }
 0x5d5   :  { %v1446_v10 = vadd.f32 0.5, %v1445_v56  ;;  %v1450_v12 = vmul.f32 0.5, %v2772_v60 }
 0x5d6   :  { %v1453_v50 = vmul.f32 %v2770_v0, %v1442_v62 }
 0x5d7   :  { %v1452_v6 = vmul.f32 %v1446_v10, %v1287_v35  ;;  %v1451_v26 = vadd.f32 0.5, %v1450_v12  ;;  %v1651_v12 = vpop.permute.xlu0 %1650 }
 0x5d9   :  { %v3547_v17 = vadd.f32 %v1453_v50, %v1452_v6 }
 0x5db   :  { %2773 = vtanh.f32 %v3547_v17  ;;  %v1471_v35 = vmul.f32 %v1467_v27, %v3547_v17 }
 0x5e5   :  { %v2774_v7 = vpop.eup %2773 }
 0x5e6   :  { %v1456_v16 = vmul.f32 %v2774_v7, %v1451_v26 }
 0x5e8   :  { %1460 = vst [vmem:[#allocation17 + $0x20] sm:$0xff] %v1456_v16  ;;  %v1469_v29 = vmul.f32 %v1467_v27, %v1456_v16 }
 0x5ea   :  { %1542 = vmatmul.mubr.f32.vlgmr.msra.gmra.mrb[10].mxu0 %v1469_v29  ;;  %1613 = vmatmul.mubr.f32.vlgmr.msra.gmra.mrb[10].mxu1 %v1469_v29 }
 0x5eb   :  { %2518 = vmatpush1.bf16.msra.mxu0 %v3219_v52  ;;  %2550 = vmatpush1.bf16.msra.mxu1 %v3224_v58 }
 0x5ec   :  { %2520 = vmatprep.subr.bf16.mxu0 %v3222_v55  ;;  %2552 = vmatprep.subr.bf16.mxu1 %v3227_v61 }
 0x5ed   :  { %1725 = vmatprep.mubr.f32.mxu0 %v3049_v1  ;;  %1796 = vmatprep.mubr.f32.mxu1 %v3049_v1 }
 0x5ef   :  { %2522 = vmatpush1.bf16.msra.mxu0 %v3231_v2  ;;  %2554 = vmatpush1.bf16.msra.mxu1 %v3238_v8 }
 0x5f0   :  { %2524 = vmatprep.subr.bf16.mxu0 %v3234_v5  ;;  %2556 = vmatprep.subr.bf16.mxu1 %v3241_v11 }
 0x5f3   :  { %2526 = vmatpush1.bf16.msra.mxu0 %v3245_v15  ;;  %2558 = vmatpush1.bf16.msra.mxu1 %v3252_v21 }
 0x5f4   :  { %2528 = vmatprep.subr.bf16.mxu0 %v3248_v18  ;;  %2560 = vmatprep.subr.bf16.mxu1 %v3255_v24 }
 0x5f7   :  { %2530 = vmatpush1.bf16.msra.mxu0 %v3259_v28  ;;  %2562 = vmatpush1.bf16.msra.mxu1 %v3266_v34 }
 0x5f8   :  { %2532 = vmatprep.subr.bf16.mxu0 %v3262_v31  ;;  %2564 = vmatprep.subr.bf16.mxu1 %v3269_v37 }
 0x5fb   :  { %2534 = vmatpush1.bf16.msra.mxu0 %v3273_v41  ;;  %2566 = vmatpush1.bf16.msra.mxu1 %v3280_v49 }
 0x5fc   :  { %2536 = vmatprep.subr.bf16.mxu0 %v3276_v45  ;;  %2568 = vmatprep.subr.bf16.mxu1 %v3283_v53 }
 0x5ff   :  { %2538 = vmatpush1.bf16.msra.mxu0 %v3287_v59  ;;  %2570 = vmatpush1.bf16.msra.mxu1 %v3294_v4 }
 0x600   :  { %2540 = vmatprep.subr.bf16.mxu0 %v3290_v63  ;;  %2572 = vmatprep.subr.bf16.mxu1 %v3297_v9 }
 0x603   :  { %2542 = vmatpush1.bf16.msra.mxu0 %v3301_v14  ;;  %2574 = vmatpush1.bf16.msra.mxu1 %v3308_v23 }
 0x604   :  { %2544 = vmatprep.subr.bf16.mxu0 %v3304_v19  ;;  %2576 = vmatprep.subr.bf16.mxu1 %v3311_v25 }
 0x607   :  { %2546 = vmatpush1.bf16.msra.mxu0 %v3315_v30  ;;  %2578 = vmatpush1.bf16.msra.mxu1 %v3320_v32 }
 0x608   :  { %2580 = vmatprep.subr.bf16.mxu0 %v3215_v42  ;;  %2612 = vmatprep.subr.bf16.mxu1 %v3217_v48 }
 0x6bd   :  { %v1543_v13 = vpop.f32.mrb[10].mxu0  ;;  %v1614_v22 = vpop.f32.mrb[10].mxu1 }
 0x6be   :  { %v2653_v33 = vadd.f32 %v1543_v13, %v3366_v54  ;;  %v1545_v36 = vpop.f32.mrb[11].mxu0  ;;  %v1616_v38 = vpop.f32.mrb[11].mxu1  ;;  %v2669_v44 = vadd.f32 %v1614_v22, %v3371_v3 }
 0x6bf   :  { %v2654_v39 = vadd.f32 %v1545_v36, %v3368_v57  ;;  %v2670_v46 = vadd.f32 %v1616_v38, %v3375_v20 }
 0x6c0   :  { %v1623_v40 = vmul.f32 0.5, %v2653_v33 }
 0x6c1   :  { %v1627_v43 = vmul.f32 0.5, %v2654_v39  ;;  %v1632_v42 = vmul.f32 0.5, %v2670_v46 }
 0x6c2   :  { %2775 = vtanh.f32 %v1623_v40 }
 0x6c3   :  { %2777 = vtanh.f32 %v1627_v43 }
 0x6c4   :  { %2779 = vtanh.f32 %v2669_v44 }
 0x6c5   :  { %2781 = vtanh.f32 %v1632_v42 }
 0x6cc   :  { %v2776_v47 = vpop.eup %2775 }
 0x6cd   :  { %v2778_v48 = vpop.eup %2777  ;;  %v1625_v51 = vmul.f32 0.5, %v2776_v47 }
 0x6ce   :  { %v1629_v56 = vmul.f32 0.5, %v2778_v48  ;;  %v2780_v0 = vpop.eup %2779 }
 0x6cf   :  { %v1626_v62 = vadd.f32 0.5, %v1625_v51  ;;  %v2782_v7 = vpop.eup %2781 }
 0x6d0   :  { %v1630_v10 = vadd.f32 0.5, %v1629_v56  ;;  %v1634_v16 = vmul.f32 0.5, %v2782_v7 }
 0x6d1   :  { %v1637_v50 = vmul.f32 %v2780_v0, %v1626_v62 }
 0x6d2   :  { %v1636_v6 = vmul.f32 %v1630_v10, %v1471_v35  ;;  %v1635_v29 = vadd.f32 0.5, %v1634_v16 }
 0x6d4   :  { %v1638_v60 = vadd.f32 %v1637_v50, %v1636_v6 }
 0x6d6   :  { %2783 = vtanh.f32 %v1638_v60  ;;  %v3589_v26 = vmul.f32 %v1651_v12, %v1638_v60 }
 0x6e0   :  { %v2784_v13 = vpop.eup %2783 }
 0x6e1   :  { %v1640_v22 = vmul.f32 %v2784_v13, %v1635_v29 }
 0x6e3   :  { %1644 = vst [vmem:[#allocation17 + $0x28] sm:$0xff] %v1640_v22  ;;  %v1653_v33 = vmul.f32 %v1651_v12, %v1640_v22 }
 0x6e5   :  { %1726 = vmatmul.mubr.f32.vlgmr.msra.gmra.mrb[12].mxu0 %v1653_v33  ;;  %1797 = vmatmul.mubr.f32.vlgmr.msra.gmra.mrb[12].mxu1 %v1653_v33 }
 0x6e6   :  { %2582 = vmatpush1.bf16.msra.mxu0 %v3219_v52  ;;  %2614 = vmatpush1.bf16.msra.mxu1 %v3224_v58 }
 0x6e7   :  { %2584 = vmatprep.subr.bf16.mxu0 %v3222_v55  ;;  %2616 = vmatprep.subr.bf16.mxu1 %v3227_v61 }
 0x6e8   :  { %1909 = vmatprep.mubr.f32.mxu0 %v3049_v1  ;;  %1980 = vmatprep.mubr.f32.mxu1 %v3049_v1 }
 0x6ea   :  { %2586 = vmatpush1.bf16.msra.mxu0 %v3231_v2  ;;  %2618 = vmatpush1.bf16.msra.mxu1 %v3238_v8 }
 0x6eb   :  { %2588 = vmatprep.subr.bf16.mxu0 %v3234_v5  ;;  %2620 = vmatprep.subr.bf16.mxu1 %v3241_v11 }
 0x6ee   :  { %2590 = vmatpush1.bf16.msra.mxu0 %v3245_v15  ;;  %2622 = vmatpush1.bf16.msra.mxu1 %v3252_v21 }
 0x6ef   :  { %2592 = vmatprep.subr.bf16.mxu0 %v3248_v18  ;;  %2624 = vmatprep.subr.bf16.mxu1 %v3255_v24 }
 0x6f2   :  { %2594 = vmatpush1.bf16.msra.mxu0 %v3259_v28  ;;  %2626 = vmatpush1.bf16.msra.mxu1 %v3266_v34 }
 0x6f3   :  { %2596 = vmatprep.subr.bf16.mxu0 %v3262_v31  ;;  %2628 = vmatprep.subr.bf16.mxu1 %v3269_v37 }
 0x6f6   :  { %2598 = vmatpush1.bf16.msra.mxu0 %v3273_v41  ;;  %2630 = vmatpush1.bf16.msra.mxu1 %v3280_v49 }
 0x6f7   :  { %2600 = vmatprep.subr.bf16.mxu0 %v3276_v45  ;;  %2632 = vmatprep.subr.bf16.mxu1 %v3283_v53 }
 0x6fa   :  { %2602 = vmatpush1.bf16.msra.mxu0 %v3287_v59  ;;  %2634 = vmatpush1.bf16.msra.mxu1 %v3294_v4  ;;  %v1835_v59 = vpop.permute.xlu1 %1834 }
 0x6fb   :  { %2604 = vmatprep.subr.bf16.mxu0 %v3290_v63  ;;  %2636 = vmatprep.subr.bf16.mxu1 %v3297_v9 }
 0x6fe   :  { %2606 = vmatpush1.bf16.msra.mxu0 %v3301_v14  ;;  %2638 = vmatpush1.bf16.msra.mxu1 %v3308_v23 }
 0x6ff   :  { %2608 = vmatprep.subr.bf16.mxu0 %v3304_v19  ;;  %2640 = vmatprep.subr.bf16.mxu1 %v3311_v25 }
 0x702   :  { %2610 = vmatpush1.bf16.msra.mxu0 %v3315_v30  ;;  %2642 = vmatpush1.bf16.msra.mxu1 %v3320_v32 }
 0x7b8   :  { %v1727_v1 = vpop.f32.mrb[12].mxu0  ;;  %v1798_v52 = vpop.f32.mrb[12].mxu1 }
 0x7b9   :  { %v2655_v55 = vadd.f32 %v1727_v1, %v3366_v54  ;;  %v1729_v58 = vpop.f32.mrb[13].mxu0  ;;  %v1800_v61 = vpop.f32.mrb[13].mxu1  ;;  %v2671_v11 = vadd.f32 %v1798_v52, %v3371_v3 }
 0x7ba   :  { %v2656_v2 = vadd.f32 %v1729_v58, %v3368_v57  ;;  %v2672_v15 = vadd.f32 %v1800_v61, %v3375_v20 }
 0x7bb   :  { %v1807_v5 = vmul.f32 0.5, %v2655_v55 }
 0x7bc   :  { %v1811_v8 = vmul.f32 0.5, %v2656_v2  ;;  %v1816_v18 = vmul.f32 0.5, %v2672_v15 }
 0x7bd   :  { %2785 = vtanh.f32 %v1807_v5 }
 0x7be   :  { %2787 = vtanh.f32 %v1811_v8 }
 0x7bf   :  { %2789 = vtanh.f32 %v2671_v11 }
 0x7c0   :  { %2791 = vtanh.f32 %v1816_v18 }
 0x7c7   :  { %v2786_v21 = vpop.eup %2785 }
 0x7c8   :  { %v2788_v24 = vpop.eup %2787  ;;  %v1809_v28 = vmul.f32 0.5, %v2786_v21 }
 0x7c9   :  { %v1813_v31 = vmul.f32 0.5, %v2788_v24  ;;  %v2790_v37 = vpop.eup %2789 }
 0x7ca   :  { %v1810_v34 = vadd.f32 0.5, %v1809_v28  ;;  %v2792_v4 = vpop.eup %2791 }
 0x7cb   :  { %v1814_v41 = vadd.f32 0.5, %v1813_v31  ;;  %v1818_v9 = vmul.f32 0.5, %v2792_v4 }
 0x7cc   :  { %v1821_v45 = vmul.f32 %v2790_v37, %v1810_v34 }
 0x7cd   :  { %v1820_v49 = vmul.f32 %v1814_v41, %v3589_v26  ;;  %v1819_v14 = vadd.f32 0.5, %v1818_v9 }
 0x7cf   :  { %v1822_v53 = vadd.f32 %v1821_v45, %v1820_v49 }
 0x7d1   :  { %2793 = vtanh.f32 %v1822_v53  ;;  %v1839_v63 = vmul.f32 %v1835_v59, %v1822_v53 }
 0x7db   :  { %v2794_v19 = vpop.eup %2793 }
 0x7dc   :  { %v1824_v23 = vmul.f32 %v2794_v19, %v1819_v14 }
 0x7de   :  { %1828 = vst [vmem:[#allocation17 + $0x30] sm:$0xff] %v1824_v23  ;;  %v1837_v25 = vmul.f32 %v1835_v59, %v1824_v23 }
 0x7e0   :  { %1910 = vmatmul.mubr.f32.vlgmr.msra.gmra.mrb[14].mxu0 %v1837_v25  ;;  %1981 = vmatmul.mubr.f32.vlgmr.msra.gmra.mrb[14].mxu1 %v1837_v25 }
 0x8b3   :  { %v1911_v30 = vpop.f32.mrb[14].mxu0  ;;  %v1982_v32 = vpop.f32.mrb[14].mxu1 }
 0x8b4   :  { %v2657_v17 = vadd.f32 %v1911_v30, %v3366_v54  ;;  %v1913_v27 = vpop.f32.mrb[15].mxu0  ;;  %v1984_v36 = vpop.f32.mrb[15].mxu1  ;;  %v2673_v43 = vadd.f32 %v1982_v32, %v3371_v3 }
 0x8b5   :  { %v2658_v38 = vadd.f32 %v1913_v27, %v3368_v57  ;;  %v2674_v44 = vadd.f32 %v1984_v36, %v3375_v20 }
 0x8b6   :  { %v1991_v39 = vmul.f32 0.5, %v2657_v17 }
 0x8b7   :  { %v1995_v40 = vmul.f32 0.5, %v2658_v38  ;;  %v2000_v46 = vmul.f32 0.5, %v2674_v44 }
 0x8b8   :  { %2795 = vtanh.f32 %v1991_v39 }
 0x8b9   :  { %2797 = vtanh.f32 %v1995_v40 }
 0x8ba   :  { %2799 = vtanh.f32 %v2673_v43 }
 0x8bb   :  { %2801 = vtanh.f32 %v2000_v46 }
 0x8c2   :  { %v2796_v42 = vpop.eup %2795 }
 0x8c3   :  { %v2798_v47 = vpop.eup %2797  ;;  %v1993_v48 = vmul.f32 0.5, %v2796_v42 }
 0x8c4   :  { %v1997_v51 = vmul.f32 0.5, %v2798_v47  ;;  %v2800_v56 = vpop.eup %2799 }
 0x8c5   :  { %v1994_v54 = vadd.f32 0.5, %v1993_v48  ;;  %v2802_v10 = vpop.eup %2801 }
 0x8c6   :  { %v1998_v62 = vadd.f32 0.5, %v1997_v51  ;;  %v2002_v3 = vmul.f32 0.5, %v2802_v10 }
 0x8c7   :  { %v2005_v0 = vmul.f32 %v2800_v56, %v1994_v54 }
 0x8c8   :  { %v2004_v57 = vmul.f32 %v1998_v62, %v1839_v63  ;;  %v2003_v50 = vadd.f32 0.5, %v2002_v3 }
 0x8ca   :  { %v2006_v35 = vadd.f32 %v2005_v0, %v2004_v57 }
 0x8cc   :  { %2803 = vtanh.f32 %v2006_v35  ;;  %2019 = vst [vmem:[#allocation20] sm:$0xff] %v2006_v35 }
 0x8d6   :  { %v2804_v20 = vpop.eup %2803 }
 0x8d7   :  { %v2008_v6 = vmul.f32 %v2804_v20, %v2003_v50 }
 0x8d9   :  { %2012 = vst [vmem:[#allocation17 + $0x38] sm:$0xff] %v2008_v6  ;;  %2017 = vst [vmem:[#allocation18] sm:$0xff] %v2008_v6 }
 0x8da   :  { %2970 = shalt.err (!%p2967_p4)
}
 0x8db   :  { %s2971_s5 = scalar_lea.hbm %s3693_s8, 128 }
 0x8dc   :  { %p2972_p5 = scmp.ne.s32.totalorder %s3693_s8, %s2971_s5  ;;  %p2975_p6 = scmp.lt.u32.totalorder %s2971_s5, %s3693_s8 }
 0x8de   :  { %p2977_p7 = pnand %p2975_p6, %p2972_p5 }
 0x8e0   :  { %2980 = shalt.err (!%p2977_p7)
}
 0x8e1   :  { %2041 = dma.vmem_to_hbm [thread:$0]  %s2039_s27, 128, %s3693_s8, [#allocation19]  }
 0x8e2   :  { %s2981_s26 = scalar_lea.vmem %s3632_s13, 1024  ;;  %p2986_p9 = scmp.lt.s32.totalorder %s3632_s13, %s3632_s13 }
 0x8e3   :  { %p2982_p8 = scmp.ne.s32.totalorder %s3632_s13, %s2981_s26  ;;  %p2987_p10 = scmp.lt.s32.totalorder %s2981_s26, %s2981_s26 }
 0x8e5   :  { %p2988_p11 = por %p2987_p10, %p2986_p9 }
 0x8e7   :  { %p2989_p12 = pnand %p2988_p11, %p2982_p8 }
 0x8e9   :  { %2992 = shalt.err (!%p2989_p12)
}
 0x8ea   :  { %s2993_s29 = scalar_lea.hbm %s3692_s7, 1024 }
 0x8eb   :  { %p2994_p13 = scmp.ne.s32.totalorder %s3692_s7, %s2993_s29  ;;  %p2997_p0 = scmp.lt.u32.totalorder %s2993_s29, %s3692_s7 }
 0x8ed   :  { %p2999_p1 = pnand %p2997_p0, %p2994_p13 }
 0x8ef   :  { %3002 = shalt.err (!%p2999_p1)
}
 0x8f0   :  { %2031 = dma.vmem_to_hbm [thread:$0]  %s3632_s13, 1024, %s3692_s7, [#allocation7], %s3039_s21, %s3039_s21, %s3040_s22  }
 0x8f1   :  { %s3003_s12 = scalar_lea.vmem %s3634_s10, 128  ;;  %p3008_p3 = scmp.lt.s32.totalorder %s3634_s10, %s3634_s10 }
 0x8f2   :  { %p3004_p2 = scmp.ne.s32.totalorder %s3634_s10, %s3003_s12  ;;  %p3009_p4 = scmp.lt.s32.totalorder %s3003_s12, %s3003_s12 }
 0x8f4   :  { %p3010_p5 = por %p3009_p4, %p3008_p3 }
 0x8f6   :  { %p3011_p6 = pnand %p3010_p5, %p3004_p2 }
 0x8f8   :  { %3014 = shalt.err (!%p3011_p6)
}
 0x8f9   :  { %s3015_s24 = scalar_lea.hbm %s3694_s9, 128 }
 0x8fa   :  { %p3016_p7 = scmp.ne.s32.totalorder %s3694_s9, %s3015_s24  ;;  %p3019_p8 = scmp.lt.u32.totalorder %s3015_s24, %s3694_s9 }
 0x8fc   :  { %p3021_p9 = pnand %p3019_p8, %p3016_p7 }
 0x8fe   :  { %3024 = shalt.err (!%p3021_p9)
}
 0x8ff   :  { %2051 = dma.vmem_to_hbm [thread:$0]  %s3634_s10, 128, %s3694_s9, [#allocation19]  }
 0x900   :  { %3033 = dma.done.wait [#allocation7], 1024  }
 0x901   :  { %3034 = vsyncadd [#allocation7], 4294966272 }
 0x902   :  { %3035 = dma.done.wait [#allocation19], 256  }
 0x903   :  { %3036 = vsyncadd [#allocation19], 4294967040 }
 0x904   :  { %2061 = vsyncpa [#allocation6], 1 }
 0x905   :  { %2062 = vsyncpa [#allocation9], 1 }
 0x906   :  { %2063 = vsyncpa [#allocation12], 1 }
 0x907   :  { %2064 = vsyncpa [#allocation15], 1 }
 0x908   :  { %2065 = vsyncpa [#allocation7], 1 }
 0x909   :  { %2066 = vsyncpa [#allocation19], 1 }

</bundles_post_ra>
